<compile_context>
chip_gen: v6e
topology: v6e:2x2x1
jax: 0.10.0
libtpu: 0.0.40
codegen_flags: <defaults>
</compile_context>

<pallas_src>
import jax
import jax.numpy as jnp
from jax import lax
from jax.experimental import pallas as pl
from jax.experimental.pallas import tpu as pltpu

NEG = -1e15     # speeq MASKING_VALUE
EPS = 1e-5      # nn.LayerNorm default eps

LAYER_KEYS = ("ln1_g", "ln1_b", "wqkv", "bqkv", "wo1", "bo1",
              "ln2_g", "ln2_b", "wq2", "bq2", "wkv2", "bkv2", "wo2", "bo2",
              "ln3_g", "ln3_b", "w1", "b1", "w2", "b2")
BF16_KEYS = {"wqkv", "wo1", "wq2", "wkv2", "wo2", "w1", "w2"}


def _round_up(x, m):
    return (x + m - 1) // m * m


def _vmem_limit_bytes():
    # ~85% of physical VMEM per generation (~54 MiB on v7x, capped ~110 MiB on v5e/v6e).
    cap = 128 * 1024 * 1024
    try:
        cap = int(getattr(pltpu.get_tpu_info(), "vmem_capacity_bytes", cap))
    except Exception:
        pass
    return max(32 * 1024 * 1024, min(int(cap * 0.85), 110 * 1024 * 1024))


def sinusoidal_pe(length, d_model):
    pos = jnp.arange(length, dtype=jnp.float32)[:, None]
    i = jnp.arange(d_model // 2, dtype=jnp.float32)[None, :]
    angle = pos / jnp.power(10000.0, (2.0 * i) / float(d_model))
    pe = jnp.zeros((length, d_model), jnp.float32)
    pe = pe.at[:, 0::2].set(jnp.sin(angle))
    pe = pe.at[:, 1::2].set(jnp.cos(angle))
    return pe


def make_kernel(n_heads, dk, dk_pad, C_pad, CT):
    scale = 1.0 / float(dk) ** 0.5           # plain python floats only
    bf16, f32 = jnp.bfloat16, jnp.float32
    Hp = n_heads * dk_pad

    def layer_norm(x, g, b):
        mu = jnp.mean(x, axis=-1, keepdims=True)
        xc = x - mu
        var = jnp.mean(xc * xc, axis=-1, keepdims=True)
        return xc * lax.rsqrt(var + EPS) * g + b

    def mha(q, k, v, allow, wo):
        # q: [Mq, Hp], k/v: [Mk, Hp] fp32 with 128-lane head slots; allow broadcastable
        # to [Mq, Mk]; wo: [Hp, D] bf16 (padded rows are zero).  Per-head context is
        # folded into the output projection and accumulated in fp32 (no lane concat).
        d_model = wo.shape[1]
        acc = jnp.zeros((q.shape[0], d_model), f32)
        for hh in range(n_heads):
            sl = slice(hh * dk_pad, (hh + 1) * dk_pad)
            qh = q[:, sl].astype(bf16)
            kh = k[:, sl].astype(bf16)
            vh = v[:, sl].astype(bf16)
            s = lax.dot_general(qh, kh, (((1,), (1,)), ((), ())),
                                preferred_element_type=f32) * scale       # [Mq, Mk]
            s = jnp.where(allow, s, NEG)                                  # masked_fill
            s = s - jnp.max(s, axis=-1, keepdims=True)
            e = jnp.exp(s)
            p = e * pl.reciprocal(jnp.sum(e, axis=-1, keepdims=True), approx=True)
            ctx = jnp.dot(p.astype(bf16), vh, preferred_element_type=f32)  # [Mq, dk_pad]
            acc = acc + jnp.dot(ctx.astype(bf16), wo[sl, :],
                                preferred_element_type=f32)
        return acc

    def kernel(x0_ref, enc_ref, dkm_ref, ekm_ref,
               ln1_g, ln1_b, wqkv, bqkv, wo1, bo1,
               ln2_g, ln2_b, wq2, bq2, wkv2, bkv2, wo2, bo2,
               ln3_g, ln3_b, w1, b1, w2, b2,
               lnf_g, lnf_b, pred_b_ref, pred_w_hbm,
               out_ref, x_scr, w_buf, w_sem):
        j = pl.program_id(1)
        last = pl.num_programs(1) - 1

        @pl.when(j == 0)
        def _():
            x_scr[...] = x0_ref[0]                    # embedded + PE residual stream

        x = x_scr[...]                                # [Md, D] fp32
        Md = x.shape[0]
        enc = enc_ref[0]                              # [Me, D] bf16

        # Masks rebuilt from O(M) vectors (key-only masked_fill semantics).
        key_dec = dkm_ref[0] > 0.5                    # [1, Md]
        key_enc = ekm_ref[0] > 0.5                    # [1, Me]
        causal = (lax.broadcasted_iota(jnp.int32, (Md, Md), 0)
                  >= lax.broadcasted_iota(jnp.int32, (Md, Md), 1))
        self_allow = causal & key_dec                 # [Md, Md]
        cross_allow = key_enc                         # broadcasts to [Md, Me]

        # ---- masked self attention (pre-LN, residual) ----
        y = layer_norm(x, ln1_g[0], ln1_b[0])
        qkv = jnp.dot(y.astype(bf16), wqkv[0], preferred_element_type=f32) + bqkv[0]
        x = x + mha(qkv[:, 0:Hp], qkv[:, Hp:2 * Hp], qkv[:, 2 * Hp:3 * Hp],
                    self_allow, wo1[0]) + bo1[0]

        # ---- cross attention over encoder output ----
        y = layer_norm(x, ln2_g[0], ln2_b[0])
        q = jnp.dot(y.astype(bf16), wq2[0], preferred_element_type=f32) + bq2[0]
        kv = jnp.dot(enc, wkv2[0], preferred_element_type=f32) + bkv2[0]
        x = x + mha(q, kv[:, 0:Hp], kv[:, Hp:2 * Hp], cross_allow, wo2[0]) + bo2[0]

        # ---- feed forward ----
        y = layer_norm(x, ln3_g[0], ln3_b[0])
        hid = jnp.maximum(jnp.dot(y.astype(bf16), w1[0],
                                  preferred_element_type=f32) + b1[0], 0.0)
        x = x + jnp.dot(hid.astype(bf16), w2[0], preferred_element_type=f32) + b2[0]

        x_scr[...] = x

        # ---- final LN + vocab head streamed from HBM + online log-softmax ----
        @pl.when(j == last)
        def _():
            xf = layer_norm(x, lnf_g[...], lnf_b[...]).astype(bf16)
            n_tiles = C_pad // CT

            def fetch(t, slot):
                pltpu.make_async_copy(pred_w_hbm.at[:, pl.ds(t * CT, CT)],
                                      w_buf.at[slot], w_sem.at[slot]).start()

            fetch(0, 0)
            m_run = jnp.full((Md, 1), -1e30, f32)
            s_run = jnp.zeros((Md, 1), f32)
            for t in range(n_tiles):
                slot = t % 2
                pltpu.make_async_copy(pred_w_hbm.at[:, pl.ds(t * CT, CT)],
                                      w_buf.at[slot], w_sem.at[slot]).wait()
                if t + 1 < n_tiles:
                    fetch(t + 1, 1 - slot)
                logit = jnp.dot(xf, w_buf[slot], preferred_element_type=f32)
                logit = logit + pred_b_ref[:, pl.ds(t * CT, CT)]
                out_ref[0, :, pl.ds(t * CT, CT)] = logit
                lm = jnp.max(logit, axis=-1, keepdims=True)
                m_new = jnp.maximum(m_run, lm)
                s_run = (s_run * jnp.exp(m_run - m_new)
                         + jnp.sum(jnp.exp(logit - m_new), axis=-1, keepdims=True))
                m_run = m_new
            lse = m_run + jnp.log(s_run)
            for t in range(n_tiles):
                sl = pl.ds(t * CT, CT)
                out_ref[0, :, sl] = out_ref[0, :, sl] - lse

    return kernel


def speech_transformer_decoder(params, enc_out, enc_mask, dec_inp, dec_mask=None):
    bf16, f32 = jnp.bfloat16, jnp.float32
    B, M_enc, D = enc_out.shape
    _, M_dec = dec_inp.shape
    C = params["emb"].shape[0]
    L = len(params["layers"])
    h = params["h"]
    dk = D // h
    dk_pad = _round_up(dk, 128)              # 128-deep MXU contraction per head
    Hp = h * dk_pad
    F = params["layers"][0]["w1"].shape[1]
    F_pad = _round_up(F, 128)
    Md = _round_up(M_dec, 16)                # bf16 sublane packing
    Me = _round_up(M_enc, 16)
    CT = min(1024, _round_up(C, 128))        # vocab tile width
    C_pad = _round_up(C, CT)

    if enc_mask is None:
        enc_mask = jnp.ones((B, M_enc), f32)
    if dec_mask is None:
        dec_mask = jnp.ones((B, M_dec), f32)
    enc_m = jnp.zeros((B, 1, Me), f32).at[:, 0, :M_enc].set(enc_mask.astype(f32))
    dec_m = jnp.zeros((B, 1, Md), f32).at[:, 0, :M_dec].set(dec_mask.astype(f32))

    # Token-embedding gather + positional encoding hoisted out of the kernel.
    toks = jnp.zeros((B, Md), jnp.int32).at[:, :M_dec].set(dec_inp.astype(jnp.int32))
    x0 = jnp.take(params["emb"].astype(f32), toks, axis=0) + sinusoidal_pe(Md, D)[None]

    enc_p = jnp.zeros((B, Me, D), f32).at[:, :M_enc, :].set(enc_out).astype(bf16)

    # --- pack per-head slots to 128 lanes, fuse projections, stack along L ---
    def pack_in(w, b):
        wp = jnp.zeros((D, Hp), f32)
        bp = jnp.zeros((1, Hp), f32)
        for i in range(h):
            wp = wp.at[:, i * dk_pad:i * dk_pad + dk].set(w[:, i * dk:(i + 1) * dk])
            bp = bp.at[:, i * dk_pad:i * dk_pad + dk].set(b[:, i * dk:(i + 1) * dk])
        return wp, bp

    def pack_out(w):
        wp = jnp.zeros((Hp, D), f32)
        for i in range(h):
            wp = wp.at[i * dk_pad:i * dk_pad + dk, :].set(w[i * dk:(i + 1) * dk, :])
        return wp

    stk = {k: [] for k in LAYER_KEYS}
    for lp in params["layers"]:
        wq, bq = pack_in(lp["wq"], lp["bq"])
        wk, bk = pack_in(lp["wk"], lp["bk"])
        wv, bv = pack_in(lp["wv"], lp["bv"])
        stk["wqkv"].append(jnp.concatenate([wq, wk, wv], axis=1))
        stk["bqkv"].append(jnp.concatenate([bq, bk, bv], axis=1))
        stk["wo1"].append(pack_out(lp["wo"]))
        stk["bo1"].append(lp["bo"])
        cq, cbq = pack_in(lp["cwq"], lp["cbq"])
        ck, cbk = pack_in(lp["cwk"], lp["cbk"])
        cv, cbv = pack_in(lp["cwv"], lp["cbv"])
        stk["wq2"].append(cq)
        stk["bq2"].append(cbq)
        stk["wkv2"].append(jnp.concatenate([ck, cv], axis=1))
        stk["bkv2"].append(jnp.concatenate([cbk, cbv], axis=1))
        stk["wo2"].append(pack_out(lp["cwo"]))
        stk["bo2"].append(lp["cbo"])
        stk["ln1_g"].append(lp["ln1_g"]); stk["ln1_b"].append(lp["ln1_b"])
        stk["ln2_g"].append(lp["ln2_g"]); stk["ln2_b"].append(lp["ln2_b"])
        stk["ln3_g"].append(lp["ln3_g"]); stk["ln3_b"].append(lp["ln3_b"])
        stk["w1"].append(jnp.zeros((D, F_pad), f32).at[:, :F].set(lp["w1"]))
        stk["b1"].append(jnp.zeros((1, F_pad), f32).at[:, :F].set(lp["b1"]))
        stk["w2"].append(jnp.zeros((F_pad, D), f32).at[:F, :].set(lp["w2"]))
        stk["b2"].append(lp["b2"])
    stacked = {k: jnp.stack(v).astype(bf16 if k in BF16_KEYS else f32)
               for k, v in stk.items()}

    # Lane-dense padded vocab head; padded classes get bias -1e30 (fp32!) so exp(.)≈0.
    pred_w = jnp.zeros((D, C_pad), f32).at[:, :C].set(params["pred_w"]).astype(bf16)
    pred_b = jnp.full((1, C_pad), -1e30, f32).at[:, :C].set(params["pred_b"])

    in_args = [x0, enc_p, dec_m, enc_m]
    in_specs = [
        pl.BlockSpec((1, Md, D), lambda b, j: (b, 0, 0)),
        pl.BlockSpec((1, Me, D), lambda b, j: (b, 0, 0)),
        pl.BlockSpec((1, 1, Md), lambda b, j: (b, 0, 0)),
        pl.BlockSpec((1, 1, Me), lambda b, j: (b, 0, 0)),
    ]
    for name in LAYER_KEYS:                     # weights streamed per layer (j grid axis)
        arr = stacked[name]
        in_args.append(arr)
        in_specs.append(pl.BlockSpec((1,) + arr.shape[1:], lambda b, j: (j, 0, 0)))
    in_args += [params["lnf_g"].astype(f32), params["lnf_b"].astype(f32), pred_b, pred_w]
    in_specs += [
        pl.BlockSpec((1, D), lambda b, j: (0, 0)),
        pl.BlockSpec((1, D), lambda b, j: (0, 0)),
        pl.BlockSpec((1, C_pad), lambda b, j: (0, 0)),
        pl.BlockSpec(memory_space=pl.ANY),      # vocab weights stay in HBM, streamed
    ]

    grid_spec = pltpu.PrefetchScalarGridSpec(
        num_scalar_prefetch=0,
        grid=(B, L),                            # batch parallel, layers sequential
        in_specs=in_specs,
        out_specs=pl.BlockSpec((1, Md, C_pad), lambda b, j: (b, 0, 0)),
        scratch_shapes=[pltpu.VMEM((Md, D), f32),          # persistent residual stream
                        pltpu.VMEM((2, D, CT), bf16),      # double-buffered vocab tiles
                        pltpu.SemaphoreType.DMA((2,))],
    )

    out = pl.pallas_call(
        make_kernel(h, dk, dk_pad, C_pad, CT),
        out_shape=jax.ShapeDtypeStruct((B, Md, C_pad), f32),
        grid_spec=grid_spec,
        compiler_params=pltpu.CompilerParams(
            dimension_semantics=("parallel", "arbitrary"),
            vmem_limit_bytes=_vmem_limit_bytes()),
    )(*in_args)

    return out[:, :M_dec, :C]                   # [B, M_dec, C] log-probabilities


def init_params(key, L, D, F, h, C):
    ks = iter(jax.random.split(key, 4 + 20 * L))

    def lin(shape, fan_in):
        b = 1.0 / float(fan_in) ** 0.5
        return jax.random.uniform(next(ks), shape, jnp.float32, -b, b)

    def ln():
        return jnp.ones((1, D), jnp.float32), jnp.zeros((1, D), jnp.float32)

    params = {
        "h": h,
        "emb": jax.random.normal(next(ks), (C, D), jnp.float32),
        "lnf_g": jnp.ones((1, D), jnp.float32),
        "lnf_b": jnp.zeros((1, D), jnp.float32),
        "pred_w": lin((D, C), D),
        "pred_b": lin((1, C), D),
    }
    layers = []
    for _ in range(L):
        lyr = {}
        lyr["ln1_g"], lyr["ln1_b"] = ln()
        lyr["ln2_g"], lyr["ln2_b"] = ln()
        lyr["ln3_g"], lyr["ln3_b"] = ln()
        for p in ("wq", "wk", "wv", "wo", "cwq", "cwk", "cwv", "cwo"):
            lyr[p] = lin((D, D), D)
        for p in ("bq", "bk", "bv", "bo", "cbq", "cbk", "cbv", "cbo"):
            lyr[p] = lin((1, D), D)
        lyr["w1"], lyr["b1"] = lin((D, F), D), lin((1, F), D)
        lyr["w2"], lyr["b2"] = lin((F, D), F), lin((1, D), F)
        layers.append(lyr)
    params["layers"] = layers
    return params


if __name__ == "__main__":
    B, M_enc, M_dec = 2, 16, 8
    D, F, n_heads, C, L = 64, 128, 4, 32, 2

    key = jax.random.PRNGKey(0)
    k1, k2, k3 = jax.random.split(key, 3)
    params = init_params(k1, L, D, F, n_heads, C)

    enc_out = jax.random.normal(k2, (B, M_enc, D), jnp.float32)
    enc_lengths = jnp.array([M_enc, 11])
    enc_mask = (jnp.arange(M_enc)[None, :] < enc_lengths[:, None]).astype(jnp.float32)
    dec_lengths = jnp.array([M_dec, 6])
    dec_mask = (jnp.arange(M_dec)[None, :] < dec_lengths[:, None]).astype(jnp.float32)
    dec_inp = jax.random.randint(k3, (B, M_dec), 0, C, jnp.int32)

    result = speech_transformer_decoder(params, enc_out, enc_mask, dec_inp, dec_mask)
    result = jax.block_until_ready(result)

    assert result.shape == (B, M_dec, C)
    assert bool(jnp.all(jnp.isfinite(result)))
    # output is a log-softmax over the vocabulary -> probabilities must sum to 1
    assert bool(jnp.allclose(jnp.exp(result).sum(-1), 1.0, atol=1e-3))
    print("KERNEL_OK")
</pallas_src>

<mosaic_0001>
module attributes {stable_mosaic.version = 11 : i64} {
  func.func @kernel(%arg0: i32, %arg1: i32, %arg2: memref<1x16x64xf32, #tpu.memory_space<vmem>>, %arg3: memref<1x16x64xbf16, #tpu.memory_space<vmem>>, %arg4: memref<1x1x16xf32, #tpu.memory_space<vmem>>, %arg5: memref<1x1x16xf32, #tpu.memory_space<vmem>>, %arg6: memref<1x1x64xf32, #tpu.memory_space<vmem>>, %arg7: memref<1x1x64xf32, #tpu.memory_space<vmem>>, %arg8: memref<1x64x1536xbf16, #tpu.memory_space<vmem>>, %arg9: memref<1x1x1536xf32, #tpu.memory_space<vmem>>, %arg10: memref<1x512x64xbf16, #tpu.memory_space<vmem>>, %arg11: memref<1x1x64xf32, #tpu.memory_space<vmem>>, %arg12: memref<1x1x64xf32, #tpu.memory_space<vmem>>, %arg13: memref<1x1x64xf32, #tpu.memory_space<vmem>>, %arg14: memref<1x64x512xbf16, #tpu.memory_space<vmem>>, %arg15: memref<1x1x512xf32, #tpu.memory_space<vmem>>, %arg16: memref<1x64x1024xbf16, #tpu.memory_space<vmem>>, %arg17: memref<1x1x1024xf32, #tpu.memory_space<vmem>>, %arg18: memref<1x512x64xbf16, #tpu.memory_space<vmem>>, %arg19: memref<1x1x64xf32, #tpu.memory_space<vmem>>, %arg20: memref<1x1x64xf32, #tpu.memory_space<vmem>>, %arg21: memref<1x1x64xf32, #tpu.memory_space<vmem>>, %arg22: memref<1x64x128xbf16, #tpu.memory_space<vmem>>, %arg23: memref<1x1x128xf32, #tpu.memory_space<vmem>>, %arg24: memref<1x128x64xbf16, #tpu.memory_space<vmem>>, %arg25: memref<1x1x64xf32, #tpu.memory_space<vmem>>, %arg26: memref<1x64xf32, #tpu.memory_space<vmem>>, %arg27: memref<1x64xf32, #tpu.memory_space<vmem>>, %arg28: memref<1x128xf32, #tpu.memory_space<vmem>>, %arg29: memref<64x128xbf16, #tpu.memory_space<any>>, %arg30: memref<1x16x128xf32, #tpu.memory_space<vmem>>, %arg31: memref<16x64xf32, #tpu.memory_space<vmem>>, %arg32: memref<2x64x128xbf16, #tpu.memory_space<vmem>>, %arg33: memref<2x!tpu.dma_semaphore, #tpu.memory_space<semaphore_mem>>) attributes {dimension_semantics = [#tpu.dimension_semantics<parallel>, #tpu.dimension_semantics<arbitrary>], iteration_bounds = array<i64: 2, 2>, scalar_prefetch = 0 : i64, scratch_operands = 3 : i64, tpu.core_type = #tpu.core_type<tc>, window_params = [{transform_indices = @transform_0, window_bounds = array<i64: 1, 16, 64>}, {transform_indices = @transform_1, window_bounds = array<i64: 1, 16, 64>}, {transform_indices = @transform_2, window_bounds = array<i64: 1, 1, 16>}, {transform_indices = @transform_3, window_bounds = array<i64: 1, 1, 16>}, {transform_indices = @transform_4, window_bounds = array<i64: 1, 1, 64>}, {transform_indices = @transform_5, window_bounds = array<i64: 1, 1, 64>}, {transform_indices = @transform_6, window_bounds = array<i64: 1, 64, 1536>}, {transform_indices = @transform_7, window_bounds = array<i64: 1, 1, 1536>}, {transform_indices = @transform_8, window_bounds = array<i64: 1, 512, 64>}, {transform_indices = @transform_9, window_bounds = array<i64: 1, 1, 64>}, {transform_indices = @transform_10, window_bounds = array<i64: 1, 1, 64>}, {transform_indices = @transform_11, window_bounds = array<i64: 1, 1, 64>}, {transform_indices = @transform_12, window_bounds = array<i64: 1, 64, 512>}, {transform_indices = @transform_13, window_bounds = array<i64: 1, 1, 512>}, {transform_indices = @transform_14, window_bounds = array<i64: 1, 64, 1024>}, {transform_indices = @transform_15, window_bounds = array<i64: 1, 1, 1024>}, {transform_indices = @transform_16, window_bounds = array<i64: 1, 512, 64>}, {transform_indices = @transform_17, window_bounds = array<i64: 1, 1, 64>}, {transform_indices = @transform_18, window_bounds = array<i64: 1, 1, 64>}, {transform_indices = @transform_19, window_bounds = array<i64: 1, 1, 64>}, {transform_indices = @transform_20, window_bounds = array<i64: 1, 64, 128>}, {transform_indices = @transform_21, window_bounds = array<i64: 1, 1, 128>}, {transform_indices = @transform_22, window_bounds = array<i64: 1, 128, 64>}, {transform_indices = @transform_23, window_bounds = array<i64: 1, 1, 64>}, {pipeline_mode = #tpu.pipeline_mode<synchronous>, transform_indices = @transform_24, window_bounds = array<i64: 1, 64>}, {pipeline_mode = #tpu.pipeline_mode<synchronous>, transform_indices = @transform_25, window_bounds = array<i64: 1, 64>}, {pipeline_mode = #tpu.pipeline_mode<synchronous>, transform_indices = @transform_26, window_bounds = array<i64: 1, 128>}, {}, {transform_indices = @transform_28, window_bounds = array<i64: 1, 16, 128>}]} {
    %c0_i32 = arith.constant 0 : i32
    %0 = arith.cmpi eq, %arg1, %c0_i32 : i32
    %1 = arith.extui %0 : i1 to i32
    %c0_i32_0 = arith.constant 0 : i32
    %2 = arith.cmpi ne, %1, %c0_i32_0 : i32
    scf.if %2 {
      %c0_154 = arith.constant 0 : index
      %c0_155 = arith.constant 0 : index
      %c0_156 = arith.constant 0 : index
      %382 = vector.load %arg2[%c0_154, %c0_155, %c0_156] : memref<1x16x64xf32, #tpu.memory_space<vmem>>, vector<1x16x64xf32>
      %383 = vector.shape_cast %382 : vector<1x16x64xf32> to vector<16x64xf32>
      %c0_157 = arith.constant 0 : index
      %c0_158 = arith.constant 0 : index
      %384 = vector.load %arg31[%c0_157, %c0_158] : memref<16x64xf32, #tpu.memory_space<vmem>>, vector<16x64xf32>
      tpu.vector_store %arg31[%c0_157, %c0_158], %383 {strides = array<i32>} : memref<16x64xf32, #tpu.memory_space<vmem>>, vector<16x64xf32>,
    } else {
    }
    %c0 = arith.constant 0 : index
    %c0_1 = arith.constant 0 : index
    %3 = vector.load %arg31[%c0, %c0_1] : memref<16x64xf32, #tpu.memory_space<vmem>>, vector<16x64xf32>
    %c0_2 = arith.constant 0 : index
    %c0_3 = arith.constant 0 : index
    %c0_4 = arith.constant 0 : index
    %4 = vector.load %arg3[%c0_2, %c0_3, %c0_4] : memref<1x16x64xbf16, #tpu.memory_space<vmem>>, vector<1x16x64xbf16>
    %5 = vector.shape_cast %4 : vector<1x16x64xbf16> to vector<16x64xbf16>
    %c0_5 = arith.constant 0 : index
    %c0_6 = arith.constant 0 : index
    %c0_7 = arith.constant 0 : index
    %6 = vector.load %arg4[%c0_5, %c0_6, %c0_7] : memref<1x1x16xf32, #tpu.memory_space<vmem>>, vector<1x1x16xf32>
    %7 = vector.shape_cast %6 : vector<1x1x16xf32> to vector<1x16xf32>
    %cst = arith.constant 5.000000e-01 : f32
    %8 = vector.broadcast %cst : f32 to vector<1x16xf32>
    %9 = arith.cmpf ogt, %7, %8 : vector<1x16xf32>
    %c0_8 = arith.constant 0 : index
    %c0_9 = arith.constant 0 : index
    %c0_10 = arith.constant 0 : index
    %10 = vector.load %arg5[%c0_8, %c0_9, %c0_10] : memref<1x1x16xf32, #tpu.memory_space<vmem>>, vector<1x1x16xf32>
    %11 = vector.shape_cast %10 : vector<1x1x16xf32> to vector<1x16xf32>
    %cst_11 = arith.constant 5.000000e-01 : f32
    %12 = vector.broadcast %cst_11 : f32 to vector<1x16xf32>
    %13 = arith.cmpf ogt, %11, %12 : vector<1x16xf32>
    %14 = tpu.iota {dimensions = array<i32: 0>} : vector<16x16xi32>
    %15 = tpu.iota {dimensions = array<i32: 1>} : vector<16x16xi32>
    %16 = arith.cmpi sge, %14, %15 : vector<16x16xi32>
    %17 = vector.broadcast %9 : vector<1x16xi1> to vector<16x16xi1>
    %18 = arith.andi %16, %17 : vector<16x16xi1>
    %c0_12 = arith.constant 0 : index
    %c0_13 = arith.constant 0 : index
    %c0_14 = arith.constant 0 : index
    %19 = vector.load %arg6[%c0_12, %c0_13, %c0_14] : memref<1x1x64xf32, #tpu.memory_space<vmem>>, vector<1x1x64xf32>
    %20 = vector.shape_cast %19 : vector<1x1x64xf32> to vector<1x64xf32>
    %c0_15 = arith.constant 0 : index
    %c0_16 = arith.constant 0 : index
    %c0_17 = arith.constant 0 : index
    %21 = vector.load %arg7[%c0_15, %c0_16, %c0_17] : memref<1x1x64xf32, #tpu.memory_space<vmem>>, vector<1x1x64xf32>
    %22 = vector.shape_cast %21 : vector<1x1x64xf32> to vector<1x64xf32>
    %cst_18 = arith.constant dense<0.000000e+00> : vector<16xf32>
    %23 = vector.multi_reduction <add>, %3, %cst_18 [1] : vector<16x64xf32> to vector<16xf32>
    %24 = vector.shape_cast %23 : vector<16xf32> to vector<16x1xf32>
    %cst_19 = arith.constant 6.400000e+01 : f32
    %25 = vector.broadcast %cst_19 : f32 to vector<16x1xf32>
    %26 = arith.divf %24, %25 : vector<16x1xf32>
    %27 = vector.broadcast %26 : vector<16x1xf32> to vector<16x64xf32>
    %28 = arith.subf %3, %27 : vector<16x64xf32>
    %29 = arith.mulf %28, %28 : vector<16x64xf32>
    %cst_20 = arith.constant dense<0.000000e+00> : vector<16xf32>
    %30 = vector.multi_reduction <add>, %29, %cst_20 [1] : vector<16x64xf32> to vector<16xf32>
    %31 = vector.shape_cast %30 : vector<16xf32> to vector<16x1xf32>
    %cst_21 = arith.constant 6.400000e+01 : f32
    %32 = vector.broadcast %cst_21 : f32 to vector<16x1xf32>
    %33 = arith.divf %31, %32 : vector<16x1xf32>
    %cst_22 = arith.constant 9.99999974E-6 : f32
    %34 = vector.broadcast %cst_22 : f32 to vector<16x1xf32>
    %35 = arith.addf %33, %34 : vector<16x1xf32>
    %36 = math.rsqrt %35 : vector<16x1xf32>
    %37 = vector.broadcast %36 : vector<16x1xf32> to vector<16x64xf32>
    %38 = arith.mulf %28, %37 : vector<16x64xf32>
    %39 = vector.broadcast %20 : vector<1x64xf32> to vector<16x64xf32>
    %40 = arith.mulf %38, %39 : vector<16x64xf32>
    %41 = vector.broadcast %22 : vector<1x64xf32> to vector<16x64xf32>
    %42 = arith.addf %40, %41 : vector<16x64xf32>
    %43 = arith.truncf %42 : vector<16x64xf32> to vector<16x64xbf16>
    %c0_23 = arith.constant 0 : index
    %c0_24 = arith.constant 0 : index
    %c0_25 = arith.constant 0 : index
    %44 = vector.load %arg8[%c0_23, %c0_24, %c0_25] : memref<1x64x1536xbf16, #tpu.memory_space<vmem>>, vector<1x64x1536xbf16>
    %45 = vector.shape_cast %44 : vector<1x64x1536xbf16> to vector<64x1536xbf16>
    %cst_26 = arith.constant dense<0.000000e+00> : vector<16x1536xf32>
    %46 = tpu.matmul %43, %45, %cst_26 {dimension_numbers = #tpu.dot_dimension_numbers<[1], [0], [0], [1], [0, 0, 1, 1], [], []>} : vector<16x64xbf16>, vector<64x1536xbf16>, vector<16x1536xf32> -> vector<16x1536xf32>
    %c0_27 = arith.constant 0 : index
    %c0_28 = arith.constant 0 : index
    %c0_29 = arith.constant 0 : index
    %47 = vector.load %arg9[%c0_27, %c0_28, %c0_29] : memref<1x1x1536xf32, #tpu.memory_space<vmem>>, vector<1x1x1536xf32>
    %48 = vector.shape_cast %47 : vector<1x1x1536xf32> to vector<1x1536xf32>
    %49 = vector.broadcast %48 : vector<1x1536xf32> to vector<16x1536xf32>
    %50 = arith.addf %46, %49 : vector<16x1536xf32>
    %51 = vector.extract_strided_slice %50 {offsets = [0, 0], sizes = [16, 512], strides = [1, 1]} : vector<16x1536xf32> to vector<16x512xf32>
    %52 = vector.extract_strided_slice %50 {offsets = [0, 512], sizes = [16, 512], strides = [1, 1]} : vector<16x1536xf32> to vector<16x512xf32>
    %53 = vector.extract_strided_slice %50 {offsets = [0, 1024], sizes = [16, 512], strides = [1, 1]} : vector<16x1536xf32> to vector<16x512xf32>
    %c0_30 = arith.constant 0 : index
    %c0_31 = arith.constant 0 : index
    %c0_32 = arith.constant 0 : index
    %54 = vector.load %arg10[%c0_30, %c0_31, %c0_32] : memref<1x512x64xbf16, #tpu.memory_space<vmem>>, vector<1x512x64xbf16>
    %55 = vector.shape_cast %54 : vector<1x512x64xbf16> to vector<512x64xbf16>
    %cst_33 = arith.constant 0.000000e+00 : f32
    %56 = vector.broadcast %cst_33 : f32 to vector<16x64xf32>
    %57 = vector.extract_strided_slice %51 {offsets = [0, 0], sizes = [16, 128], strides = [1, 1]} : vector<16x512xf32> to vector<16x128xf32>
    %58 = arith.truncf %57 : vector<16x128xf32> to vector<16x128xbf16>
    %59 = vector.extract_strided_slice %52 {offsets = [0, 0], sizes = [16, 128], strides = [1, 1]} : vector<16x512xf32> to vector<16x128xf32>
    %60 = arith.truncf %59 : vector<16x128xf32> to vector<16x128xbf16>
    %61 = vector.extract_strided_slice %53 {offsets = [0, 0], sizes = [16, 128], strides = [1, 1]} : vector<16x512xf32> to vector<16x128xf32>
    %62 = arith.truncf %61 : vector<16x128xf32> to vector<16x128xbf16>
    %cst_34 = arith.constant dense<0.000000e+00> : vector<16x16xf32>
    %63 = tpu.matmul %58, %60, %cst_34 {dimension_numbers = #tpu.dot_dimension_numbers<[1], [1], [0], [0], [0, 0, 1, 0], [], []>} : vector<16x128xbf16>, vector<16x128xbf16>, vector<16x16xf32> -> vector<16x16xf32>
    %cst_35 = arith.constant 2.500000e-01 : f32
    %64 = vector.broadcast %cst_35 : f32 to vector<16x16xf32>
    %65 = arith.mulf %63, %64 : vector<16x16xf32>
    %cst_36 = arith.constant -9.99999986E+14 : f32
    %66 = vector.broadcast %cst_36 : f32 to vector<16x16xf32>
    %67 = arith.select %18, %65, %66 : vector<16x16xi1>, vector<16x16xf32>
    %cst_37 = arith.constant dense<0xFF800000> : vector<16xf32>
    %68 = vector.multi_reduction <maximumf>, %67, %cst_37 [1] : vector<16x16xf32> to vector<16xf32>
    %69 = vector.shape_cast %68 : vector<16xf32> to vector<16x1xf32>
    %70 = vector.broadcast %69 : vector<16x1xf32> to vector<16x16xf32>
    %71 = arith.subf %67, %70 : vector<16x16xf32>
    %72 = math.exp %71 : vector<16x16xf32>
    %cst_38 = arith.constant dense<0.000000e+00> : vector<16xf32>
    %73 = vector.multi_reduction <add>, %72, %cst_38 [1] : vector<16x16xf32> to vector<16xf32>
    %74 = vector.shape_cast %73 : vector<16xf32> to vector<16x1xf32>
    %75 = tpu.reciprocal %74 {approx = true} : vector<16x1xf32> -> vector<16x1xf32>
    %76 = vector.broadcast %75 : vector<16x1xf32> to vector<16x16xf32>
    %77 = arith.mulf %72, %76 : vector<16x16xf32>
    %78 = arith.truncf %77 : vector<16x16xf32> to vector<16x16xbf16>
    %cst_39 = arith.constant dense<0.000000e+00> : vector<16x128xf32>
    %79 = tpu.matmul %78, %62, %cst_39 {dimension_numbers = #tpu.dot_dimension_numbers<[1], [0], [0], [1], [0, 0, 1, 1], [], []>} : vector<16x16xbf16>, vector<16x128xbf16>, vector<16x128xf32> -> vector<16x128xf32>
    %80 = arith.truncf %79 : vector<16x128xf32> to vector<16x128xbf16>
    %81 = vector.extract_strided_slice %55 {offsets = [0, 0], sizes = [128, 64], strides = [1, 1]} : vector<512x64xbf16> to vector<128x64xbf16>
    %cst_40 = arith.constant dense<0.000000e+00> : vector<16x64xf32>
    %82 = tpu.matmul %80, %81, %cst_40 {dimension_numbers = #tpu.dot_dimension_numbers<[1], [0], [0], [1], [0, 0, 1, 1], [], []>} : vector<16x128xbf16>, vector<128x64xbf16>, vector<16x64xf32> -> vector<16x64xf32>
    %83 = arith.addf %56, %82 : vector<16x64xf32>
    %84 = vector.extract_strided_slice %51 {offsets = [0, 128], sizes = [16, 128], strides = [1, 1]} : vector<16x512xf32> to vector<16x128xf32>
    %85 = arith.truncf %84 : vector<16x128xf32> to vector<16x128xbf16>
    %86 = vector.extract_strided_slice %52 {offsets = [0, 128], sizes = [16, 128], strides = [1, 1]} : vector<16x512xf32> to vector<16x128xf32>
    %87 = arith.truncf %86 : vector<16x128xf32> to vector<16x128xbf16>
    %88 = vector.extract_strided_slice %53 {offsets = [0, 128], sizes = [16, 128], strides = [1, 1]} : vector<16x512xf32> to vector<16x128xf32>
    %89 = arith.truncf %88 : vector<16x128xf32> to vector<16x128xbf16>
    %cst_41 = arith.constant dense<0.000000e+00> : vector<16x16xf32>
    %90 = tpu.matmul %85, %87, %cst_41 {dimension_numbers = #tpu.dot_dimension_numbers<[1], [1], [0], [0], [0, 0, 1, 0], [], []>} : vector<16x128xbf16>, vector<16x128xbf16>, vector<16x16xf32> -> vector<16x16xf32>
    %cst_42 = arith.constant 2.500000e-01 : f32
    %91 = vector.broadcast %cst_42 : f32 to vector<16x16xf32>
    %92 = arith.mulf %90, %91 : vector<16x16xf32>
    %cst_43 = arith.constant -9.99999986E+14 : f32
    %93 = vector.broadcast %cst_43 : f32 to vector<16x16xf32>
    %94 = arith.select %18, %92, %93 : vector<16x16xi1>, vector<16x16xf32>
    %cst_44 = arith.constant dense<0xFF800000> : vector<16xf32>
    %95 = vector.multi_reduction <maximumf>, %94, %cst_44 [1] : vector<16x16xf32> to vector<16xf32>
    %96 = vector.shape_cast %95 : vector<16xf32> to vector<16x1xf32>
    %97 = vector.broadcast %96 : vector<16x1xf32> to vector<16x16xf32>
    %98 = arith.subf %94, %97 : vector<16x16xf32>
    %99 = math.exp %98 : vector<16x16xf32>
    %cst_45 = arith.constant dense<0.000000e+00> : vector<16xf32>
    %100 = vector.multi_reduction <add>, %99, %cst_45 [1] : vector<16x16xf32> to vector<16xf32>
    %101 = vector.shape_cast %100 : vector<16xf32> to vector<16x1xf32>
    %102 = tpu.reciprocal %101 {approx = true} : vector<16x1xf32> -> vector<16x1xf32>
    %103 = vector.broadcast %102 : vector<16x1xf32> to vector<16x16xf32>
    %104 = arith.mulf %99, %103 : vector<16x16xf32>
    %105 = arith.truncf %104 : vector<16x16xf32> to vector<16x16xbf16>
    %cst_46 = arith.constant dense<0.000000e+00> : vector<16x128xf32>
    %106 = tpu.matmul %105, %89, %cst_46 {dimension_numbers = #tpu.dot_dimension_numbers<[1], [0], [0], [1], [0, 0, 1, 1], [], []>} : vector<16x16xbf16>, vector<16x128xbf16>, vector<16x128xf32> -> vector<16x128xf32>
    %107 = arith.truncf %106 : vector<16x128xf32> to vector<16x128xbf16>
    %108 = vector.extract_strided_slice %55 {offsets = [128, 0], sizes = [128, 64], strides = [1, 1]} : vector<512x64xbf16> to vector<128x64xbf16>
    %cst_47 = arith.constant dense<0.000000e+00> : vector<16x64xf32>
    %109 = tpu.matmul %107, %108, %cst_47 {dimension_numbers = #tpu.dot_dimension_numbers<[1], [0], [0], [1], [0, 0, 1, 1], [], []>} : vector<16x128xbf16>, vector<128x64xbf16>, vector<16x64xf32> -> vector<16x64xf32>
    %110 = arith.addf %83, %109 : vector<16x64xf32>
    %111 = vector.extract_strided_slice %51 {offsets = [0, 256], sizes = [16, 128], strides = [1, 1]} : vector<16x512xf32> to vector<16x128xf32>
    %112 = arith.truncf %111 : vector<16x128xf32> to vector<16x128xbf16>
    %113 = vector.extract_strided_slice %52 {offsets = [0, 256], sizes = [16, 128], strides = [1, 1]} : vector<16x512xf32> to vector<16x128xf32>
    %114 = arith.truncf %113 : vector<16x128xf32> to vector<16x128xbf16>
    %115 = vector.extract_strided_slice %53 {offsets = [0, 256], sizes = [16, 128], strides = [1, 1]} : vector<16x512xf32> to vector<16x128xf32>
    %116 = arith.truncf %115 : vector<16x128xf32> to vector<16x128xbf16>
    %cst_48 = arith.constant dense<0.000000e+00> : vector<16x16xf32>
    %117 = tpu.matmul %112, %114, %cst_48 {dimension_numbers = #tpu.dot_dimension_numbers<[1], [1], [0], [0], [0, 0, 1, 0], [], []>} : vector<16x128xbf16>, vector<16x128xbf16>, vector<16x16xf32> -> vector<16x16xf32>
    %cst_49 = arith.constant 2.500000e-01 : f32
    %118 = vector.broadcast %cst_49 : f32 to vector<16x16xf32>
    %119 = arith.mulf %117, %118 : vector<16x16xf32>
    %cst_50 = arith.constant -9.99999986E+14 : f32
    %120 = vector.broadcast %cst_50 : f32 to vector<16x16xf32>
    %121 = arith.select %18, %119, %120 : vector<16x16xi1>, vector<16x16xf32>
    %cst_51 = arith.constant dense<0xFF800000> : vector<16xf32>
    %122 = vector.multi_reduction <maximumf>, %121, %cst_51 [1] : vector<16x16xf32> to vector<16xf32>
    %123 = vector.shape_cast %122 : vector<16xf32> to vector<16x1xf32>
    %124 = vector.broadcast %123 : vector<16x1xf32> to vector<16x16xf32>
    %125 = arith.subf %121, %124 : vector<16x16xf32>
    %126 = math.exp %125 : vector<16x16xf32>
    %cst_52 = arith.constant dense<0.000000e+00> : vector<16xf32>
    %127 = vector.multi_reduction <add>, %126, %cst_52 [1] : vector<16x16xf32> to vector<16xf32>
    %128 = vector.shape_cast %127 : vector<16xf32> to vector<16x1xf32>
    %129 = tpu.reciprocal %128 {approx = true} : vector<16x1xf32> -> vector<16x1xf32>
    %130 = vector.broadcast %129 : vector<16x1xf32> to vector<16x16xf32>
    %131 = arith.mulf %126, %130 : vector<16x16xf32>
    %132 = arith.truncf %131 : vector<16x16xf32> to vector<16x16xbf16>
    %cst_53 = arith.constant dense<0.000000e+00> : vector<16x128xf32>
    %133 = tpu.matmul %132, %116, %cst_53 {dimension_numbers = #tpu.dot_dimension_numbers<[1], [0], [0], [1], [0, 0, 1, 1], [], []>} : vector<16x16xbf16>, vector<16x128xbf16>, vector<16x128xf32> -> vector<16x128xf32>
    %134 = arith.truncf %133 : vector<16x128xf32> to vector<16x128xbf16>
    %135 = vector.extract_strided_slice %55 {offsets = [256, 0], sizes = [128, 64], strides = [1, 1]} : vector<512x64xbf16> to vector<128x64xbf16>
    %cst_54 = arith.constant dense<0.000000e+00> : vector<16x64xf32>
    %136 = tpu.matmul %134, %135, %cst_54 {dimension_numbers = #tpu.dot_dimension_numbers<[1], [0], [0], [1], [0, 0, 1, 1], [], []>} : vector<16x128xbf16>, vector<128x64xbf16>, vector<16x64xf32> -> vector<16x64xf32>
    %137 = arith.addf %110, %136 : vector<16x64xf32>
    %138 = vector.extract_strided_slice %51 {offsets = [0, 384], sizes = [16, 128], strides = [1, 1]} : vector<16x512xf32> to vector<16x128xf32>
    %139 = arith.truncf %138 : vector<16x128xf32> to vector<16x128xbf16>
    %140 = vector.extract_strided_slice %52 {offsets = [0, 384], sizes = [16, 128], strides = [1, 1]} : vector<16x512xf32> to vector<16x128xf32>
    %141 = arith.truncf %140 : vector<16x128xf32> to vector<16x128xbf16>
    %142 = vector.extract_strided_slice %53 {offsets = [0, 384], sizes = [16, 128], strides = [1, 1]} : vector<16x512xf32> to vector<16x128xf32>
    %143 = arith.truncf %142 : vector<16x128xf32> to vector<16x128xbf16>
    %cst_55 = arith.constant dense<0.000000e+00> : vector<16x16xf32>
    %144 = tpu.matmul %139, %141, %cst_55 {dimension_numbers = #tpu.dot_dimension_numbers<[1], [1], [0], [0], [0, 0, 1, 0], [], []>} : vector<16x128xbf16>, vector<16x128xbf16>, vector<16x16xf32> -> vector<16x16xf32>
    %cst_56 = arith.constant 2.500000e-01 : f32
    %145 = vector.broadcast %cst_56 : f32 to vector<16x16xf32>
    %146 = arith.mulf %144, %145 : vector<16x16xf32>
    %cst_57 = arith.constant -9.99999986E+14 : f32
    %147 = vector.broadcast %cst_57 : f32 to vector<16x16xf32>
    %148 = arith.select %18, %146, %147 : vector<16x16xi1>, vector<16x16xf32>
    %cst_58 = arith.constant dense<0xFF800000> : vector<16xf32>
    %149 = vector.multi_reduction <maximumf>, %148, %cst_58 [1] : vector<16x16xf32> to vector<16xf32>
    %150 = vector.shape_cast %149 : vector<16xf32> to vector<16x1xf32>
    %151 = vector.broadcast %150 : vector<16x1xf32> to vector<16x16xf32>
    %152 = arith.subf %148, %151 : vector<16x16xf32>
    %153 = math.exp %152 : vector<16x16xf32>
    %cst_59 = arith.constant dense<0.000000e+00> : vector<16xf32>
    %154 = vector.multi_reduction <add>, %153, %cst_59 [1] : vector<16x16xf32> to vector<16xf32>
    %155 = vector.shape_cast %154 : vector<16xf32> to vector<16x1xf32>
    %156 = tpu.reciprocal %155 {approx = true} : vector<16x1xf32> -> vector<16x1xf32>
    %157 = vector.broadcast %156 : vector<16x1xf32> to vector<16x16xf32>
    %158 = arith.mulf %153, %157 : vector<16x16xf32>
    %159 = arith.truncf %158 : vector<16x16xf32> to vector<16x16xbf16>
    %cst_60 = arith.constant dense<0.000000e+00> : vector<16x128xf32>
    %160 = tpu.matmul %159, %143, %cst_60 {dimension_numbers = #tpu.dot_dimension_numbers<[1], [0], [0], [1], [0, 0, 1, 1], [], []>} : vector<16x16xbf16>, vector<16x128xbf16>, vector<16x128xf32> -> vector<16x128xf32>
    %161 = arith.truncf %160 : vector<16x128xf32> to vector<16x128xbf16>
    %162 = vector.extract_strided_slice %55 {offsets = [384, 0], sizes = [128, 64], strides = [1, 1]} : vector<512x64xbf16> to vector<128x64xbf16>
    %cst_61 = arith.constant dense<0.000000e+00> : vector<16x64xf32>
    %163 = tpu.matmul %161, %162, %cst_61 {dimension_numbers = #tpu.dot_dimension_numbers<[1], [0], [0], [1], [0, 0, 1, 1], [], []>} : vector<16x128xbf16>, vector<128x64xbf16>, vector<16x64xf32> -> vector<16x64xf32>
    %164 = arith.addf %137, %163 : vector<16x64xf32>
    %165 = arith.addf %3, %164 : vector<16x64xf32>
    %c0_62 = arith.constant 0 : index
    %c0_63 = arith.constant 0 : index
    %c0_64 = arith.constant 0 : index
    %166 = vector.load %arg11[%c0_62, %c0_63, %c0_64] : memref<1x1x64xf32, #tpu.memory_space<vmem>>, vector<1x1x64xf32>
    %167 = vector.shape_cast %166 : vector<1x1x64xf32> to vector<1x64xf32>
    %168 = vector.broadcast %167 : vector<1x64xf32> to vector<16x64xf32>
    %169 = arith.addf %165, %168 : vector<16x64xf32>
    %c0_65 = arith.constant 0 : index
    %c0_66 = arith.constant 0 : index
    %c0_67 = arith.constant 0 : index
    %170 = vector.load %arg12[%c0_65, %c0_66, %c0_67] : memref<1x1x64xf32, #tpu.memory_space<vmem>>, vector<1x1x64xf32>
    %171 = vector.shape_cast %170 : vector<1x1x64xf32> to vector<1x64xf32>
    %c0_68 = arith.constant 0 : index
    %c0_69 = arith.constant 0 : index
    %c0_70 = arith.constant 0 : index
    %172 = vector.load %arg13[%c0_68, %c0_69, %c0_70] : memref<1x1x64xf32, #tpu.memory_space<vmem>>, vector<1x1x64xf32>
    %173 = vector.shape_cast %172 : vector<1x1x64xf32> to vector<1x64xf32>
    %cst_71 = arith.constant dense<0.000000e+00> : vector<16xf32>
    %174 = vector.multi_reduction <add>, %169, %cst_71 [1] : vector<16x64xf32> to vector<16xf32>
    %175 = vector.shape_cast %174 : vector<16xf32> to vector<16x1xf32>
    %cst_72 = arith.constant 6.400000e+01 : f32
    %176 = vector.broadcast %cst_72 : f32 to vector<16x1xf32>
    %177 = arith.divf %175, %176 : vector<16x1xf32>
    %178 = vector.broadcast %177 : vector<16x1xf32> to vector<16x64xf32>
    %179 = arith.subf %169, %178 : vector<16x64xf32>
    %180 = arith.mulf %179, %179 : vector<16x64xf32>
    %cst_73 = arith.constant dense<0.000000e+00> : vector<16xf32>
    %181 = vector.multi_reduction <add>, %180, %cst_73 [1] : vector<16x64xf32> to vector<16xf32>
    %182 = vector.shape_cast %181 : vector<16xf32> to vector<16x1xf32>
    %cst_74 = arith.constant 6.400000e+01 : f32
    %183 = vector.broadcast %cst_74 : f32 to vector<16x1xf32>
    %184 = arith.divf %182, %183 : vector<16x1xf32>
    %cst_75 = arith.constant 9.99999974E-6 : f32
    %185 = vector.broadcast %cst_75 : f32 to vector<16x1xf32>
    %186 = arith.addf %184, %185 : vector<16x1xf32>
    %187 = math.rsqrt %186 : vector<16x1xf32>
    %188 = vector.broadcast %187 : vector<16x1xf32> to vector<16x64xf32>
    %189 = arith.mulf %179, %188 : vector<16x64xf32>
    %190 = vector.broadcast %171 : vector<1x64xf32> to vector<16x64xf32>
    %191 = arith.mulf %189, %190 : vector<16x64xf32>
    %192 = vector.broadcast %173 : vector<1x64xf32> to vector<16x64xf32>
    %193 = arith.addf %191, %192 : vector<16x64xf32>
    %194 = arith.truncf %193 : vector<16x64xf32> to vector<16x64xbf16>
    %c0_76 = arith.constant 0 : index
    %c0_77 = arith.constant 0 : index
    %c0_78 = arith.constant 0 : index
    %195 = vector.load %arg14[%c0_76, %c0_77, %c0_78] : memref<1x64x512xbf16, #tpu.memory_space<vmem>>, vector<1x64x512xbf16>
    %196 = vector.shape_cast %195 : vector<1x64x512xbf16> to vector<64x512xbf16>
    %cst_79 = arith.constant dense<0.000000e+00> : vector<16x512xf32>
    %197 = tpu.matmul %194, %196, %cst_79 {dimension_numbers = #tpu.dot_dimension_numbers<[1], [0], [0], [1], [0, 0, 1, 1], [], []>} : vector<16x64xbf16>, vector<64x512xbf16>, vector<16x512xf32> -> vector<16x512xf32>
    %c0_80 = arith.constant 0 : index
    %c0_81 = arith.constant 0 : index
    %c0_82 = arith.constant 0 : index
    %198 = vector.load %arg15[%c0_80, %c0_81, %c0_82] : memref<1x1x512xf32, #tpu.memory_space<vmem>>, vector<1x1x512xf32>
    %199 = vector.shape_cast %198 : vector<1x1x512xf32> to vector<1x512xf32>
    %200 = vector.broadcast %199 : vector<1x512xf32> to vector<16x512xf32>
    %201 = arith.addf %197, %200 : vector<16x512xf32>
    %c0_83 = arith.constant 0 : index
    %c0_84 = arith.constant 0 : index
    %c0_85 = arith.constant 0 : index
    %202 = vector.load %arg16[%c0_83, %c0_84, %c0_85] : memref<1x64x1024xbf16, #tpu.memory_space<vmem>>, vector<1x64x1024xbf16>
    %203 = vector.shape_cast %202 : vector<1x64x1024xbf16> to vector<64x1024xbf16>
    %cst_86 = arith.constant dense<0.000000e+00> : vector<16x1024xf32>
    %204 = tpu.matmul %5, %203, %cst_86 {dimension_numbers = #tpu.dot_dimension_numbers<[1], [0], [0], [1], [0, 0, 1, 1], [], []>} : vector<16x64xbf16>, vector<64x1024xbf16>, vector<16x1024xf32> -> vector<16x1024xf32>
    %c0_87 = arith.constant 0 : index
    %c0_88 = arith.constant 0 : index
    %c0_89 = arith.constant 0 : index
    %205 = vector.load %arg17[%c0_87, %c0_88, %c0_89] : memref<1x1x1024xf32, #tpu.memory_space<vmem>>, vector<1x1x1024xf32>
    %206 = vector.shape_cast %205 : vector<1x1x1024xf32> to vector<1x1024xf32>
    %207 = vector.broadcast %206 : vector<1x1024xf32> to vector<16x1024xf32>
    %208 = arith.addf %204, %207 : vector<16x1024xf32>
    %209 = vector.extract_strided_slice %208 {offsets = [0, 0], sizes = [16, 512], strides = [1, 1]} : vector<16x1024xf32> to vector<16x512xf32>
    %210 = vector.extract_strided_slice %208 {offsets = [0, 512], sizes = [16, 512], strides = [1, 1]} : vector<16x1024xf32> to vector<16x512xf32>
    %c0_90 = arith.constant 0 : index
    %c0_91 = arith.constant 0 : index
    %c0_92 = arith.constant 0 : index
    %211 = vector.load %arg18[%c0_90, %c0_91, %c0_92] : memref<1x512x64xbf16, #tpu.memory_space<vmem>>, vector<1x512x64xbf16>
    %212 = vector.shape_cast %211 : vector<1x512x64xbf16> to vector<512x64xbf16>
    %cst_93 = arith.constant 0.000000e+00 : f32
    %213 = vector.broadcast %cst_93 : f32 to vector<16x64xf32>
    %214 = vector.extract_strided_slice %201 {offsets = [0, 0], sizes = [16, 128], strides = [1, 1]} : vector<16x512xf32> to vector<16x128xf32>
    %215 = arith.truncf %214 : vector<16x128xf32> to vector<16x128xbf16>
    %216 = vector.extract_strided_slice %209 {offsets = [0, 0], sizes = [16, 128], strides = [1, 1]} : vector<16x512xf32> to vector<16x128xf32>
    %217 = arith.truncf %216 : vector<16x128xf32> to vector<16x128xbf16>
    %218 = vector.extract_strided_slice %210 {offsets = [0, 0], sizes = [16, 128], strides = [1, 1]} : vector<16x512xf32> to vector<16x128xf32>
    %219 = arith.truncf %218 : vector<16x128xf32> to vector<16x128xbf16>
    %cst_94 = arith.constant dense<0.000000e+00> : vector<16x16xf32>
    %220 = tpu.matmul %215, %217, %cst_94 {dimension_numbers = #tpu.dot_dimension_numbers<[1], [1], [0], [0], [0, 0, 1, 0], [], []>} : vector<16x128xbf16>, vector<16x128xbf16>, vector<16x16xf32> -> vector<16x16xf32>
    %cst_95 = arith.constant 2.500000e-01 : f32
    %221 = vector.broadcast %cst_95 : f32 to vector<16x16xf32>
    %222 = arith.mulf %220, %221 : vector<16x16xf32>
    %cst_96 = arith.constant -9.99999986E+14 : f32
    %223 = vector.shape_cast %13 : vector<1x16xi1> to vector<1x16xi1>
    %224 = vector.broadcast %223 : vector<1x16xi1> to vector<16x16xi1>
    %225 = vector.broadcast %cst_96 : f32 to vector<16x16xf32>
    %226 = arith.select %224, %222, %225 : vector<16x16xi1>, vector<16x16xf32>
    %cst_97 = arith.constant dense<0xFF800000> : vector<16xf32>
    %227 = vector.multi_reduction <maximumf>, %226, %cst_97 [1] : vector<16x16xf32> to vector<16xf32>
    %228 = vector.shape_cast %227 : vector<16xf32> to vector<16x1xf32>
    %229 = vector.broadcast %228 : vector<16x1xf32> to vector<16x16xf32>
    %230 = arith.subf %226, %229 : vector<16x16xf32>
    %231 = math.exp %230 : vector<16x16xf32>
    %cst_98 = arith.constant dense<0.000000e+00> : vector<16xf32>
    %232 = vector.multi_reduction <add>, %231, %cst_98 [1] : vector<16x16xf32> to vector<16xf32>
    %233 = vector.shape_cast %232 : vector<16xf32> to vector<16x1xf32>
    %234 = tpu.reciprocal %233 {approx = true} : vector<16x1xf32> -> vector<16x1xf32>
    %235 = vector.broadcast %234 : vector<16x1xf32> to vector<16x16xf32>
    %236 = arith.mulf %231, %235 : vector<16x16xf32>
    %237 = arith.truncf %236 : vector<16x16xf32> to vector<16x16xbf16>
    %cst_99 = arith.constant dense<0.000000e+00> : vector<16x128xf32>
    %238 = tpu.matmul %237, %219, %cst_99 {dimension_numbers = #tpu.dot_dimension_numbers<[1], [0], [0], [1], [0, 0, 1, 1], [], []>} : vector<16x16xbf16>, vector<16x128xbf16>, vector<16x128xf32> -> vector<16x128xf32>
    %239 = arith.truncf %238 : vector<16x128xf32> to vector<16x128xbf16>
    %240 = vector.extract_strided_slice %212 {offsets = [0, 0], sizes = [128, 64], strides = [1, 1]} : vector<512x64xbf16> to vector<128x64xbf16>
    %cst_100 = arith.constant dense<0.000000e+00> : vector<16x64xf32>
    %241 = tpu.matmul %239, %240, %cst_100 {dimension_numbers = #tpu.dot_dimension_numbers<[1], [0], [0], [1], [0, 0, 1, 1], [], []>} : vector<16x128xbf16>, vector<128x64xbf16>, vector<16x64xf32> -> vector<16x64xf32>
    %242 = arith.addf %213, %241 : vector<16x64xf32>
    %243 = vector.extract_strided_slice %201 {offsets = [0, 128], sizes = [16, 128], strides = [1, 1]} : vector<16x512xf32> to vector<16x128xf32>
    %244 = arith.truncf %243 : vector<16x128xf32> to vector<16x128xbf16>
    %245 = vector.extract_strided_slice %209 {offsets = [0, 128], sizes = [16, 128], strides = [1, 1]} : vector<16x512xf32> to vector<16x128xf32>
    %246 = arith.truncf %245 : vector<16x128xf32> to vector<16x128xbf16>
    %247 = vector.extract_strided_slice %210 {offsets = [0, 128], sizes = [16, 128], strides = [1, 1]} : vector<16x512xf32> to vector<16x128xf32>
    %248 = arith.truncf %247 : vector<16x128xf32> to vector<16x128xbf16>
    %cst_101 = arith.constant dense<0.000000e+00> : vector<16x16xf32>
    %249 = tpu.matmul %244, %246, %cst_101 {dimension_numbers = #tpu.dot_dimension_numbers<[1], [1], [0], [0], [0, 0, 1, 0], [], []>} : vector<16x128xbf16>, vector<16x128xbf16>, vector<16x16xf32> -> vector<16x16xf32>
    %cst_102 = arith.constant 2.500000e-01 : f32
    %250 = vector.broadcast %cst_102 : f32 to vector<16x16xf32>
    %251 = arith.mulf %249, %250 : vector<16x16xf32>
    %cst_103 = arith.constant -9.99999986E+14 : f32
    %252 = vector.shape_cast %13 : vector<1x16xi1> to vector<1x16xi1>
    %253 = vector.broadcast %252 : vector<1x16xi1> to vector<16x16xi1>
    %254 = vector.broadcast %cst_103 : f32 to vector<16x16xf32>
    %255 = arith.select %253, %251, %254 : vector<16x16xi1>, vector<16x16xf32>
    %cst_104 = arith.constant dense<0xFF800000> : vector<16xf32>
    %256 = vector.multi_reduction <maximumf>, %255, %cst_104 [1] : vector<16x16xf32> to vector<16xf32>
    %257 = vector.shape_cast %256 : vector<16xf32> to vector<16x1xf32>
    %258 = vector.broadcast %257 : vector<16x1xf32> to vector<16x16xf32>
    %259 = arith.subf %255, %258 : vector<16x16xf32>
    %260 = math.exp %259 : vector<16x16xf32>
    %cst_105 = arith.constant dense<0.000000e+00> : vector<16xf32>
    %261 = vector.multi_reduction <add>, %260, %cst_105 [1] : vector<16x16xf32> to vector<16xf32>
    %262 = vector.shape_cast %261 : vector<16xf32> to vector<16x1xf32>
    %263 = tpu.reciprocal %262 {approx = true} : vector<16x1xf32> -> vector<16x1xf32>
    %264 = vector.broadcast %263 : vector<16x1xf32> to vector<16x16xf32>
    %265 = arith.mulf %260, %264 : vector<16x16xf32>
    %266 = arith.truncf %265 : vector<16x16xf32> to vector<16x16xbf16>
    %cst_106 = arith.constant dense<0.000000e+00> : vector<16x128xf32>
    %267 = tpu.matmul %266, %248, %cst_106 {dimension_numbers = #tpu.dot_dimension_numbers<[1], [0], [0], [1], [0, 0, 1, 1], [], []>} : vector<16x16xbf16>, vector<16x128xbf16>, vector<16x128xf32> -> vector<16x128xf32>
    %268 = arith.truncf %267 : vector<16x128xf32> to vector<16x128xbf16>
    %269 = vector.extract_strided_slice %212 {offsets = [128, 0], sizes = [128, 64], strides = [1, 1]} : vector<512x64xbf16> to vector<128x64xbf16>
    %cst_107 = arith.constant dense<0.000000e+00> : vector<16x64xf32>
    %270 = tpu.matmul %268, %269, %cst_107 {dimension_numbers = #tpu.dot_dimension_numbers<[1], [0], [0], [1], [0, 0, 1, 1], [], []>} : vector<16x128xbf16>, vector<128x64xbf16>, vector<16x64xf32> -> vector<16x64xf32>
    %271 = arith.addf %242, %270 : vector<16x64xf32>
    %272 = vector.extract_strided_slice %201 {offsets = [0, 256], sizes = [16, 128], strides = [1, 1]} : vector<16x512xf32> to vector<16x128xf32>
    %273 = arith.truncf %272 : vector<16x128xf32> to vector<16x128xbf16>
    %274 = vector.extract_strided_slice %209 {offsets = [0, 256], sizes = [16, 128], strides = [1, 1]} : vector<16x512xf32> to vector<16x128xf32>
    %275 = arith.truncf %274 : vector<16x128xf32> to vector<16x128xbf16>
    %276 = vector.extract_strided_slice %210 {offsets = [0, 256], sizes = [16, 128], strides = [1, 1]} : vector<16x512xf32> to vector<16x128xf32>
    %277 = arith.truncf %276 : vector<16x128xf32> to vector<16x128xbf16>
    %cst_108 = arith.constant dense<0.000000e+00> : vector<16x16xf32>
    %278 = tpu.matmul %273, %275, %cst_108 {dimension_numbers = #tpu.dot_dimension_numbers<[1], [1], [0], [0], [0, 0, 1, 0], [], []>} : vector<16x128xbf16>, vector<16x128xbf16>, vector<16x16xf32> -> vector<16x16xf32>
    %cst_109 = arith.constant 2.500000e-01 : f32
    %279 = vector.broadcast %cst_109 : f32 to vector<16x16xf32>
    %280 = arith.mulf %278, %279 : vector<16x16xf32>
    %cst_110 = arith.constant -9.99999986E+14 : f32
    %281 = vector.shape_cast %13 : vector<1x16xi1> to vector<1x16xi1>
    %282 = vector.broadcast %281 : vector<1x16xi1> to vector<16x16xi1>
    %283 = vector.broadcast %cst_110 : f32 to vector<16x16xf32>
    %284 = arith.select %282, %280, %283 : vector<16x16xi1>, vector<16x16xf32>
    %cst_111 = arith.constant dense<0xFF800000> : vector<16xf32>
    %285 = vector.multi_reduction <maximumf>, %284, %cst_111 [1] : vector<16x16xf32> to vector<16xf32>
    %286 = vector.shape_cast %285 : vector<16xf32> to vector<16x1xf32>
    %287 = vector.broadcast %286 : vector<16x1xf32> to vector<16x16xf32>
    %288 = arith.subf %284, %287 : vector<16x16xf32>
    %289 = math.exp %288 : vector<16x16xf32>
    %cst_112 = arith.constant dense<0.000000e+00> : vector<16xf32>
    %290 = vector.multi_reduction <add>, %289, %cst_112 [1] : vector<16x16xf32> to vector<16xf32>
    %291 = vector.shape_cast %290 : vector<16xf32> to vector<16x1xf32>
    %292 = tpu.reciprocal %291 {approx = true} : vector<16x1xf32> -> vector<16x1xf32>
    %293 = vector.broadcast %292 : vector<16x1xf32> to vector<16x16xf32>
    %294 = arith.mulf %289, %293 : vector<16x16xf32>
    %295 = arith.truncf %294 : vector<16x16xf32> to vector<16x16xbf16>
    %cst_113 = arith.constant dense<0.000000e+00> : vector<16x128xf32>
    %296 = tpu.matmul %295, %277, %cst_113 {dimension_numbers = #tpu.dot_dimension_numbers<[1], [0], [0], [1], [0, 0, 1, 1], [], []>} : vector<16x16xbf16>, vector<16x128xbf16>, vector<16x128xf32> -> vector<16x128xf32>
    %297 = arith.truncf %296 : vector<16x128xf32> to vector<16x128xbf16>
    %298 = vector.extract_strided_slice %212 {offsets = [256, 0], sizes = [128, 64], strides = [1, 1]} : vector<512x64xbf16> to vector<128x64xbf16>
    %cst_114 = arith.constant dense<0.000000e+00> : vector<16x64xf32>
    %299 = tpu.matmul %297, %298, %cst_114 {dimension_numbers = #tpu.dot_dimension_numbers<[1], [0], [0], [1], [0, 0, 1, 1], [], []>} : vector<16x128xbf16>, vector<128x64xbf16>, vector<16x64xf32> -> vector<16x64xf32>
    %300 = arith.addf %271, %299 : vector<16x64xf32>
    %301 = vector.extract_strided_slice %201 {offsets = [0, 384], sizes = [16, 128], strides = [1, 1]} : vector<16x512xf32> to vector<16x128xf32>
    %302 = arith.truncf %301 : vector<16x128xf32> to vector<16x128xbf16>
    %303 = vector.extract_strided_slice %209 {offsets = [0, 384], sizes = [16, 128], strides = [1, 1]} : vector<16x512xf32> to vector<16x128xf32>
    %304 = arith.truncf %303 : vector<16x128xf32> to vector<16x128xbf16>
    %305 = vector.extract_strided_slice %210 {offsets = [0, 384], sizes = [16, 128], strides = [1, 1]} : vector<16x512xf32> to vector<16x128xf32>
    %306 = arith.truncf %305 : vector<16x128xf32> to vector<16x128xbf16>
    %cst_115 = arith.constant dense<0.000000e+00> : vector<16x16xf32>
    %307 = tpu.matmul %302, %304, %cst_115 {dimension_numbers = #tpu.dot_dimension_numbers<[1], [1], [0], [0], [0, 0, 1, 0], [], []>} : vector<16x128xbf16>, vector<16x128xbf16>, vector<16x16xf32> -> vector<16x16xf32>
    %cst_116 = arith.constant 2.500000e-01 : f32
    %308 = vector.broadcast %cst_116 : f32 to vector<16x16xf32>
    %309 = arith.mulf %307, %308 : vector<16x16xf32>
    %cst_117 = arith.constant -9.99999986E+14 : f32
    %310 = vector.shape_cast %13 : vector<1x16xi1> to vector<1x16xi1>
    %311 = vector.broadcast %310 : vector<1x16xi1> to vector<16x16xi1>
    %312 = vector.broadcast %cst_117 : f32 to vector<16x16xf32>
    %313 = arith.select %311, %309, %312 : vector<16x16xi1>, vector<16x16xf32>
    %cst_118 = arith.constant dense<0xFF800000> : vector<16xf32>
    %314 = vector.multi_reduction <maximumf>, %313, %cst_118 [1] : vector<16x16xf32> to vector<16xf32>
    %315 = vector.shape_cast %314 : vector<16xf32> to vector<16x1xf32>
    %316 = vector.broadcast %315 : vector<16x1xf32> to vector<16x16xf32>
    %317 = arith.subf %313, %316 : vector<16x16xf32>
    %318 = math.exp %317 : vector<16x16xf32>
    %cst_119 = arith.constant dense<0.000000e+00> : vector<16xf32>
    %319 = vector.multi_reduction <add>, %318, %cst_119 [1] : vector<16x16xf32> to vector<16xf32>
    %320 = vector.shape_cast %319 : vector<16xf32> to vector<16x1xf32>
    %321 = tpu.reciprocal %320 {approx = true} : vector<16x1xf32> -> vector<16x1xf32>
    %322 = vector.broadcast %321 : vector<16x1xf32> to vector<16x16xf32>
    %323 = arith.mulf %318, %322 : vector<16x16xf32>
    %324 = arith.truncf %323 : vector<16x16xf32> to vector<16x16xbf16>
    %cst_120 = arith.constant dense<0.000000e+00> : vector<16x128xf32>
    %325 = tpu.matmul %324, %306, %cst_120 {dimension_numbers = #tpu.dot_dimension_numbers<[1], [0], [0], [1], [0, 0, 1, 1], [], []>} : vector<16x16xbf16>, vector<16x128xbf16>, vector<16x128xf32> -> vector<16x128xf32>
    %326 = arith.truncf %325 : vector<16x128xf32> to vector<16x128xbf16>
    %327 = vector.extract_strided_slice %212 {offsets = [384, 0], sizes = [128, 64], strides = [1, 1]} : vector<512x64xbf16> to vector<128x64xbf16>
    %cst_121 = arith.constant dense<0.000000e+00> : vector<16x64xf32>
    %328 = tpu.matmul %326, %327, %cst_121 {dimension_numbers = #tpu.dot_dimension_numbers<[1], [0], [0], [1], [0, 0, 1, 1], [], []>} : vector<16x128xbf16>, vector<128x64xbf16>, vector<16x64xf32> -> vector<16x64xf32>
    %329 = arith.addf %300, %328 : vector<16x64xf32>
    %330 = arith.addf %169, %329 : vector<16x64xf32>
    %c0_122 = arith.constant 0 : index
    %c0_123 = arith.constant 0 : index
    %c0_124 = arith.constant 0 : index
    %331 = vector.load %arg19[%c0_122, %c0_123, %c0_124] : memref<1x1x64xf32, #tpu.memory_space<vmem>>, vector<1x1x64xf32>
    %332 = vector.shape_cast %331 : vector<1x1x64xf32> to vector<1x64xf32>
    %333 = vector.broadcast %332 : vector<1x64xf32> to vector<16x64xf32>
    %334 = arith.addf %330, %333 : vector<16x64xf32>
    %c0_125 = arith.constant 0 : index
    %c0_126 = arith.constant 0 : index
    %c0_127 = arith.constant 0 : index
    %335 = vector.load %arg20[%c0_125, %c0_126, %c0_127] : memref<1x1x64xf32, #tpu.memory_space<vmem>>, vector<1x1x64xf32>
    %336 = vector.shape_cast %335 : vector<1x1x64xf32> to vector<1x64xf32>
    %c0_128 = arith.constant 0 : index
    %c0_129 = arith.constant 0 : index
    %c0_130 = arith.constant 0 : index
    %337 = vector.load %arg21[%c0_128, %c0_129, %c0_130] : memref<1x1x64xf32, #tpu.memory_space<vmem>>, vector<1x1x64xf32>
    %338 = vector.shape_cast %337 : vector<1x1x64xf32> to vector<1x64xf32>
    %cst_131 = arith.constant dense<0.000000e+00> : vector<16xf32>
    %339 = vector.multi_reduction <add>, %334, %cst_131 [1] : vector<16x64xf32> to vector<16xf32>
    %340 = vector.shape_cast %339 : vector<16xf32> to vector<16x1xf32>
    %cst_132 = arith.constant 6.400000e+01 : f32
    %341 = vector.broadcast %cst_132 : f32 to vector<16x1xf32>
    %342 = arith.divf %340, %341 : vector<16x1xf32>
    %343 = vector.broadcast %342 : vector<16x1xf32> to vector<16x64xf32>
    %344 = arith.subf %334, %343 : vector<16x64xf32>
    %345 = arith.mulf %344, %344 : vector<16x64xf32>
    %cst_133 = arith.constant dense<0.000000e+00> : vector<16xf32>
    %346 = vector.multi_reduction <add>, %345, %cst_133 [1] : vector<16x64xf32> to vector<16xf32>
    %347 = vector.shape_cast %346 : vector<16xf32> to vector<16x1xf32>
    %cst_134 = arith.constant 6.400000e+01 : f32
    %348 = vector.broadcast %cst_134 : f32 to vector<16x1xf32>
    %349 = arith.divf %347, %348 : vector<16x1xf32>
    %cst_135 = arith.constant 9.99999974E-6 : f32
    %350 = vector.broadcast %cst_135 : f32 to vector<16x1xf32>
    %351 = arith.addf %349, %350 : vector<16x1xf32>
    %352 = math.rsqrt %351 : vector<16x1xf32>
    %353 = vector.broadcast %352 : vector<16x1xf32> to vector<16x64xf32>
    %354 = arith.mulf %344, %353 : vector<16x64xf32>
    %355 = vector.broadcast %336 : vector<1x64xf32> to vector<16x64xf32>
    %356 = arith.mulf %354, %355 : vector<16x64xf32>
    %357 = vector.broadcast %338 : vector<1x64xf32> to vector<16x64xf32>
    %358 = arith.addf %356, %357 : vector<16x64xf32>
    %359 = arith.truncf %358 : vector<16x64xf32> to vector<16x64xbf16>
    %c0_136 = arith.constant 0 : index
    %c0_137 = arith.constant 0 : index
    %c0_138 = arith.constant 0 : index
    %360 = vector.load %arg22[%c0_136, %c0_137, %c0_138] : memref<1x64x128xbf16, #tpu.memory_space<vmem>>, vector<1x64x128xbf16>
    %361 = vector.shape_cast %360 : vector<1x64x128xbf16> to vector<64x128xbf16>
    %cst_139 = arith.constant dense<0.000000e+00> : vector<16x128xf32>
    %362 = tpu.matmul %359, %361, %cst_139 {dimension_numbers = #tpu.dot_dimension_numbers<[1], [0], [0], [1], [0, 0, 1, 1], [], []>} : vector<16x64xbf16>, vector<64x128xbf16>, vector<16x128xf32> -> vector<16x128xf32>
    %c0_140 = arith.constant 0 : index
    %c0_141 = arith.constant 0 : index
    %c0_142 = arith.constant 0 : index
    %363 = vector.load %arg23[%c0_140, %c0_141, %c0_142] : memref<1x1x128xf32, #tpu.memory_space<vmem>>, vector<1x1x128xf32>
    %364 = vector.shape_cast %363 : vector<1x1x128xf32> to vector<1x128xf32>
    %365 = vector.broadcast %364 : vector<1x128xf32> to vector<16x128xf32>
    %366 = arith.addf %362, %365 : vector<16x128xf32>
    %cst_143 = arith.constant 0.000000e+00 : f32
    %367 = vector.broadcast %cst_143 : f32 to vector<16x128xf32>
    %368 = arith.maximumf %366, %367 : vector<16x128xf32>
    %369 = arith.truncf %368 : vector<16x128xf32> to vector<16x128xbf16>
    %c0_144 = arith.constant 0 : index
    %c0_145 = arith.constant 0 : index
    %c0_146 = arith.constant 0 : index
    %370 = vector.load %arg24[%c0_144, %c0_145, %c0_146] : memref<1x128x64xbf16, #tpu.memory_space<vmem>>, vector<1x128x64xbf16>
    %371 = vector.shape_cast %370 : vector<1x128x64xbf16> to vector<128x64xbf16>
    %cst_147 = arith.constant dense<0.000000e+00> : vector<16x64xf32>
    %372 = tpu.matmul %369, %371, %cst_147 {dimension_numbers = #tpu.dot_dimension_numbers<[1], [0], [0], [1], [0, 0, 1, 1], [], []>} : vector<16x128xbf16>, vector<128x64xbf16>, vector<16x64xf32> -> vector<16x64xf32>
    %373 = arith.addf %334, %372 : vector<16x64xf32>
    %c0_148 = arith.constant 0 : index
    %c0_149 = arith.constant 0 : index
    %c0_150 = arith.constant 0 : index
    %374 = vector.load %arg25[%c0_148, %c0_149, %c0_150] : memref<1x1x64xf32, #tpu.memory_space<vmem>>, vector<1x1x64xf32>
    %375 = vector.shape_cast %374 : vector<1x1x64xf32> to vector<1x64xf32>
    %376 = vector.broadcast %375 : vector<1x64xf32> to vector<16x64xf32>
    %377 = arith.addf %373, %376 : vector<16x64xf32>
    %c0_151 = arith.constant 0 : index
    %c0_152 = arith.constant 0 : index
    %378 = vector.load %arg31[%c0_151, %c0_152] : memref<16x64xf32, #tpu.memory_space<vmem>>, vector<16x64xf32>
    tpu.vector_store %arg31[%c0_151, %c0_152], %377 {strides = array<i32>} : memref<16x64xf32, #tpu.memory_space<vmem>>, vector<16x64xf32>,
    %c1_i32 = arith.constant 1 : i32
    %379 = arith.cmpi eq, %arg1, %c1_i32 : i32
    %380 = arith.extui %379 : i1 to i32
    %c0_i32_153 = arith.constant 0 : i32
    %381 = arith.cmpi ne, %380, %c0_i32_153 : i32
    scf.if %381 {
      %c0_154 = arith.constant 0 : index
      %c0_155 = arith.constant 0 : index
      %382 = vector.load %arg26[%c0_154, %c0_155] : memref<1x64xf32, #tpu.memory_space<vmem>>, vector<1x64xf32>
      %c0_156 = arith.constant 0 : index
      %c0_157 = arith.constant 0 : index
      %383 = vector.load %arg27[%c0_156, %c0_157] : memref<1x64xf32, #tpu.memory_space<vmem>>, vector<1x64xf32>
      %cst_158 = arith.constant dense<0.000000e+00> : vector<16xf32>
      %384 = vector.multi_reduction <add>, %377, %cst_158 [1] : vector<16x64xf32> to vector<16xf32>
      %385 = vector.shape_cast %384 : vector<16xf32> to vector<16x1xf32>
      %cst_159 = arith.constant 6.400000e+01 : f32
      %386 = vector.broadcast %cst_159 : f32 to vector<16x1xf32>
      %387 = arith.divf %385, %386 : vector<16x1xf32>
      %388 = vector.broadcast %387 : vector<16x1xf32> to vector<16x64xf32>
      %389 = arith.subf %377, %388 : vector<16x64xf32>
      %390 = arith.mulf %389, %389 : vector<16x64xf32>
      %cst_160 = arith.constant dense<0.000000e+00> : vector<16xf32>
      %391 = vector.multi_reduction <add>, %390, %cst_160 [1] : vector<16x64xf32> to vector<16xf32>
      %392 = vector.shape_cast %391 : vector<16xf32> to vector<16x1xf32>
      %cst_161 = arith.constant 6.400000e+01 : f32
      %393 = vector.broadcast %cst_161 : f32 to vector<16x1xf32>
      %394 = arith.divf %392, %393 : vector<16x1xf32>
      %cst_162 = arith.constant 9.99999974E-6 : f32
      %395 = vector.broadcast %cst_162 : f32 to vector<16x1xf32>
      %396 = arith.addf %394, %395 : vector<16x1xf32>
      %397 = math.rsqrt %396 : vector<16x1xf32>
      %398 = vector.broadcast %397 : vector<16x1xf32> to vector<16x64xf32>
      %399 = arith.mulf %389, %398 : vector<16x64xf32>
      %400 = vector.broadcast %382 : vector<1x64xf32> to vector<16x64xf32>
      %401 = arith.mulf %399, %400 : vector<16x64xf32>
      %402 = vector.broadcast %383 : vector<1x64xf32> to vector<16x64xf32>
      %403 = arith.addf %401, %402 : vector<16x64xf32>
      %404 = arith.truncf %403 : vector<16x64xf32> to vector<16x64xbf16>
      %c0_i32_163 = arith.constant 0 : i32
      %c0_i32_164 = arith.constant 0 : i32
      %c0_i32_165 = arith.constant 0 : i32
      %c0_i32_166 = arith.constant 0 : i32
      %405 = tpu.memref_slice %arg29[%c0_i32_165, %c0_i32_166] : memref<64x128xbf16, #tpu.memory_space<any>> -> memref<64x128xbf16, #tpu.memory_space<any>>
      %c0_i32_167 = arith.constant 0 : i32
      %c0_i32_168 = arith.constant 0 : i32
      %406 = tpu.memref_slice %arg32[%c0_i32_163, %c0_i32_167, %c0_i32_168] : memref<2x64x128xbf16, #tpu.memory_space<vmem>> -> memref<1x64x128xbf16, #tpu.memory_space<vmem>>
      %407 = tpu.memref_squeeze %406 : memref<1x64x128xbf16, #tpu.memory_space<vmem>> -> memref<64x128xbf16, #tpu.memory_space<vmem>>
      %408 = tpu.memref_slice %arg33[%c0_i32_164] : memref<2x!tpu.dma_semaphore, #tpu.memory_space<semaphore_mem>> -> memref<1x!tpu.dma_semaphore, #tpu.memory_space<semaphore_mem>>
      %409 = tpu.memref_squeeze %408 : memref<1x!tpu.dma_semaphore, #tpu.memory_space<semaphore_mem>> -> memref<!tpu.dma_semaphore, #tpu.memory_space<semaphore_mem>>
      tpu.enqueue_dma source(%405 : memref<64x128xbf16, #tpu.memory_space<any>>) target(%407 : memref<64x128xbf16, #tpu.memory_space<vmem>>) target_semaphore(%409 : memref<!tpu.dma_semaphore, #tpu.memory_space<semaphore_mem>>)
      %cst_169 = arith.constant -1.000000e+30 : f32
      %410 = vector.broadcast %cst_169 : f32 to vector<16x1xf32>
      %cst_170 = arith.constant 0.000000e+00 : f32
      %411 = vector.broadcast %cst_170 : f32 to vector<16x1xf32>
      %c0_i32_171 = arith.constant 0 : i32
      %c0_i32_172 = arith.constant 0 : i32
      %c0_i32_173 = arith.constant 0 : i32
      %c0_i32_174 = arith.constant 0 : i32
      %412 = tpu.memref_slice %arg29[%c0_i32_173, %c0_i32_174] : memref<64x128xbf16, #tpu.memory_space<any>> -> memref<64x128xbf16, #tpu.memory_space<any>>
      %c0_i32_175 = arith.constant 0 : i32
      %c0_i32_176 = arith.constant 0 : i32
      %413 = tpu.memref_slice %arg32[%c0_i32_171, %c0_i32_175, %c0_i32_176] : memref<2x64x128xbf16, #tpu.memory_space<vmem>> -> memref<1x64x128xbf16, #tpu.memory_space<vmem>>
      %414 = tpu.memref_squeeze %413 : memref<1x64x128xbf16, #tpu.memory_space<vmem>> -> memref<64x128xbf16, #tpu.memory_space<vmem>>
      %415 = tpu.memref_slice %arg33[%c0_i32_172] : memref<2x!tpu.dma_semaphore, #tpu.memory_space<semaphore_mem>> -> memref<1x!tpu.dma_semaphore, #tpu.memory_space<semaphore_mem>>
      %416 = tpu.memref_squeeze %415 : memref<1x!tpu.dma_semaphore, #tpu.memory_space<semaphore_mem>> -> memref<!tpu.dma_semaphore, #tpu.memory_space<semaphore_mem>>
      tpu.wait_dma2 semaphore(%416 : memref<!tpu.dma_semaphore, #tpu.memory_space<semaphore_mem>>) src(%412 : memref<64x128xbf16, #tpu.memory_space<any>>) dst(%414 : memref<64x128xbf16, #tpu.memory_space<vmem>>)
      %c0_177 = arith.constant 0 : index
      %c0_178 = arith.constant 0 : index
      %c0_179 = arith.constant 0 : index
      %417 = vector.load %arg32[%c0_177, %c0_178, %c0_179] : memref<2x64x128xbf16, #tpu.memory_space<vmem>>, vector<1x64x128xbf16>
      %418 = vector.shape_cast %417 : vector<1x64x128xbf16> to vector<64x128xbf16>
      %cst_180 = arith.constant dense<0.000000e+00> : vector<16x128xf32>
      %419 = tpu.matmul %404, %418, %cst_180 {dimension_numbers = #tpu.dot_dimension_numbers<[1], [0], [0], [1], [0, 0, 1, 1], [], []>} : vector<16x64xbf16>, vector<64x128xbf16>, vector<16x128xf32> -> vector<16x128xf32>
      %c0_181 = arith.constant 0 : index
      %c0_182 = arith.constant 0 : index
      %420 = vector.load %arg28[%c0_181, %c0_182] : memref<1x128xf32, #tpu.memory_space<vmem>>, vector<1x128xf32>
      %421 = vector.broadcast %420 : vector<1x128xf32> to vector<16x128xf32>
      %422 = arith.addf %419, %421 : vector<16x128xf32>
      %c0_183 = arith.constant 0 : index
      %c0_184 = arith.constant 0 : index
      %c0_185 = arith.constant 0 : index
      %423 = vector.load %arg30[%c0_183, %c0_184, %c0_185] : memref<1x16x128xf32, #tpu.memory_space<vmem>>, vector<1x16x128xf32>
      %424 = vector.shape_cast %423 : vector<1x16x128xf32> to vector<16x128xf32>
      %425 = vector.shape_cast %422 : vector<16x128xf32> to vector<1x16x128xf32>
      tpu.vector_store %arg30[%c0_183, %c0_184, %c0_185], %425 {strides = array<i32>} : memref<1x16x128xf32, #tpu.memory_space<vmem>>, vector<1x16x128xf32>,
      %cst_186 = arith.constant dense<0xFF800000> : vector<16xf32>
      %426 = vector.multi_reduction <maximumf>, %422, %cst_186 [1] : vector<16x128xf32> to vector<16xf32>
      %427 = vector.shape_cast %426 : vector<16xf32> to vector<16x1xf32>
      %428 = arith.maximumf %410, %427 : vector<16x1xf32>
      %429 = arith.subf %410, %428 : vector<16x1xf32>
      %430 = math.exp %429 : vector<16x1xf32>
      %431 = arith.mulf %411, %430 : vector<16x1xf32>
      %432 = vector.broadcast %428 : vector<16x1xf32> to vector<16x128xf32>
      %433 = arith.subf %422, %432 : vector<16x128xf32>
      %434 = math.exp %433 : vector<16x128xf32>
      %cst_187 = arith.constant dense<0.000000e+00> : vector<16xf32>
      %435 = vector.multi_reduction <add>, %434, %cst_187 [1] : vector<16x128xf32> to vector<16xf32>
      %436 = vector.shape_cast %435 : vector<16xf32> to vector<16x1xf32>
      %437 = arith.addf %431, %436 : vector<16x1xf32>
      %438 = math.log %437 : vector<16x1xf32>
      %439 = arith.addf %428, %438 : vector<16x1xf32>
      %c0_188 = arith.constant 0 : index
      %c0_189 = arith.constant 0 : index
      %c0_190 = arith.constant 0 : index
      %440 = vector.load %arg30[%c0_188, %c0_189, %c0_190] : memref<1x16x128xf32, #tpu.memory_space<vmem>>, vector<1x16x128xf32>
      %441 = vector.shape_cast %440 : vector<1x16x128xf32> to vector<16x128xf32>
      %442 = vector.broadcast %439 : vector<16x1xf32> to vector<16x128xf32>
      %443 = arith.subf %441, %442 : vector<16x128xf32>
      %c0_191 = arith.constant 0 : index
      %c0_192 = arith.constant 0 : index
      %c0_193 = arith.constant 0 : index
      %444 = vector.load %arg30[%c0_191, %c0_192, %c0_193] : memref<1x16x128xf32, #tpu.memory_space<vmem>>, vector<1x16x128xf32>
      %445 = vector.shape_cast %444 : vector<1x16x128xf32> to vector<16x128xf32>
      %446 = vector.shape_cast %443 : vector<16x128xf32> to vector<1x16x128xf32>
      tpu.vector_store %arg30[%c0_191, %c0_192, %c0_193], %446 {strides = array<i32>} : memref<1x16x128xf32, #tpu.memory_space<vmem>>, vector<1x16x128xf32>,
    } else {
    }
    return
  }
  func.func @transform_0(%arg0: i32, %arg1: i32) -> (i32, i32, i32) {
    %c0_i32 = arith.constant 0 : i32
    %c0_i32_0 = arith.constant 0 : i32
    %c0_i32_1 = arith.constant 0 : i32
    return %arg0, %c0_i32, %c0_i32_0 : i32, i32, i32
  }
  func.func @transform_1(%arg0: i32, %arg1: i32) -> (i32, i32, i32) {
    %c0_i32 = arith.constant 0 : i32
    %c0_i32_0 = arith.constant 0 : i32
    %c0_i32_1 = arith.constant 0 : i32
    return %arg0, %c0_i32, %c0_i32_0 : i32, i32, i32
  }
  func.func @transform_2(%arg0: i32, %arg1: i32) -> (i32, i32, i32) {
    %c0_i32 = arith.constant 0 : i32
    %c0_i32_0 = arith.constant 0 : i32
    %c0_i32_1 = arith.constant 0 : i32
    return %arg0, %c0_i32, %c0_i32_0 : i32, i32, i32
  }
  func.func @transform_3(%arg0: i32, %arg1: i32) -> (i32, i32, i32) {
    %c0_i32 = arith.constant 0 : i32
    %c0_i32_0 = arith.constant 0 : i32
    %c0_i32_1 = arith.constant 0 : i32
    return %arg0, %c0_i32, %c0_i32_0 : i32, i32, i32
  }
  func.func @transform_4(%arg0: i32, %arg1: i32) -> (i32, i32, i32) {
    %c0_i32 = arith.constant 0 : i32
    %c0_i32_0 = arith.constant 0 : i32
    %c0_i32_1 = arith.constant 0 : i32
    return %arg1, %c0_i32, %c0_i32_0 : i32, i32, i32
  }
  func.func @transform_5(%arg0: i32, %arg1: i32) -> (i32, i32, i32) {
    %c0_i32 = arith.constant 0 : i32
    %c0_i32_0 = arith.constant 0 : i32
    %c0_i32_1 = arith.constant 0 : i32
    return %arg1, %c0_i32, %c0_i32_0 : i32, i32, i32
  }
  func.func @transform_6(%arg0: i32, %arg1: i32) -> (i32, i32, i32) {
    %c0_i32 = arith.constant 0 : i32
    %c0_i32_0 = arith.constant 0 : i32
    %c0_i32_1 = arith.constant 0 : i32
    return %arg1, %c0_i32, %c0_i32_0 : i32, i32, i32
  }
  func.func @transform_7(%arg0: i32, %arg1: i32) -> (i32, i32, i32) {
    %c0_i32 = arith.constant 0 : i32
    %c0_i32_0 = arith.constant 0 : i32
    %c0_i32_1 = arith.constant 0 : i32
    return %arg1, %c0_i32, %c0_i32_0 : i32, i32, i32
  }
  func.func @transform_8(%arg0: i32, %arg1: i32) -> (i32, i32, i32) {
    %c0_i32 = arith.constant 0 : i32
    %c0_i32_0 = arith.constant 0 : i32
    %c0_i32_1 = arith.constant 0 : i32
    return %arg1, %c0_i32, %c0_i32_0 : i32, i32, i32
  }
  func.func @transform_9(%arg0: i32, %arg1: i32) -> (i32, i32, i32) {
    %c0_i32 = arith.constant 0 : i32
    %c0_i32_0 = arith.constant 0 : i32
    %c0_i32_1 = arith.constant 0 : i32
    return %arg1, %c0_i32, %c0_i32_0 : i32, i32, i32
  }
  func.func @transform_10(%arg0: i32, %arg1: i32) -> (i32, i32, i32) {
    %c0_i32 = arith.constant 0 : i32
    %c0_i32_0 = arith.constant 0 : i32
    %c0_i32_1 = arith.constant 0 : i32
    return %arg1, %c0_i32, %c0_i32_0 : i32, i32, i32
  }
  func.func @transform_11(%arg0: i32, %arg1: i32) -> (i32, i32, i32) {
    %c0_i32 = arith.constant 0 : i32
    %c0_i32_0 = arith.constant 0 : i32
    %c0_i32_1 = arith.constant 0 : i32
    return %arg1, %c0_i32, %c0_i32_0 : i32, i32, i32
  }
  func.func @transform_12(%arg0: i32, %arg1: i32) -> (i32, i32, i32) {
    %c0_i32 = arith.constant 0 : i32
    %c0_i32_0 = arith.constant 0 : i32
    %c0_i32_1 = arith.constant 0 : i32
    return %arg1, %c0_i32, %c0_i32_0 : i32, i32, i32
  }
  func.func @transform_13(%arg0: i32, %arg1: i32) -> (i32, i32, i32) {
    %c0_i32 = arith.constant 0 : i32
    %c0_i32_0 = arith.constant 0 : i32
    %c0_i32_1 = arith.constant 0 : i32
    return %arg1, %c0_i32, %c0_i32_0 : i32, i32, i32
  }
  func.func @transform_14(%arg0: i32, %arg1: i32) -> (i32, i32, i32) {
    %c0_i32 = arith.constant 0 : i32
    %c0_i32_0 = arith.constant 0 : i32
    %c0_i32_1 = arith.constant 0 : i32
    return %arg1, %c0_i32, %c0_i32_0 : i32, i32, i32
  }
  func.func @transform_15(%arg0: i32, %arg1: i32) -> (i32, i32, i32) {
    %c0_i32 = arith.constant 0 : i32
    %c0_i32_0 = arith.constant 0 : i32
    %c0_i32_1 = arith.constant 0 : i32
    return %arg1, %c0_i32, %c0_i32_0 : i32, i32, i32
  }
  func.func @transform_16(%arg0: i32, %arg1: i32) -> (i32, i32, i32) {
    %c0_i32 = arith.constant 0 : i32
    %c0_i32_0 = arith.constant 0 : i32
    %c0_i32_1 = arith.constant 0 : i32
    return %arg1, %c0_i32, %c0_i32_0 : i32, i32, i32
  }
  func.func @transform_17(%arg0: i32, %arg1: i32) -> (i32, i32, i32) {
    %c0_i32 = arith.constant 0 : i32
    %c0_i32_0 = arith.constant 0 : i32
    %c0_i32_1 = arith.constant 0 : i32
    return %arg1, %c0_i32, %c0_i32_0 : i32, i32, i32
  }
  func.func @transform_18(%arg0: i32, %arg1: i32) -> (i32, i32, i32) {
    %c0_i32 = arith.constant 0 : i32
    %c0_i32_0 = arith.constant 0 : i32
    %c0_i32_1 = arith.constant 0 : i32
    return %arg1, %c0_i32, %c0_i32_0 : i32, i32, i32
  }
  func.func @transform_19(%arg0: i32, %arg1: i32) -> (i32, i32, i32) {
    %c0_i32 = arith.constant 0 : i32
    %c0_i32_0 = arith.constant 0 : i32
    %c0_i32_1 = arith.constant 0 : i32
    return %arg1, %c0_i32, %c0_i32_0 : i32, i32, i32
  }
  func.func @transform_20(%arg0: i32, %arg1: i32) -> (i32, i32, i32) {
    %c0_i32 = arith.constant 0 : i32
    %c0_i32_0 = arith.constant 0 : i32
    %c0_i32_1 = arith.constant 0 : i32
    return %arg1, %c0_i32, %c0_i32_0 : i32, i32, i32
  }
  func.func @transform_21(%arg0: i32, %arg1: i32) -> (i32, i32, i32) {
    %c0_i32 = arith.constant 0 : i32
    %c0_i32_0 = arith.constant 0 : i32
    %c0_i32_1 = arith.constant 0 : i32
    return %arg1, %c0_i32, %c0_i32_0 : i32, i32, i32
  }
  func.func @transform_22(%arg0: i32, %arg1: i32) -> (i32, i32, i32) {
    %c0_i32 = arith.constant 0 : i32
    %c0_i32_0 = arith.constant 0 : i32
    %c0_i32_1 = arith.constant 0 : i32
    return %arg1, %c0_i32, %c0_i32_0 : i32, i32, i32
  }
  func.func @transform_23(%arg0: i32, %arg1: i32) -> (i32, i32, i32) {
    %c0_i32 = arith.constant 0 : i32
    %c0_i32_0 = arith.constant 0 : i32
    %c0_i32_1 = arith.constant 0 : i32
    return %arg1, %c0_i32, %c0_i32_0 : i32, i32, i32
  }
  func.func @transform_24(%arg0: i32, %arg1: i32) -> (i32, i32) {
    %c0_i32 = arith.constant 0 : i32
    %c0_i32_0 = arith.constant 0 : i32
    %c0_i32_1 = arith.constant 0 : i32
    return %c0_i32, %c0_i32_0 : i32, i32
  }
  func.func @transform_25(%arg0: i32, %arg1: i32) -> (i32, i32) {
    %c0_i32 = arith.constant 0 : i32
    %c0_i32_0 = arith.constant 0 : i32
    %c0_i32_1 = arith.constant 0 : i32
    return %c0_i32, %c0_i32_0 : i32, i32
  }
  func.func @transform_26(%arg0: i32, %arg1: i32) -> (i32, i32) {
    %c0_i32 = arith.constant 0 : i32
    %c0_i32_0 = arith.constant 0 : i32
    %c0_i32_1 = arith.constant 0 : i32
    return %c0_i32, %c0_i32_0 : i32, i32
  }
  func.func @transform_28(%arg0: i32, %arg1: i32) -> (i32, i32, i32) {
    %c0_i32 = arith.constant 0 : i32
    %c0_i32_0 = arith.constant 0 : i32
    %c0_i32_1 = arith.constant 0 : i32
    return %arg0, %c0_i32, %c0_i32_0 : i32, i32, i32
  }
}

</mosaic_0001>

<bundles_post_ra>
// kernel: tpu_custom_call.1
= control target key start
LH: loop header
LB: loop body
LE: loop exit
PB: predicated region body
PF: predicated region fallthrough
CT: control target
= control target key end

     0   :  { %s8056_s0 = inlined_call_operand.vmem [shape: f32[2,16,64], index: 0, kind: input, shape index: {}]   ;;  %s8057_s1 = inlined_call_operand.vmem [shape: bf16[2,16,64], index: 1, kind: input, shape index: {}]   ;;  %s8058_s2 = inlined_call_operand.hbm [shape: f32[2,1,16], index: 2, kind: input, shape index: {}]   ;;  %s8059_s3 = inlined_call_operand.hbm [shape: f32[2,1,16], index: 3, kind: input, shape index: {}]   ;;  %s8060_s4 = inlined_call_operand.hbm [shape: f32[2,1,64], index: 4, kind: input, shape index: {}]   ;;  %s8061_s5 = inlined_call_operand.hbm [shape: f32[2,1,64], index: 5, kind: input, shape index: {}]   ;;  %s8062_s6 = inlined_call_operand.vmem [shape: bf16[2,64,1536], index: 6, kind: input, shape index: {}]   ;;  %s8063_s7 = inlined_call_operand.vmem [shape: f32[2,1,1536], index: 7, kind: input, shape index: {}]   ;;  %s8064_s8 = inlined_call_operand.vmem [shape: bf16[2,512,64], index: 8, kind: input, shape index: {}]   ;;  %s8065_s9 = inlined_call_operand.hbm [shape: f32[2,1,64], index: 9, kind: input, shape index: {}]   ;;  %s8066_s10 = inlined_call_operand.vmem [shape: f32[2,1,64], index: 10, kind: input, shape index: {}]   ;;  %s8067_s11 = inlined_call_operand.vmem [shape: f32[2,1,64], index: 11, kind: input, shape index: {}]   ;;  %s8068_s12 = inlined_call_operand.vmem [shape: bf16[2,64,512], index: 12, kind: input, shape index: {}]   ;;  %s8069_s13 = inlined_call_operand.vmem [shape: f32[2,1,512], index: 13, kind: input, shape index: {}]   ;;  %s8070_s14 = inlined_call_operand.vmem [shape: bf16[2,64,1024], index: 14, kind: input, shape index: {}]   ;;  %s8071_s15 = inlined_call_operand.vmem [shape: f32[2,1,1024], index: 15, kind: input, shape index: {}]   ;;  %s8072_s16 = inlined_call_operand.vmem [shape: bf16[2,512,64], index: 16, kind: input, shape index: {}]   ;;  %s8073_s17 = inlined_call_operand.vmem [shape: f32[2,1,64], index: 17, kind: input, shape index: {}]   ;;  %s8074_s18 = inlined_call_operand.vmem [shape: f32[2,1,64], index: 18, kind: input, shape index: {}]   ;;  %s8075_s19 = inlined_call_operand.vmem [shape: f32[2,1,64], index: 19, kind: input, shape index: {}]   ;;  %s8076_s20 = inlined_call_operand.vmem [shape: bf16[2,64,128], index: 20, kind: input, shape index: {}]   ;;  %s8077_s21 = inlined_call_operand.vmem [shape: f32[2,1,128], index: 21, kind: input, shape index: {}]   ;;  %s8078_s22 = inlined_call_operand.vmem [shape: bf16[2,128,64], index: 22, kind: input, shape index: {}]   ;;  %s8079_s23 = inlined_call_operand.vmem [shape: f32[2,1,64], index: 23, kind: input, shape index: {}]   ;;  %s8080_s24 = inlined_call_operand.vmem [shape: f32[1,64], index: 24, kind: input, shape index: {}]   ;;  %s8081_s25 = inlined_call_operand.vmem [shape: f32[1,64], index: 25, kind: input, shape index: {}]   ;;  %s8082_s26 = inlined_call_operand.vmem [shape: f32[1,128], index: 26, kind: input, shape index: {}]   ;;  %s8083_s27 = inlined_call_operand.vmem [shape: bf16[64,128], index: 27, kind: input, shape index: {}]   ;;  %s8084_s28 = inlined_call_operand.hbm [shape: f32[2,16,128], index: 28, kind: output, shape index: {}]  }
   0x1   :  { %8110 = sst [smem:[#allocation41_spill]] %s8056_s0 }
   0x2   :  { %8111 = sst [smem:[#allocation42_spill]] %s8057_s1 }
   0x3   :  { %8112 = sst [smem:[#allocation43_spill]] %s8058_s2 }
   0x4   :  { %8113 = sst [smem:[#allocation44_spill]] %s8059_s3 }
   0x5   :  { %8114 = sst [smem:[#allocation45_spill]] %s8060_s4 }
   0x6   :  { %8115 = sst [smem:[#allocation46_spill]] %s8061_s5 }
   0x7   :  { %8116 = sst [smem:[#allocation47_spill]] %s8062_s6 }
   0x8   :  { %8117 = sst [smem:[#allocation48_spill]] %s8063_s7 }
   0x9   :  { %8118 = sst [smem:[#allocation49_spill]] %s8064_s8 }
   0xa   :  { %8119 = sst [smem:[#allocation50_spill]] %s8065_s9 }
   0xb   :  { %8120 = sst [smem:[#allocation51_spill]] %s8066_s10 }
   0xc   :  { %8121 = sst [smem:[#allocation52_spill]] %s8067_s11 }
   0xd   :  { %8122 = sst [smem:[#allocation53_spill]] %s8068_s12 }
   0xe   :  { %8123 = sst [smem:[#allocation54_spill]] %s8069_s13 }
   0xf   :  { %8124 = sst [smem:[#allocation55_spill]] %s8070_s14 }
  0x10   :  { %8125 = sst [smem:[#allocation56_spill]] %s8071_s15 }
  0x11   :  { %8126 = sst [smem:[#allocation57_spill]] %s8072_s16 }
  0x12   :  { %8127 = sst [smem:[#allocation58_spill]] %s8073_s17 }
  0x13   :  { %8128 = sst [smem:[#allocation59_spill]] %s8074_s18 }
  0x14   :  { %8129 = sst [smem:[#allocation60_spill]] %s8075_s19 }
  0x15   :  { %8130 = sst [smem:[#allocation61_spill]] %s8076_s20 }
  0x16   :  { %8131 = sst [smem:[#allocation62_spill]] %s8077_s21 }
  0x17   :  { %8132 = sst [smem:[#allocation63_spill]] %s8078_s22 }
  0x18   :  { %8133 = sst [smem:[#allocation64_spill]] %s8079_s23 }
  0x19   :  { %8134 = sst [smem:[#allocation65_spill]] %s8080_s24 }
  0x1a   :  { %8135 = sst [smem:[#allocation66_spill]] %s8081_s25 }
  0x1b   :  { %8136 = sst [smem:[#allocation67_spill]] %s8082_s26 }
  0x1c   :  { %8137 = sst [smem:[#allocation68_spill]] %s8083_s27 }
  0x1d   :  { %8138 = sst [smem:[#allocation69_spill]] %s8084_s28 }
  0x1e   :  { %33 = vsyncpa [#allocation6], 0 }
  0x1f   :  { %35 = vsyncpa [#allocation6 + $0x1], 0 }
  0x20   :  { %36 = vsyncpa [#allocation9], 0 }
  0x21   :  { %38 = vsyncpa [#allocation9 + $0x1], 0 }
  0x22   :  { %39 = vsyncpa [#allocation12], 0 }
  0x23   :  { %41 = vsyncpa [#allocation12 + $0x1], 0 }
  0x24   :  { %42 = vsyncpa [#allocation7], 0 }
  0x25   :  { %44 = vsyncpa [#allocation7 + $0x1], 0  ;;  %s6857_s8 = smov 0   ;;  %s6859_s5 = smov 0  }
  0x26   :  { %s6861_s9 = smov 0   ;;  %s6863_s30 = smov 0  }
  0x27   :  { %s6865_s3 = smov 0   ;;  %s6867_s6 = smov 0  }
  0x28   :  { %s6869_s10 = smov 0   ;;  %s6871_s0 = smov 0  }
  0x29   :  { %s6873_s11 = smov 0   ;;  %s6875_s29 = smov 0  }
  0x2a   :  { %s6877_s2 = smov 0  }
  0x2b LB: > { %8139 = sst [smem:[#allocation22_spill]] %s6661_s5  ;;  %s6913_s7 = sadd.s32 4294967295, %s6697_s2   ;;  %s6697_s2 = sphi %s6877_s2, %s50_s2   ;;  %s6693_s29 = sphi %s6875_s29, %s8247_s29   ;;  %s6689_s11 = sphi %s6873_s11, %s8246_s11   ;;  %s6685_s0 = sphi %s6871_s0, %s8245_s0   ;;  %s6681_s10 = sphi %s6869_s10, %s8244_s10   ;;  %s6677_s6 = sphi %s6867_s6, %s8243_s6   ;;  %s6673_s3 = sphi %s6865_s3, %s8242_s3   ;;  %s6669_s30 = sphi %s6863_s30, %s8241_s30   ;;  %s6665_s9 = sphi %s6861_s9, %s8240_s9   ;;  %s6661_s5 = sphi %s6859_s5, %s8239_s5   ;;  %s6657_s8 = sphi %s6857_s8, %s8238_s8  }
  0x2c   : > { %8140 = sst [smem:[#allocation23_spill]] %s6665_s9  ;;  %s5339_s12 = sadd.s32 4294967294, %s6697_s2  }
  0x2d   : > { %8141 = sst [smem:[#allocation24_spill]] %s6669_s30  ;;  %p128_p0 = scmp.ne.s32.totalorder %s6677_s6, %s6673_s3 }
  0x2e   : > { %8142 = sst [smem:[#allocation25_spill]] %s6673_s3  ;;  %p8093_p1 = scmp.eq.s32.totalorder %s6697_s2, 0 }
  0x2f   : > { %8143 = sst [smem:[#allocation26_spill]] %s6677_s6  ;;  %p134_p2 = scmp.ne.s32.totalorder %s6673_s3, %s6669_s30 }
  0x30   : > { %8144 = sst [smem:[#allocation27_spill]] %s6685_s0  ;;  %p8092_p3 = scmp.eq.s32.totalorder %s6913_s7, 0 }
  0x31   : > { %8145 = sst [smem:[#allocation28_spill]] %s6689_s11  ;;  %p130_p4 = por %p8093_p1, %p128_p0 }
  0x32   : > { %8146 = sst [smem:[#allocation29_spill]] %s6693_s29  ;;  %p767_p5 = scmp.eq.s32.totalorder %s6913_s7, 3 }
  0x33   : > { %8147 = sst [smem:[#allocation30_spill]] %s6697_s2  ;;  %p6929_p6 = por %p8092_p3, %p134_p2 }
  0x34   : > { %p773_p7 = scmp.eq.s32.totalorder %s5339_s12, 3  ;;  %p6933_p8 = por %p767_p5, %p128_p0 }
  0x35   : > { %p8091_p10 = scmp.lt.s32.totalorder %s6697_s2, 4  ;;  %s6943_s30 = sand.u32 1, %s6677_s6  }
  0x36   : > { %s8149_s1 = scalar_select %p6933_p8, 1, 0 }
  0x37   : > { %p6937_p9 = por %p773_p7, %p134_p2  ;;  %s8095_s26 = sshll.u32 %s6693_s29, 4 }
  0x38   : > { %8150 = sst [smem:[#allocation31_spill]] %s8149_s1  ;;  %p6948_p11 = pnand %p8091_p10, %p130_p4 }
  0x39   : > { %s8151_s4 = scalar_select %p6937_p9, 1, 0 }
  0x3a   : > { %s8096_s12 = sand.u32 1, %s6697_s2   ;;  %s8154_s27 = sld [smem:[#allocation44_spill]] }
  0x3b   : > { %8152 = sst [smem:[#allocation32_spill]] %s8151_s4  ;;  %s838_s23 = scalar_lea.vmem [#allocation8], %s6943_s30 }
  0x3c   : > { %s845_s4 = sshll.u32 %s838_s23, 4  ;;  %p5347_p12 = scmp.ge.s32.totalorder %s6697_s2, 1  ;;  %s846_s4 = int_to_ptr.vmem [resolvable:$true] %s845_s4 }
  0x3d   : > { %p1020_p13 = scmp.lt.s32.totalorder %s6697_s2, 5  ;;  %s6963_s21 = scalar_lea.sflag [#allocation9], %s8096_s12 }
  0x3e   : > { %p8094_p0 = pneg %p6948_p11  ;;  %s6436_s20 = scalar_lea.vmem %s846_s4, 16 }
  0x3f   : > { %p6437_p2 = scmp.ne.s32.totalorder %s846_s4, %s6436_s20  ;;  %s6699_s19 = smov [#allocation8]  }
  0x40   : > { %s843_s22 = scalar_lea.hbm %s8154_s27, %s8095_s26  ;;  %s6441_s18 = sshll.u32 %s6699_s19, 4  ;;  %s6442_s18 = int_to_ptr.vmem [resolvable:$false] %s6441_s18 }
  0x41   : > { %p6439_p4 = pnand %p6437_p2, %p8094_p0  ;;  %s6443_s24 = scalar_lea.vmem %s6442_s18, 32 }
  0x42   : > { %p6444_p7 = scmp.lt.s32.totalorder %s846_s4, %s6442_s18  ;;  %p6445_p10 = scmp.lt.s32.totalorder %s6443_s24, %s6436_s20 }
  0x43   : > { %p6440_p5 = pneg %p6439_p4 }
  0x44   : > { %p6446_p3 = por %p6445_p10, %p6444_p7 }
  0x46   : > { %p6447_p1 = pnand %p6446_p3, %p6440_p5 }
  0x48   : > { %6450 = shalt.err (!%p6447_p1)
}
  0x49   : > { %6041 = dma.hbm_to_vmem [thread:$0]  (!%p6948_p11), %s843_s22, 16, %s846_s4, %s6963_s21  }
  0x4a   : > { %p6977_p1 = pnand %p5347_p12, %p1020_p13  ;;  %s59_s19 = sadd.s32 1, %s6689_s11 }
  0x4b   : > { %p60_p3 = scmp.ge.s32.totalorder %s59_s19, 2  ;;  %s173_s20 = sadd.s32 1, %s6665_s9 }
  0x4c   : > { %p180_p10 = scmp.ne.s32.totalorder %s6665_s9, %s6661_s5  ;;  %p186_p2 = scmp.ne.s32.totalorder %s6661_s5, %s6657_s8 }
  0x4d   : > { %s8249_s19 = smov (%p60_p3, %s59_s19), 0  ;;  %s8157_s22 = sadd.s32 1, %s6693_s29 }
  0x4e   : > { %8156 = sst [smem:[#allocation33_spill]] %s8249_s19  ;;  %s8251_s22 = smov (!%p60_p3, %s8157_s22), %s6693_s29 }
  0x4f   : > { %s170_s23 = ssub.s32 %s6689_s11, %s8249_s19  ;;  %p8158_p12 = scmp.eq.s32.totalorder %s6697_s2, 0 }
  0x50   : > { %p64_p4 = scmp.ge.s32.totalorder %s8251_s22, 2  ;;  %p171_p5 = scmp.eq.s32.totalorder %s170_s23, 0 }
  0x51   : > { %p182_p13 = por %p180_p10, %p8158_p12  ;;  %p8159_p7 = scmp.eq.s32.totalorder %s6913_s7, 0 }
  0x52   : > { %s7003_s1 = sand.u32 1, %s6665_s9   ;;  %s8253_s22 = smov (%p64_p4, %s8251_s22), 0 }
  0x53   : > { %p6998_p0 = por %p186_p2, %p8159_p7  ;;  %8161 = sst [smem:[#allocation34_spill]] %s8253_s22 }
  0x54   : > { %s7008_s8 = scalar_select %p171_p5, %s6665_s9, %s173_s20  }
  0x55   : > { %s118_s4 = ssub.s32 %s6693_s29, %s8253_s22  ;;  %s7013_s24 = sshll.u32 %s6689_s11, 4 }
  0x56   : > { %8162 = sst [smem:[#allocation35_spill]] %s7008_s8  ;;  %p119_p3 = scmp.eq.s32.totalorder %s118_s4, 0 }
  0x57   : > { %p8163_p10 = scmp.lt.s32.totalorder %s6697_s2, 4  ;;  %s8165_s26 = sadd.s32 1, %s6677_s6 }
  0x58   : > { %s7024_s12 = scalar_select %p119_p3, %s6677_s6, %s8165_s26  }
  0x59   : > { %p7017_p12 = pnand %p8163_p10, %p182_p13  ;;  %s8167_s16 = sld [smem:[#allocation46_spill]] }
  0x5a   : > { %8166 = sst [smem:[#allocation36_spill]] %s7024_s12  ;;  %s872_s8 = scalar_lea.vmem [#allocation11], %s7003_s1 }
  0x5b   : > { %s879_s22 = sshll.u32 %s872_s8, 4  ;;  %s8168_s11 = sand.u32 1, %s6697_s2   ;;  %s880_s22 = int_to_ptr.vmem [resolvable:$true] %s879_s22 }
  0x5c   : > { %s7033_s9 = scalar_lea.sflag [#allocation12], %s8168_s11  ;;  %p8104_p2 = pneg %p7017_p12 }
  0x5d   : > { %s6464_s4 = scalar_lea.vmem %s880_s22, 16  ;;  %s6700_s26 = smov [#allocation11]  }
  0x5e   : > { %p6465_p13 = scmp.ne.s32.totalorder %s880_s22, %s6464_s4  ;;  %s6469_s12 = sshll.u32 %s6700_s26, 4  ;;  %s6470_s12 = int_to_ptr.vmem [resolvable:$false] %s6469_s12 }
  0x5f   : > { %s877_s20 = scalar_lea.hbm %s8167_s16, %s7013_s24  ;;  %s6471_s6 = scalar_lea.vmem %s6470_s12, 32 }
  0x60   : > { %p6467_p4 = pnand %p6465_p13, %p8104_p2  ;;  %p6472_p7 = scmp.lt.s32.totalorder %s880_s22, %s6470_s12 }
  0x61   : > { %p6473_p3 = scmp.lt.s32.totalorder %s6471_s6, %s6464_s4 }
  0x62   : > { %p6468_p5 = pneg %p6467_p4 }
  0x63   : > { %p6474_p10 = por %p6473_p3, %p6472_p7 }
  0x65   : > { %p6475_p9 = pnand %p6474_p10, %p6468_p5 }
  0x67   : > { %6478 = shalt.err (!%p6475_p9)
}
  0x68   : > { %6047 = dma.hbm_to_vmem [thread:$0]  (!%p7017_p12), %s877_s20, 16, %s880_s22, %s7033_s9  }
  0x69   : > { %s8169_s16 = sshll.u32 %s6693_s29, 4  ;;  %s8170_s19 = sld [smem:[#allocation43_spill]] }
  0x6a   : > { %s821_s26 = scalar_lea.vmem [#allocation5], %s6943_s30  ;;  %s819_s6 = scalar_lea.sflag [#allocation6], %s6943_s30 }
  0x6b   : > { %s828_s2 = sshll.u32 %s821_s26, 4  ;;  %p8171_p9 = pneg %p6948_p11  ;;  %s829_s2 = int_to_ptr.vmem [resolvable:$true] %s828_s2 }
  0x6c   : > { %s6492_s12 = scalar_lea.vmem %s829_s2, 16  ;;  %s6701_s4 = smov [#allocation5]  }
  0x6d   : > { %p6493_p13 = scmp.ne.s32.totalorder %s829_s2, %s6492_s12  ;;  %s6497_s15 = sshll.u32 %s6701_s4, 4  ;;  %s6498_s15 = int_to_ptr.vmem [resolvable:$false] %s6497_s15 }
  0x6e   : > { %s6499_s14 = scalar_lea.vmem %s6498_s15, 32  ;;  %p6500_p7 = scmp.lt.s32.totalorder %s829_s2, %s6498_s15 }
  0x6f   : > { %s826_s8 = scalar_lea.hbm %s8170_s19, %s8169_s16  ;;  %p6495_p4 = pnand %p6493_p13, %p8171_p9 }
  0x70   : > { %p6501_p3 = scmp.lt.s32.totalorder %s6499_s14, %s6492_s12 }
  0x71   : > { %p6496_p5 = pneg %p6495_p4 }
  0x72   : > { %p6502_p10 = por %p6501_p3, %p6500_p7 }
  0x74   : > { %p6503_p2 = pnand %p6502_p10, %p6496_p5 }
  0x76   : > { %6506 = shalt.err (!%p6503_p2)
}
  0x77   : > { %6038 = dma.hbm_to_vmem [thread:$0]  (!%p6948_p11), %s826_s8, 16, %s829_s2, %s819_s6  }
  0x78   : > { %s8172_s20 = sld [smem:[#allocation45_spill]]  ;;  %s855_s17 = scalar_lea.vmem [#allocation10], %s7003_s1 }
  0x79   : > { %s862_s11 = sshll.u32 %s855_s17, 4  ;;  %p8173_p9 = pneg %p7017_p12  ;;  %s863_s11 = int_to_ptr.vmem [resolvable:$true] %s862_s11 }
  0x7a   : > { %s6520_s19 = scalar_lea.vmem %s863_s11, 16  ;;  %s6702_s14 = smov [#allocation10]  }
  0x7b   : > { %p6521_p13 = scmp.ne.s32.totalorder %s863_s11, %s6520_s19  ;;  %s6525_s15 = sshll.u32 %s6702_s14, 4  ;;  %s6526_s15 = int_to_ptr.vmem [resolvable:$false] %s6525_s15 }
  0x7c   : > { %s6527_s25 = scalar_lea.vmem %s6526_s15, 32  ;;  %p6528_p2 = scmp.lt.s32.totalorder %s863_s11, %s6526_s15 }
  0x7d   : > { %p6523_p4 = pnand %p6521_p13, %p8173_p9  ;;  %p6529_p7 = scmp.lt.s32.totalorder %s6527_s25, %s6520_s19 }
  0x7e   : > { %s860_s16 = scalar_lea.hbm %s8172_s20, %s7013_s24 }
  0x7f   : > { %p6524_p5 = pneg %p6523_p4  ;;  %p6530_p11 = por %p6529_p7, %p6528_p2 }
  0x81   : > { %p6531_p3 = pnand %p6530_p11, %p6524_p5 }
  0x83   : > { %6534 = shalt.err (!%p6531_p3)
}
  0x84   : > { %6044 = dma.hbm_to_vmem [thread:$0]  (!%p7017_p12), %s860_s16, 16, %s863_s11, %s6963_s21  }
  0x85   : > { %s8174_s26 = sld [smem:[#allocation50_spill]]  ;;  %s912_s12 = scalar_lea.vmem [#allocation13], %s7003_s1 }
  0x86   : > { %s919_s4 = sshll.u32 %s912_s12, 4  ;;  %p8175_p13 = pmov %p8173_p9  ;;  %s920_s4 = int_to_ptr.vmem [resolvable:$true] %s919_s4 }
  0x87   : > { %s6548_s30 = scalar_lea.vmem %s920_s4, 16  ;;  %s6703_s22 = smov [#allocation13]  }
  0x88   : > { %p6549_p10 = scmp.ne.s32.totalorder %s920_s4, %s6548_s30  ;;  %s6553_s20 = sshll.u32 %s6703_s22, 4  ;;  %s6554_s20 = int_to_ptr.vmem [resolvable:$false] %s6553_s20 }
  0x89   : > { %s6555_s17 = scalar_lea.vmem %s6554_s20, 32  ;;  %p6556_p5 = scmp.lt.s32.totalorder %s920_s4, %s6554_s20 }
  0x8a   : > { %p6551_p9 = pnand %p6549_p10, %p8175_p13  ;;  %p6557_p2 = scmp.lt.s32.totalorder %s6555_s17, %s6548_s30 }
  0x8b   : > { %s917_s6 = scalar_lea.hbm %s8174_s26, %s7013_s24 }
  0x8c   : > { %p6552_p4 = pneg %p6551_p9  ;;  %p6558_p7 = por %p6557_p2, %p6556_p5 }
  0x8e   : > { %p6559_p11 = pnand %p6558_p7, %p6552_p4 }
  0x90   : > { %6562 = shalt.err (!%p6559_p11)
}
  0x91   : > { %6050 = dma.hbm_to_vmem [thread:$0]  (!%p7017_p12), %s917_s6, 16, %s920_s4, %s7033_s9  }
  0x92   : > { %1024 = sbr.rel (%p6977_p1) target bundleno = 7157 (0x1bf5), region = 128 }
  0x97   : > { %s7080_s21 = sand.u32 1, %s6673_s3  }
  0x98   : > { %s1027_s1 = scalar_lea.sflag [#allocation6], %s7080_s21 }
  0x99   : > { %6634 = dma.done.wait (%p6929_p6), %s1027_s1, 16  }
  0x9a   : > { %6636 = vsyncadd (%p6929_p6), %s1027_s1, 4294967280  ;;  %s1034_s9 = sand.u32 1, %s6913_s7  }
  0x9b   : > { %s1035_s23 = scalar_lea.sflag [#allocation9], %s1034_s9 }
  0x9c   : > { %6638 = dma.done.wait (%p6929_p6), %s1035_s23, 16  }
  0x9d   : > { %6640 = vsyncadd (%p6929_p6), %s1035_s23, 4294967280  ;;  %s7095_s16 = sand.u32 1, %s6661_s5  }
  0x9e   : > { %6642 = dma.done.wait (%p6998_p0), %s1035_s23, 16  }
  0x9f   : > { %6644 = vsyncadd (%p6998_p0), %s1035_s23, 4294967280  ;;  %s1051_s7 = scalar_lea.sflag [#allocation12], %s1034_s9 }
  0xa0   : > { %6646 = dma.done.wait (%p6998_p0), %s1051_s7, 32  }
  0xa1   : > { %6648 = vsyncadd (%p6998_p0), %s1051_s7, 4294967264  ;;  %p1225_p6 = scmp.lt.s32.totalorder %s6685_s0, 1  ;;  %p1235_p1 = scmp.lt.s32.totalorder %s6681_s10, 1 }
  0xa2   : > { %s8176_s26 = sld [smem:[#allocation41_spill]]  ;;  %p5368_p0 = scmp.ne.s32.totalorder %s6681_s10, 0 }
  0xa3   : > { %s1226_s14 = scalar_select %p1225_p6, %s6685_s0, 1 }
  0xa4   : > { %s7112_s15 = scalar_select %p1235_p1, %s6681_s10, 1 }
  0xa5   : > { %s5589_s27 = sshll.u32 %s1226_s14, 4  ;;  %s5590_s25 = sshll.u32 %s1226_s14, 3 }
  0xa6   : > { %s8177_s30 = sld [smem:[#allocation42_spill]]  ;;  %s6021_s20 = smul.u32 384, %s7112_s15 }
  0xa7   : > { %s5591_s17 = sshll.u32 %s7112_s15, 8  ;;  %s6022_s1 = smul.u32 12, %s7112_s15 }
  0xa8   : > { %s7117_s6 = scalar_lea.vmem %s8176_s26, %s5589_s27  ;;  %s8179_s7 = sld [smem:[#allocation49_spill]] }
  0xa9   : > { %s8180_s27 = sld [smem:[#allocation47_spill]]  ;;  %s5592_s2 = sshll.u32 %s7112_s15, 7 }
  0xaa   : > { %s8182_s19 = sld [smem:[#allocation48_spill]]  ;;  %s5358_s8 = sshll.u32 %s7112_s15, 2 }
  0xab   : > { %s8184_s29 = sld [smem:[#allocation53_spill]]  ;;  %s5361_s23 = sshll.u32 %s7112_s15, 3 }
  0xac   : > { %s7122_s22 = scalar_lea.vmem %s8177_s30, %s5590_s25  ;;  %s8186_s13 = sld [smem:[#allocation54_spill]] }
  0xad   : > { %8178 = sst [smem:[#allocation37_spill]] %s7122_s22  ;;  %s5595_s28 = sshll.u32 %s7112_s15, 5 }
  0xae   : > { %s7130_s14 = scalar_lea.vmem %s8179_s7, %s5591_s17  ;;  %s8189_s30 = sld [smem:[#allocation56_spill]] }
  0xaf   : > { %s7135_s26 = scalar_lea.vmem %s8180_s27, %s6021_s20  ;;  %s8195_s7 = sld [smem:[#allocation61_spill]] }
  0xb0   : > { %s7144_s11 = scalar_lea.vmem %s8182_s19, %s6022_s1  ;;  %s8188_s1 = sld [smem:[#allocation55_spill]] }
  0xb1   : > { %s7155_s12 = scalar_lea.vmem %s8184_s29, %s5592_s2  ;;  %s8191_s2 = sld [smem:[#allocation57_spill]] }
  0xb2   : > { %8185 = sst [smem:[#allocation38_spill]] %s7155_s12  ;;  %s7160_s24 = scalar_lea.vmem %s8186_s13, %s5358_s8 }
  0xb3   : > { %8187 = sst [smem:[#allocation39_spill]] %s7160_s24  ;;  %s5596_s25 = sshll.u32 %s7112_s15, 6 }
  0xb4   : > { %s7171_s3 = scalar_lea.vmem %s8189_s30, %s5361_s23  ;;  %s8196_s29 = sld [smem:[#allocation62_spill]] }
  0xb5   : > { %8190 = sst [smem:[#allocation40_spill]] %s7171_s3  ;;  %s7194_s3 = scalar_lea.vmem %s8195_s7, %s5595_s28 }
  0xb6   : > { %s7165_s9 = scalar_lea.vmem %s8188_s1, %s5591_s17  ;;  %s8197_s13 = sld [smem:[#allocation64_spill]] }
  0xb7   : > { %s7176_s27 = scalar_lea.vmem %s8191_s2, %s5591_s17  ;;  %s8198_s19 = sld [smem:[#allocation63_spill]] }
  0xb8   : > { %s1061_s22 = scalar_lea.vmem [#allocation13], %s7095_s16  ;;  %s8199_s1 = sshll.u32 %s7080_s21, 4 }
  0xb9   : > { %s7213_s12 = scalar_lea.vmem [#allocation14], %s8199_s1  ;;  %1307 = sbr.rel (%p5368_p0) target bundleno = 192 (0xc0), region = 152 }
  0xba   : > { %s1294_s2 = scalar_lea.vmem %s8196_s29, %s7112_s15 }
  0xbc   : > { %s1302_s5 = scalar_lea.vmem %s8197_s13, %s7112_s15 }
  0xbd   : > { %s7208_s24 = scalar_lea.vmem %s8198_s19, %s5596_s25 }
  0xbe   : > { %v1308_v0 = vld [vmem:[%s7117_s6] sm:$0xff]  ;;  %vm1310_vm0 = vcmask 523264   ;;  %v1309_v1 = vld [vmem:[%s7117_s6 + $0x8] sm:$0xff] }
  0xbf   : > { %1311 = vst.msk [vmem:[#allocation2] sm:$0xff] %vm1310_vm0, %v1308_v0  ;;  %1312 = vst.msk [vmem:[#allocation2 + $0x8] sm:$0xff] %vm1310_vm0, %v1309_v1 }
  0xc0 PF: > { %vm1338_vm1 = vcmask 523264   ;;  %v6152_v16 = vld [vmem:[%s7135_s26 + $0x124] ss:$48 sps:$4 sm:$0xff]   ;;  %v6156_v18 = vld [vmem:[%s7135_s26 + $0x120] ss:$48 sps:$4 sm:$0xff]   ;;  %v6704_v34 = vmov 0  }
  0xc1   : > { %v6154_v17 = vld [vmem:[%s7135_s26 + $0x134] ss:$48 sps:$4 sm:$0xff]   ;;  %v6157_v19 = vld [vmem:[%s7135_s26 + $0x130] ss:$48 sps:$4 sm:$0xff]   ;;  %1746 = vmatprep.subr.bf16.mxu1 %v6152_v16  ;;  %v6178_v32 = vld [vmem:[%s7135_s26 + $0x12c] ss:$48 sps:$4 sm:$0xff]   ;;  %1770 = vmatprep.mubr.bf16.mxu1 %v6704_v34 }
  0xc2   : > { %1832 = vmatprep.subr.bf16.mxu0 %v6154_v17  ;;  %1747 = vmatpush1.bf16.msra.mxu1 %v6156_v18  ;;  %v6158_v20 = vld [vmem:[%s7135_s26 + $0xc4] ss:$48 sps:$4 sm:$0xff]   ;;  %v6162_v22 = vld [vmem:[%s7135_s26 + $0xc0] ss:$48 sps:$4 sm:$0xff]   ;;  %s8200_s13 = scalar_lea.vmem [#allocation10], %s7095_s16  ;;  %s8201_s6 = scalar_lea.vmem [#allocation11], %s7095_s16 }
  0xc3   : > { %1833 = vmatpush1.bf16.msra.mxu0 %v6157_v19  ;;  %v6160_v21 = vld [vmem:[%s7135_s26 + $0xd4] ss:$48 sps:$4 sm:$0xff]   ;;  %v6163_v23 = vld [vmem:[%s7135_s26 + $0xd0] ss:$48 sps:$4 sm:$0xff]   ;;  %1748 = vmatprep.subr.bf16.mxu1 %v6158_v20  ;;  %v6176_v51 = vld [vmem:[%s7135_s26 + $0x128] ss:$48 sps:$4 sm:$0xff]   ;;  %v1321_v19 = vlaneseq }
  0xc4   : > { %1834 = vmatprep.subr.bf16.mxu0 %v6160_v21  ;;  %v6164_v24 = vld [vmem:[%s7135_s26 + $0x64] ss:$48 sps:$4 sm:$0xff]   ;;  %v6168_v26 = vld [vmem:[%s7135_s26 + $0x60] ss:$48 sps:$4 sm:$0xff]   ;;  %1856 = vmatprep.mubr.bf16.mxu0 %v6704_v34  ;;  %v6184_v54 = vld [vmem:[%s7135_s26 + $0xcc] ss:$48 sps:$4 sm:$0xff]  }
  0xc5   : > { %v6166_v25 = vld [vmem:[%s7135_s26 + $0x74] ss:$48 sps:$4 sm:$0xff]   ;;  %v6169_v27 = vld [vmem:[%s7135_s26 + $0x70] ss:$48 sps:$4 sm:$0xff]   ;;  %v6182_v56 = vld [vmem:[%s7135_s26 + $0xc8] ss:$48 sps:$4 sm:$0xff]  }
  0xc6   : > { %v1313_v2 = vld [vmem:[#allocation2] sm:$0xff]  ;;  %v1314_v3 = vld [vmem:[#allocation2 + $0x8] sm:$0xff]  ;;  %1749 = vmatpush1.bf16.msra.mxu1 %v6162_v22  ;;  %v6705_v18 = vmov 0.0   ;;  %vm6706_vm2 = vmmov 0   ;;  %v7301_v20 = vshrl.u32 %v1321_v19, 7  ;;  %vm2108_vm7 = vcmask 130048  }
  0xc7   : > { %v1339_v4 = vsel %vm1338_vm1, %v1313_v2, 0.0  ;;  %v1342_v5 = vsel %vm1338_vm1, %v1314_v3, 0.0  ;;  %1835 = vmatpush1.bf16.msra.mxu0 %v6163_v23  ;;  %1750 = vmatprep.subr.bf16.mxu1 %v6164_v24  ;;  %v6170_v28 = vld [vmem:[%s7135_s26 + $0x4] ss:$48 sps:$4 sm:$0xff]   ;;  %v6174_v30 = vld [vmem:[%s7135_s26] ss:$48 sps:$4 sm:$0xff]  }
  0xc8   : > { %1340 = vadd.xlane.f32.xlu0 %v1339_v4  ;;  %1836 = vmatprep.subr.bf16.mxu0 %v6166_v25  ;;  %v6172_v29 = vld [vmem:[%s7135_s26 + $0x14] ss:$48 sps:$4 sm:$0xff]   ;;  %v6175_v31 = vld [vmem:[%s7135_s26 + $0x10] ss:$48 sps:$4 sm:$0xff]   ;;  %v6190_v58 = vld [vmem:[%s7135_s26 + $0x6c] ss:$48 sps:$4 sm:$0xff]  }
  0xc9   : > { %v6181_v33 = vld [vmem:[%s7135_s26 + $0x144] ss:$48 sps:$4 sm:$0xff]   ;;  %v5369_v43 = vld [vmem:[%s8200_s13] ss:$0 sm:$0xff]  ;;  %v6188_v60 = vld [vmem:[%s7135_s26 + $0x68] ss:$48 sps:$4 sm:$0xff]  }
  0xca   : > { %1751 = vmatpush1.bf16.msra.mxu1 %v6168_v26  ;;  %v5370_v47 = vld [vmem:[%s8201_s6] ss:$0 sm:$0xff]  ;;  %v6187_v55 = vld [vmem:[%s7135_s26 + $0xe4] ss:$48 sps:$4 sm:$0xff]   ;;  %v6196_v62 = vld [vmem:[%s7135_s26 + $0xc] ss:$48 sps:$4 sm:$0xff]  }
  0xcb   : > { %1837 = vmatpush1.bf16.msra.mxu0 %v6169_v27  ;;  %1752 = vmatprep.subr.bf16.mxu1 %v6170_v28  ;;  %v6179_v52 = vld [vmem:[%s7135_s26 + $0x140] ss:$48 sps:$4 sm:$0xff]   ;;  %v6193_v59 = vld [vmem:[%s7135_s26 + $0x84] ss:$48 sps:$4 sm:$0xff]   ;;  %v6194_v0 = vld [vmem:[%s7135_s26 + $0x8] ss:$48 sps:$4 sm:$0xff]  }
  0xcc   : > { %1343 = vadd.xlane.f32.xlu0 %v1342_v5  ;;  %1838 = vmatprep.subr.bf16.mxu0 %v6172_v29  ;;  %v6185_v57 = vld [vmem:[%s7135_s26 + $0xe0] ss:$48 sps:$4 sm:$0xff]   ;;  %v6199_v63 = vld [vmem:[%s7135_s26 + $0x24] ss:$48 sps:$4 sm:$0xff]   ;;  %v6205_v4 = vld [vmem:[%s7135_s26 + $0xdc] ss:$48 sps:$4 sm:$0xff]  }
  0xcd   : > { %v6191_v61 = vld [vmem:[%s7135_s26 + $0x80] ss:$48 sps:$4 sm:$0xff]   ;;  %v6203_v5 = vld [vmem:[%s7135_s26 + $0xd8] ss:$48 sps:$4 sm:$0xff]   ;;  %v6223_v16 = vld [vmem:[%s7135_s26 + $0x2c] ss:$48 sps:$4 sm:$0xff]  }
  0xce   : > { %1753 = vmatpush1.bf16.msra.mxu1 %v6174_v30  ;;  %v6197_v1 = vld [vmem:[%s7135_s26 + $0x20] ss:$48 sps:$4 sm:$0xff]   ;;  %v6221_v17 = vld [vmem:[%s7135_s26 + $0x28] ss:$48 sps:$4 sm:$0xff]   ;;  %v1453_v21 = vsub.s32 4, %v7301_v20  ;;  %v7311_v28 = vsub.s32 0, %v7301_v20 }
  0xcf   : > { %1839 = vmatpush1.bf16.msra.mxu0 %v6175_v31  ;;  %1789 = vmatprep.subr.bf16.mxu1 %v6178_v32  ;;  %v7305_v22 = vld [vmem:[%s7144_s11] sm:$0xff]  ;;  %v1457_v31 = vsub.s32 5, %v7301_v20  ;;  %s8207_s16 = sld [smem:[#allocation38_spill]]  ;;  %s8215_s25 = scalar_lea.vmem [#allocation8], %s7080_s21 }
  0xd0   : > { %1918 = vmatprep.subr.bf16.mxu0 %v6181_v33  ;;  %v1454_v25 = vrot.slane %v7305_v22, %v1453_v21  ;;  %s8209_s28 = sld [smem:[#allocation51_spill]]  ;;  %p5573_p12 = scmp.ne.s32.totalorder %s6681_s10, 1 }
  0xd1   : > { %s8211_s17 = sld [smem:[#allocation52_spill]] }
  0xd2   : > { %s8213_s29 = sld [smem:[#allocation40_spill]] }
  0xd3   : > { %s8218_s0 = sld [smem:[#allocation58_spill]] }
  0xd4   : > { %s8228_s8 = sld [smem:[#allocation65_spill]] (!%p5573_p12) }
  0xd6   : > { %s8210_s30 = scalar_lea.vmem %s8209_s28, %s7112_s15 }
  0xd7   : > { %s8212_s20 = scalar_lea.vmem %s8211_s17, %s7112_s15 }
  0xd9   : > { %s8219_s18 = scalar_lea.vmem %s8218_s0, %s7112_s15 }
 0x151   : > { %v1341_v6 = vpop.xlane.xlu0 %1340 }
 0x152   : > { %v1346_v7 = vmul.f32 0.015625, %v1341_v6  ;;  %v6208_v6 = vld [vmem:[%s7135_s26 + $0x7c] ss:$48 sps:$4 sm:$0xff]  }
 0x154   : > { %v1348_v8 = vsub.f32 %v1313_v2, %v1346_v7  ;;  %v6202_v2 = vld [vmem:[%s7135_s26 + $0x13c] ss:$48 sps:$4 sm:$0xff]   ;;  %v6206_v7 = vld [vmem:[%s7135_s26 + $0x78] ss:$48 sps:$4 sm:$0xff]  }
 0x155   : > { %v1344_v9 = vpop.xlane.xlu0 %1343 }
 0x156   : > { %v1347_v10 = vmul.f32 0.015625, %v1344_v9  ;;  %v1350_v11 = vmul.f32 %v1348_v8, %v1348_v8  ;;  %v6209_v9 = vld [vmem:[%s7135_s26 + $0x18] ss:$48 sps:$4 sm:$0xff]  }
 0x158   : > { %v1349_v12 = vsub.f32 %v1314_v3, %v1347_v10  ;;  %v1352_v13 = vsel %vm1338_vm1, %v1350_v11, 0.0  ;;  %v6200_v3 = vld [vmem:[%s7135_s26 + $0x138] ss:$48 sps:$4 sm:$0xff]   ;;  %v6214_v10 = vld [vmem:[%s7135_s26 + $0x14c] ss:$48 sps:$4 sm:$0xff]  }
 0x159   : > { %1353 = vadd.xlane.f32.xlu1 %v1352_v13  ;;  %v6212_v11 = vld [vmem:[%s7135_s26 + $0x148] ss:$48 sps:$4 sm:$0xff]  }
 0x15a   : > { %v1351_v14 = vmul.f32 %v1349_v12, %v1349_v12  ;;  %v6215_v13 = vld [vmem:[%s7135_s26 + $0xe8] ss:$48 sps:$4 sm:$0xff]  }
 0x15c   : > { %v1355_v15 = vsel %vm1338_vm1, %v1351_v14, 0.0  ;;  %v6220_v14 = vld [vmem:[%s7135_s26 + $0x8c] ss:$48 sps:$4 sm:$0xff]  }
 0x15d   : > { %1356 = vadd.xlane.f32.xlu1 %v1355_v15  ;;  %v6218_v15 = vld [vmem:[%s7135_s26 + $0x88] ss:$48 sps:$4 sm:$0xff]  }
 0x1e2   : > { %v1354_v35 = vpop.xlane.xlu1 %1353 }
 0x1e3   : > { %v1358_v36 = vmul.f32 0.015625, %v1354_v35 }
 0x1e5   : > { %v1360_v37 = vadd.f32 1e-05, %v1358_v36  ;;  %v1438_v36 = vrot.slane %v7305_v22, %v7311_v28 }
 0x1e6   : > { %v1357_v38 = vpop.xlane.xlu1 %1356 }
 0x1e7   : > { %6325 = vrsqrt.f32 %v1360_v37  ;;  %v1359_v39 = vmul.f32 0.015625, %v1357_v38  ;;  %v1458_v38 = vrot.slane %v7305_v22, %v1457_v31 }
 0x1e9   : > { %v1361_v40 = vadd.f32 1e-05, %v1359_v39 }
 0x1eb   : > { %6327 = vrsqrt.f32 %v1361_v40 }
 0x1f4   : > { %v6326_v41 = vpop.eup %6325 }
 0x1f5   : > { %v1364_v42 = vmul.f32 %v6326_v41, %v1348_v8  ;;  %v6211_v8 = vld [vmem:[%s7135_s26 + $0x1c] ss:$48 sps:$4 sm:$0xff]  }
 0x1f7   : > { %v1372_v45 = vmul.f32 %v5369_v43, %v1364_v42  ;;  %v7321_v42 = vsub.s32 1, %v7301_v20 }
 0x1f8   : > { %v6328_v44 = vpop.eup %6327 }
 0x1f9   : > { %v1365_v46 = vmul.f32 %v6328_v44, %v1349_v12  ;;  %v1380_v49 = vadd.f32 %v5370_v47, %v1372_v45  ;;  %v6217_v12 = vld [vmem:[%s7135_s26 + $0xec] ss:$48 sps:$4 sm:$0xff]  }
 0x1fb   : > { %v1373_v48 = vmul.f32 %v5369_v43, %v1365_v46  ;;  %v7324_v46 = vld [vmem:[%s7144_s11 + $0x8] sm:$0xf]  ;;  %s8202_s11 = scalar_lea.vmem [#allocation5], %s7080_s21 }
 0x1fd   : > { %v1381_v50 = vadd.f32 %v5370_v47, %v1373_v48  ;;  %v7327_v48 = vsub.s32 3, %v7301_v20 }
 0x1ff   : > { %v7248_v53 = vpack.c.bf16 %v1381_v50, %v1380_v49  ;;  %v1474_v49 = vrot.slane %v7324_v46, %v7321_v42  ;;  %v1442_v50 = vrot.slane %v7305_v22, %v7321_v42 }
 0x201   : > { %5419 = vmatmul.mubr.msk.bf16.vlgmr.msra.gmra.mxu1 %vm1338_vm1, %v7248_v53  ;;  %5421 = vmatmul.mubr.msk.bf16.vlgmr.msra.gmra.mxu0 %vm1338_vm1, %v7248_v53 }
 0x202   : > { %1790 = vmatpush1.bf16.msra.mxu1 %v6176_v51  ;;  %1919 = vmatpush1.bf16.msra.mxu0 %v6179_v52 }
 0x203   : > { %1791 = vmatprep.subr.bf16.mxu1 %v6184_v54  ;;  %1920 = vmatprep.subr.bf16.mxu0 %v6187_v55 }
 0x204   : > { %1813 = vmatprep.mubr.bf16.mxu1 %v6704_v34  ;;  %1942 = vmatprep.mubr.bf16.mxu0 %v6704_v34 }
 0x206   : > { %1792 = vmatpush1.bf16.msra.mxu1 %v6182_v56  ;;  %1921 = vmatpush1.bf16.msra.mxu0 %v6185_v57  ;;  %v1450_v57 = vrot.slane %v7305_v22, %v7327_v48 }
 0x207   : > { %1793 = vmatprep.subr.bf16.mxu1 %v6190_v58  ;;  %1922 = vmatprep.subr.bf16.mxu0 %v6193_v59 }
 0x20a   : > { %1794 = vmatpush1.bf16.msra.mxu1 %v6188_v60  ;;  %1923 = vmatpush1.bf16.msra.mxu0 %v6191_v61 }
 0x20b   : > { %1795 = vmatprep.subr.bf16.mxu1 %v6196_v62  ;;  %1924 = vmatprep.subr.bf16.mxu0 %v6199_v63 }
 0x20e   : > { %1796 = vmatpush1.bf16.msra.mxu1 %v6194_v0  ;;  %1925 = vmatpush1.bf16.msra.mxu0 %v6197_v1 }
 0x20f   : > { %1875 = vmatprep.subr.bf16.mxu1 %v6202_v2  ;;  %5721 = vmatprep.subr.bf16.mxu0 %v6705_v18 }
 0x211   : > { %5420 = vmatmul.mubr.msk.bf16.vlgmr.msra.gmra.mxu1 %vm1338_vm1, %v7248_v53  ;;  %5423 = vmatmul.mubr.msk.bf16.vlgmr.msra.gmra.mxu0 %vm1338_vm1, %v7248_v53 }
 0x212   : > { %1876 = vmatpush1.bf16.msra.mxu1 %v6200_v3  ;;  %1899 = vmatprep.mubr.bf16.mxu1 %v6704_v34 }
 0x213   : > { %1877 = vmatprep.subr.bf16.mxu1 %v6205_v4  ;;  %5723 = vmatprep.mubr.msk.bf16.mxu0 %vm6706_vm2, %v6705_v18 }
 0x216   : > { %1878 = vmatpush1.bf16.msra.mxu1 %v6203_v5 }
 0x217   : > { %1879 = vmatprep.subr.bf16.mxu1 %v6208_v6 }
 0x21a   : > { %1880 = vmatpush1.bf16.msra.mxu1 %v6206_v7 }
 0x21b   : > { %1881 = vmatprep.subr.bf16.mxu1 %v6211_v8 }
 0x21e   : > { %1882 = vmatpush1.bf16.msra.mxu1 %v6209_v9  ;;  %v1465_v9 = vsub.s32 7, %v7301_v20 }
 0x21f   : > { %1961 = vmatprep.subr.bf16.mxu1 %v6214_v10 }
 0x221   : > { %5422 = vmatmul.mubr.msk.bf16.vlgmr.msra.gmra.mxu1 %vm1338_vm1, %v7248_v53 }
 0x222   : > { %1962 = vmatpush1.bf16.msra.mxu1 %v6212_v11  ;;  %1985 = vmatprep.mubr.bf16.mxu1 %v6704_v34 }
 0x223   : > { %1963 = vmatprep.subr.bf16.mxu1 %v6217_v12  ;;  %v1466_v12 = vrot.slane %v7305_v22, %v1465_v9 }
 0x226   : > { %1964 = vmatpush1.bf16.msra.mxu1 %v6215_v13 }
 0x227   : > { %1965 = vmatprep.subr.bf16.mxu1 %v6220_v14 }
 0x22a   : > { %1966 = vmatpush1.bf16.msra.mxu1 %v6218_v15 }
 0x22b   : > { %1967 = vmatprep.subr.bf16.mxu1 %v6223_v16 }
 0x22e   : > { %1968 = vmatpush1.bf16.msra.mxu1 %v6221_v17 }
 0x22f   : > { %5727 = vmatprep.subr.bf16.mxu1 %v6705_v18 }
 0x231   : > { %5424 = vmatmul.mubr.msk.bf16.vlgmr.msra.gmra.mxu1 %vm1338_vm1, %v7248_v53  ;;  %v1470_v53 = vrot.slane %v7324_v46, %v7311_v28 }
 0x232   : > { %5729 = vmatprep.mubr.msk.bf16.mxu1 %vm6706_vm2, %v6705_v18 }
 0x2c1   : > { %v1772_v23 = vpop.f32.mrf.mxu1  ;;  %v1858_v24 = vpop.f32.mrf.mxu0 }
 0x2c2   : > { %v1859_v30 = vadd.f32 %v1858_v24, %v1454_v25  ;;  %v1773_v41 = vadd.f32 %v1772_v23, %v1438_v36  ;;  %v1482_v23 = vrot.slane %v7324_v46, %v7327_v48 }
 0x2c3   : > { %v1860_v26 = vpop.f32.mrf.mxu0  ;;  %v1774_v27 = vpop.f32.mrf.mxu1 }
 0x2c4   : > { %v1861_v43 = vadd.f32 %v1860_v26, %v1458_v38  ;;  %v1775_v59 = vadd.f32 %v1774_v27, %v1442_v50 }
 0x2c5   : > { %v1862_v29 = vpop.f32.mrf.mxu0  ;;  %v1776_v33 = vpop.f32.mrf.mxu1 }
 0x2c6   : > { %v1863_v32 = vadd.f32 %v1862_v29, %v1454_v25  ;;  %v1777_v39 = vadd.f32 %v1776_v33, %v1438_v36  ;;  %v1317_v33 = vld [vmem:[%s8202_s11] sm:$0x1]  ;;  %v1325_v36 = vand.u32 127, %v1321_v19  ;;  %s8222_s11 = sld [smem:[#allocation60_spill]] }
 0x2c7   : > { %v1864_v37 = vpop.f32.mrf.mxu0  ;;  %v1778_v45 = vpop.f32.mrf.mxu1  ;;  %vm1318_vm3 = vcmp.gt.f32.partialorder %v1317_v33, 0.5 }
 0x2c8   : > { %v2061_v35 = vpack.c.bf16 %v1863_v32, %v1859_v30  ;;  %v1865_v40 = vadd.f32 %v1864_v37, %v1458_v38  ;;  %v2060_v44 = vpack.c.bf16 %v1777_v39, %v1773_v41  ;;  %v1779_v54 = vadd.f32 %v1778_v45, %v1442_v50 }
 0x2c9   : > { %vm1326_vm4 = vcmp.ge.s32.totalorder %v7301_v20, %v1325_v36  ;;  %v1323_v38 = vadd.s32 8, %v7301_v20 }
 0x2ca   : > { %5722 = vmatpush3.bf16.xpose.msra.mxu0 %v2061_v35  ;;  %v2178_v47 = vpack.c.bf16 %v1865_v40, %v1861_v43  ;;  %v2177_v0 = vpack.c.bf16 %v1779_v54, %v1775_v59  ;;  %v1328_v35 = vsel %vm1318_vm3, 1, %v6704_v34 }
 0x2cb   : > { %5733 = vmatprep.subr.bf16.mxu0 %v6705_v18  ;;  %v1332_v37 = vrot.slane %v1328_v35, %v7311_v28  ;;  %vm1327_vm8 = vcmp.ge.s32.totalorder %v1323_v38, %v1325_v36 }
 0x2cd   : > { %vm1333_vm5 = vcmp.eq.s32.totalorder %v1332_v37, 1 }
 0x2ce   : > { %vm7392_vm6 = vmand %vm1326_vm4, %vm1333_vm5 }
 0x2cf   : > { %vm7399_vm9 = vmand %vm1327_vm8, %vm1333_vm5 }
 0x2d1   : > { %v7333_v51 = vpop.f32.mrf.mxu1  ;;  %v1944_v52 = vpop.f32.mrf.mxu0  ;;  %5724 = vmatmul.mubr.bf16.vlgmr.msra.gmra.mxu0 %v2060_v44 }
 0x2d2   : > { %5734 = vmatpush3.bf16.xpose.msra.mxu0 %v2178_v47  ;;  %5735 = vmatprep.mubr.msk.bf16.mxu0 %vm6706_vm2, %v6705_v18  ;;  %v1945_v62 = vadd.f32 %v1944_v52, %v1470_v53 }
 0x2d3   : > { %v1817_v55 = vpop.f32.mrf.mxu1  ;;  %v1946_v56 = vpop.f32.mrf.mxu0  ;;  %5745 = vmatprep.subr.bf16.mxu0 %v6705_v18 }
 0x2d4   : > { %v7342_v58 = vadd.f32 %v1946_v56, %v1474_v49  ;;  %v7346_v3 = vadd.f32 %v1817_v55, %v1450_v57 }
 0x2d5   : > { %v7344_v60 = vpop.f32.mrf.mxu1  ;;  %v1948_v61 = vpop.f32.mrf.mxu0 }
 0x2d6   : > { %v1949_v63 = vadd.f32 %v1948_v61, %v1470_v53 }
 0x2d7   : > { %v1821_v1 = vpop.f32.mrf.mxu1  ;;  %v1950_v2 = vpop.f32.mrf.mxu0 }
 0x2d8   : > { %v2062_v4 = vpack.c.bf16 %v1949_v63, %v1945_v62  ;;  %v7348_v5 = vadd.f32 %v1821_v1, %v1450_v57  ;;  %v7350_v6 = vadd.f32 %v1950_v2, %v1474_v49 }
 0x2d9   : > { %5736 = vmatmul.mubr.bf16.vlgmr.msra.gmra.mxu0 %v2177_v0 }
 0x2da   : > { %v2678_v7 = vpack.c.bf16 %v7348_v5, %v7346_v3  ;;  %v2179_v8 = vpack.c.bf16 %v7350_v6, %v7342_v58  ;;  %5728 = vmatpush3.bf16.msra.mxu1 %v2062_v4  ;;  %5761 = vmatprep.mubr.msk.bf16.mxu0 %vm6706_vm2, %v6705_v18  ;;  %v6227_v58 = vld [vmem:[%s7130_s14 + $0x28] sm:$0xff]   ;;  %v6229_v6 = vld [vmem:[%s7130_s14 + $0x20] sm:$0xff]  }
 0x2db   : > { %5739 = vmatprep.subr.bf16.mxu1 %v6705_v18 }
 0x2e1   : > { %v7360_v10 = vpop.f32.mrf.mxu1 }
 0x2e3   : > { %v1903_v11 = vpop.f32.mrf.mxu1 }
 0x2e4   : > { %v7367_v15 = vadd.f32 %v1903_v11, %v1466_v12 }
 0x2e5   : > { %v7365_v13 = vpop.f32.mrf.mxu1 }
 0x2e7   : > { %v1907_v14 = vpop.f32.mrf.mxu1 }
 0x2e8   : > { %v7369_v16 = vadd.f32 %v1907_v14, %v1466_v12 }
 0x2ea   : > { %v2679_v17 = vpack.c.bf16 %v7369_v16, %v7367_v15  ;;  %v6246_v15 = vld [vmem:[%s7130_s14 + $0x88] sm:$0xff]   ;;  %v6247_v16 = vld [vmem:[%s7130_s14 + $0x80] sm:$0xff]  }
 0x2f1   : > { %v7375_v24 = vpop.f32.mrf.mxu1 }
 0x2f3   : > { %v1989_v25 = vpop.f32.mrf.mxu1 }
 0x2f4   : > { %v7377_v26 = vadd.f32 %v1989_v25, %v1482_v23 }
 0x2f5   : > { %v7379_v27 = vpop.f32.mrf.mxu1 }
 0x2f7   : > { %v1993_v29 = vpop.f32.mrf.mxu1 }
 0x2f8   : > { %v7381_v30 = vadd.f32 %v1993_v29, %v1482_v23 }
 0x2fa   : > { %v2680_v32 = vpack.c.bf16 %v7381_v30, %v7377_v26 }
 0x391   : > { %v2097_v39 = vpop.f32.mrf.mxu0 }
 0x392   : > { %v2104_v41 = vmul.f32 0.25, %v2097_v39 }
 0x393   : > { %v5725_v43 = vpop.f32.mrf.mxu0 }
 0x394   : > { %v2106_v44 = vsel %vm7392_vm6, %v2104_v41, -1e+15 }
 0x395   : > { %v2100_v19 = vpop.f32.mrf.mxu0  ;;  %v2109_v45 = vsel %vm2108_vm7, %v2106_v44, -inf }
 0x396   : > { %v2105_v49 = vmul.f32 0.25, %v2100_v19  ;;  %2110 = vmax.xlane.f32.xlu0 %v2109_v45 }
 0x397   : > { %v5726_v50 = vpop.f32.mrf.mxu0 }
 0x398   : > { %v2107_v52 = vsel %vm7399_vm9, %v2105_v49, -1e+15  ;;  %v6226_v50 = vld [vmem:[%s7130_s14 + $0x78] sm:$0xff]  }
 0x399   : > { %v2214_v53 = vpop.f32.mrf.mxu0  ;;  %v2112_v54 = vsel %vm2108_vm7, %v2107_v52, -inf  ;;  %5746 = vmatpush3.bf16.msra.mxu0 %v6226_v50 }
 0x39a   : > { %v2221_v55 = vmul.f32 0.25, %v2214_v53  ;;  %2113 = vmax.xlane.f32.xlu1 %v2112_v54  ;;  %5747 = vmatprep.subr.bf16.mxu0 %v6705_v18  ;;  %v6230_v53 = vld [vmem:[%s7130_s14 + $0x68] sm:$0xff]   ;;  %v6232_v54 = vld [vmem:[%s7130_s14 + $0x60] sm:$0xff]  }
 0x39b   : > { %v5737_v56 = vpop.f32.mrf.mxu0 }
 0x39c   : > { %v2223_v57 = vsel %vm7392_vm6, %v2221_v55, -1e+15  ;;  %v6234_v55 = vld [vmem:[%s7130_s14 + $0x58] sm:$0xff]  }
 0x39d   : > { %v2217_v59 = vpop.f32.mrf.mxu0  ;;  %v2225_v61 = vsel %vm2108_vm7, %v2223_v57, -inf }
 0x39e   : > { %v2222_v62 = vmul.f32 0.25, %v2217_v59  ;;  %2226 = vmax.xlane.f32.xlu0 %v2225_v61 }
 0x39f   : > { %v5738_v63 = vpop.f32.mrf.mxu0 }
 0x3a0   : > { %v2224_v0 = vsel %vm7399_vm9, %v2222_v62, -1e+15 }
 0x3a1   : > { %v2228_v1 = vsel %vm2108_vm7, %v2224_v0, -inf }
 0x3a2   : > { %2229 = vmax.xlane.f32.xlu1 %v2228_v1 }
 0x41f   : > { %v2111_v2 = vpop.xlane.xlu0 %2110 }
 0x420   : > { %v2115_v4 = vsub.f32 %v2106_v44, %v2111_v2 }
 0x422   : > { %v2117_v11 = vmul.f32 1.442695, %v2115_v4 }
 0x423   : > { %v2114_v12 = vpop.xlane.xlu1 %2113 }
 0x424   : > { %6329 = vpow2.f32 %v2117_v11  ;;  %v2116_v14 = vsub.f32 %v2107_v52, %v2114_v12  ;;  %v6228_v52 = vld [vmem:[%s7130_s14 + $0x70] sm:$0xff]  }
 0x425   : > { %5748 = vmatpush3.bf16.msra.mxu0 %v6228_v52 }
 0x426   : > { %v2119_v23 = vmul.f32 1.442695, %v2116_v14  ;;  %5749 = vmatprep.subr.bf16.mxu0 %v6705_v18 }
 0x427   : > { %v2227_v25 = vpop.xlane.xlu0 %2226 }
 0x428   : > { %6331 = vpow2.f32 %v2119_v23  ;;  %v2231_v29 = vsub.f32 %v2223_v57, %v2227_v25  ;;  %v6224_v23 = vld [vmem:[%s7130_s14 + $0x38] sm:$0xff]  }
 0x429   : > { %5750 = vmatpush3.bf16.msra.mxu0 %v6230_v53 }
 0x42a   : > { %v2233_v33 = vmul.f32 1.442695, %v2231_v29  ;;  %5751 = vmatprep.subr.bf16.mxu0 %v6705_v18  ;;  %v6225_v29 = vld [vmem:[%s7130_s14 + $0x30] sm:$0xff]  }
 0x42b   : > { %v2230_v35 = vpop.xlane.xlu1 %2229 }
 0x42c   : > { %6333 = vpow2.f32 %v2233_v33  ;;  %v2232_v36 = vsub.f32 %v2224_v0, %v2230_v35  ;;  %v6233_v33 = vld [vmem:[%s7130_s14 + $0x10] sm:$0xff]   ;;  %v6235_v35 = vld [vmem:[%s7130_s14 + $0x8] sm:$0xff]  }
 0x42d   : > { %5752 = vmatpush3.bf16.msra.mxu0 %v6232_v54 }
 0x42e   : > { %v2235_v37 = vmul.f32 1.442695, %v2232_v36  ;;  %5753 = vmatprep.subr.bf16.mxu0 %v6705_v18  ;;  %v6236_v36 = vld [vmem:[%s7130_s14 + $0x50] sm:$0xff]  }
 0x430   : > { %6335 = vpow2.f32 %v2235_v37  ;;  %v6237_v37 = vld [vmem:[%s7130_s14] sm:$0xff]  }
 0x431   : > { %v6330_v38 = vpop.eup %6329  ;;  %5754 = vmatpush3.bf16.msra.mxu0 %v6234_v55 }
 0x432   : > { %v2121_v39 = vsel %vm2108_vm7, %v6330_v38, 0.0  ;;  %5755 = vmatprep.subr.bf16.mxu0 %v6705_v18 }
 0x433   : > { %2122 = vadd.xlane.f32.xlu0 %v2121_v39  ;;  %v6239_v39 = vld [vmem:[%s7130_s14 + $0x40] sm:$0xff]  }
 0x435   : > { %v6332_v41 = vpop.eup %6331  ;;  %5756 = vmatpush3.bf16.msra.mxu0 %v6236_v36 }
 0x436   : > { %v2124_v43 = vsel %vm2108_vm7, %v6332_v41, 0.0  ;;  %5757 = vmatprep.subr.bf16.mxu0 %v6705_v18 }
 0x437   : > { %2125 = vadd.xlane.f32.xlu1 %v2124_v43 }
 0x439   : > { %v6334_v44 = vpop.eup %6333 }
 0x43a   : > { %v2237_v19 = vsel %vm2108_vm7, %v6334_v44, 0.0 }
 0x43b   : > { %2238 = vadd.xlane.f32.xlu0 %v2237_v19 }
 0x43d   : > { %v6336_v45 = vpop.eup %6335 }
 0x43e   : > { %v2240_v49 = vsel %vm2108_vm7, %v6336_v45, 0.0 }
 0x43f   : > { %2241 = vadd.xlane.f32.xlu1 %v2240_v49  ;;  %v1461_v49 = vsub.s32 6, %v7301_v20 }
 0x4bc   : > { %v2123_v56 = vpop.xlane.xlu0 %2122 }
 0x4bd   : > { %6337 = vrcp.f32 %v2123_v56  ;;  %v1462_v56 = vrot.slane %v7305_v22, %v1461_v49 }
 0x4c0   : > { %v2126_v57 = vpop.xlane.xlu1 %2125 }
 0x4c1   : > { %6339 = vrcp.f32 %v2126_v57 }
 0x4c4   : > { %v2239_v59 = vpop.xlane.xlu0 %2238 }
 0x4c5   : > { %6341 = vrcp.f32 %v2239_v59 }
 0x4c8   : > { %v2242_v61 = vpop.xlane.xlu1 %2241 }
 0x4c9   : > { %6343 = vrcp.f32 %v2242_v61 }
 0x4ca   : > { %v6338_v62 = vpop.eup %6337 }
 0x4cb   : > { %v2129_v0 = vmul.f32 %v6338_v62, %v6330_v38  ;;  %v6238_v38 = vld [vmem:[%s7130_s14 + $0x48] sm:$0xff]  }
 0x4cc   : > { %5758 = vmatpush3.bf16.msra.mxu0 %v6238_v38 }
 0x4cd   : > { %5759 = vmatprep.subr.bf16.mxu0 %v6705_v18 }
 0x4ce   : > { %v6340_v63 = vpop.eup %6339 }
 0x4cf   : > { %v2130_v1 = vmul.f32 %v6340_v63, %v6332_v41  ;;  %v7459_v41 = vsub.s32 2, %v7301_v20  ;;  %v6303_v20 = vld [vmem:[%s7176_s27 + $0x88] sm:$0xff]  }
 0x4d0   : > { %5760 = vmatpush3.bf16.msra.mxu0 %v6239_v39 }
 0x4d1   : > { %v2131_v2 = vpack.c.bf16 %v2130_v1, %v2129_v0  ;;  %5785 = vmatprep.subr.bf16.mxu0 %v6705_v18  ;;  %v1478_v43 = vrot.slane %v7324_v46, %v7459_v41  ;;  %v1906_v46 = vadd.f32 %v7365_v13, %v1462_v56  ;;  %v1446_v0 = vrot.slane %v7305_v22, %v7459_v41 }
 0x4d2   : > { %v6342_v4 = vpop.eup %6341 }
 0x4d3   : > { %5730 = vmatmul.mubr.msk.bf16.vlgmr.msra.gmra.mxu1 %vm2108_vm7, %v2131_v2  ;;  %v2245_v12 = vmul.f32 %v6342_v4, %v6334_v44  ;;  %v1992_v19 = vadd.f32 %v7379_v27, %v1478_v43  ;;  %v1988_v50 = vadd.f32 %v7375_v24, %v1478_v43  ;;  %v1902_v24 = vadd.f32 %v7360_v10, %v1462_v56 }
 0x4d4   : > { %5740 = vmatpush3.bf16.msra.mxu1 %v2179_v8  ;;  %5741 = vmatprep.mubr.msk.bf16.mxu1 %vm6706_vm2, %v6705_v18  ;;  %v6231_v8 = vld [vmem:[%s7130_s14 + $0x18] sm:$0xff]   ;;  %v1820_v1 = vadd.f32 %v7344_v60, %v1446_v0  ;;  %v1816_v13 = vadd.f32 %v7333_v51, %v1446_v0 }
 0x4d5   : > { %5765 = vmatprep.subr.bf16.mxu1 %v6705_v18  ;;  %v2473_v54 = vpack.c.bf16 %v1992_v19, %v1988_v50  ;;  %v2472_v62 = vpack.c.bf16 %v1906_v46, %v1902_v24  ;;  %v6241_v46 = vld [vmem:[%s7130_s14 + $0xb0] sm:$0xff]   ;;  %v6243_v24 = vld [vmem:[%s7130_s14 + $0xa0] sm:$0xff]  }
 0x4d6   : > { %v6344_v11 = vpop.eup %6343  ;;  %v2471_v2 = vpack.c.bf16 %v1820_v1, %v1816_v13 }
 0x4d7   : > { %v2246_v14 = vmul.f32 %v6344_v11, %v6336_v45 }
 0x4d9   : > { %v2247_v25 = vpack.c.bf16 %v2246_v14, %v2245_v12 }
 0x4db   : > { %5742 = vmatmul.mubr.msk.bf16.vlgmr.msra.gmra.mxu1 %vm2108_vm7, %v2247_v25 }
 0x4dc   : > { %5766 = vmatpush3.bf16.msra.mxu1 %v6224_v23  ;;  %5781 = vmatprep.mubr.msk.bf16.mxu1 %vm6706_vm2, %v6705_v18 }
 0x4dd   : > { %5767 = vmatprep.subr.bf16.mxu1 %v6705_v18 }
 0x4e0   : > { %5768 = vmatpush3.bf16.msra.mxu1 %v6225_v29 }
 0x4e1   : > { %5769 = vmatprep.subr.bf16.mxu1 %v6705_v18 }
 0x4e4   : > { %5770 = vmatpush3.bf16.msra.mxu1 %v6227_v58 }
 0x4e5   : > { %5771 = vmatprep.subr.bf16.mxu1 %v6705_v18 }
 0x4e8   : > { %5772 = vmatpush3.bf16.msra.mxu1 %v6229_v6 }
 0x4e9   : > { %5773 = vmatprep.subr.bf16.mxu1 %v6705_v18 }
 0x4ec   : > { %5774 = vmatpush3.bf16.msra.mxu1 %v6231_v8 }
 0x4ed   : > { %5775 = vmatprep.subr.bf16.mxu1 %v6705_v18 }
 0x4f0   : > { %5776 = vmatpush3.bf16.msra.mxu1 %v6233_v33 }
 0x4f1   : > { %5777 = vmatprep.subr.bf16.mxu1 %v6705_v18 }
 0x4f4   : > { %5778 = vmatpush3.bf16.msra.mxu1 %v6235_v35 }
 0x4f5   : > { %5779 = vmatprep.subr.bf16.mxu1 %v6705_v18 }
 0x4f8   : > { %5780 = vmatpush3.bf16.msra.mxu1 %v6237_v37 }
 0x4f9   : > { %5791 = vmatprep.subr.bf16.mxu1 %v6705_v18 }
 0x593   : > { %v2169_v44 = vpop.f32.mrf.mxu1 }
 0x595   : > { %v5731_v45 = vpop.f32.mrf.mxu1 }
 0x597   : > { %v2172_v52 = vpop.f32.mrf.mxu1 }
 0x598   : > { %v2176_v53 = vpack.c.bf16 %v2172_v52, %v2169_v44 }
 0x599   : > { %v5732_v55 = vpop.f32.mrf.mxu1 }
 0x59a   : > { %5782 = vmatmul.mubr.bf16.vlgmr.msra.gmra.mxu1 %v2176_v53 }
 0x59b   : > { %5792 = vmatpush3.bf16.msra.mxu1 %v2473_v54  ;;  %v2285_v57 = vpop.f32.mrf.mxu1  ;;  %5793 = vmatprep.mubr.msk.bf16.mxu1 %vm6706_vm2, %v6705_v18 }
 0x59c   : > { %5817 = vmatprep.subr.bf16.mxu1 %v6705_v18 }
 0x59d   : > { %v5743_v27 = vpop.f32.mrf.mxu1 }
 0x59e   : > { %v6242_v27 = vld [vmem:[%s7130_s14 + $0xa8] sm:$0xff]  }
 0x59f   : > { %v2288_v59 = vpop.f32.mrf.mxu1 }
 0x5a0   : > { %v2292_v61 = vpack.c.bf16 %v2288_v59, %v2285_v57  ;;  %v6240_v57 = vld [vmem:[%s7130_s14 + $0xb8] sm:$0xff]  }
 0x5a1   : > { %v5744_v63 = vpop.f32.mrf.mxu1  ;;  %v6244_v59 = vld [vmem:[%s7130_s14 + $0x98] sm:$0xff]  }
 0x5a2   : > { %5762 = vmatmul.mubr.bf16.vlgmr.msra.gmra.mxu0 %v2292_v61  ;;  %v6245_v61 = vld [vmem:[%s7130_s14 + $0x90] sm:$0xff]  }
 0x5a3   : > { %5786 = vmatpush3.bf16.xpose.msra.mxu0 %v2472_v62  ;;  %5787 = vmatprep.mubr.msk.bf16.mxu0 %vm6706_vm2, %v6705_v18 }
 0x5a4   : > { %5797 = vmatprep.subr.bf16.mxu0 %v6705_v18 }
 0x5aa   : > { %5788 = vmatmul.mubr.bf16.vlgmr.msra.gmra.mxu0 %v2471_v2 }
 0x5ab   : > { %5813 = vmatprep.mubr.msk.bf16.mxu0 %vm6706_vm2, %v6705_v18  ;;  %5798 = vmatpush3.bf16.msra.mxu0 %v6240_v57 }
 0x5ac   : > { %5799 = vmatprep.subr.bf16.mxu0 %v6705_v18 }
 0x5af   : > { %5800 = vmatpush3.bf16.msra.mxu0 %v6241_v46  ;;  %v6248_v46 = vld [vmem:[%s7130_s14 + $0xf8] sm:$0xff]  }
 0x5b0   : > { %5801 = vmatprep.subr.bf16.mxu0 %v6705_v18 }
 0x5b3   : > { %5802 = vmatpush3.bf16.msra.mxu0 %v6242_v27 }
 0x5b4   : > { %5803 = vmatprep.subr.bf16.mxu0 %v6705_v18 }
 0x5b7   : > { %5804 = vmatpush3.bf16.msra.mxu0 %v6243_v24  ;;  %v6251_v24 = vld [vmem:[%s7130_s14 + $0xe0] sm:$0xff]  }
 0x5b8   : > { %5805 = vmatprep.subr.bf16.mxu0 %v6705_v18 }
 0x5bb   : > { %5806 = vmatpush3.bf16.msra.mxu0 %v6244_v59  ;;  %v6252_v59 = vld [vmem:[%s7130_s14 + $0xd8] sm:$0xff]  }
 0x5bc   : > { %5807 = vmatprep.subr.bf16.mxu0 %v6705_v18 }
 0x5bf   : > { %5808 = vmatpush3.bf16.msra.mxu0 %v6245_v61  ;;  %v6253_v61 = vld [vmem:[%s7130_s14 + $0xd0] sm:$0xff]  }
 0x5c0   : > { %5809 = vmatprep.subr.bf16.mxu0 %v6705_v18 }
 0x5c3   : > { %5810 = vmatpush3.bf16.msra.mxu0 %v6246_v15 }
 0x5c4   : > { %5811 = vmatprep.subr.bf16.mxu0 %v6705_v18 }
 0x5c7   : > { %5812 = vmatpush3.bf16.msra.mxu0 %v6247_v16 }
 0x65a   : > { %v2464_v10 = vpop.f32.mrf.mxu1 }
 0x65c   : > { %v5783_v4 = vpop.f32.mrf.mxu1 }
 0x65e   : > { %v2467_v11 = vpop.f32.mrf.mxu1 }
 0x660   : > { %v5784_v22 = vpop.f32.mrf.mxu1 }
 0x662   : > { %v2375_v12 = vpop.f32.mrf.mxu0 }
 0x663   : > { %v7483_v14 = vadd.f32 %v2464_v10, %v2375_v12 }
 0x664   : > { %v5763_v23 = vpop.f32.mrf.mxu0 }
 0x666   : > { %v2378_v25 = vpop.f32.mrf.mxu0 }
 0x667   : > { %v7485_v29 = vadd.f32 %v2467_v11, %v2378_v25 }
 0x668   : > { %v5764_v60 = vpop.f32.mrf.mxu0 }
 0x66a   : > { %v2508_v58 = vpop.f32.mrf.mxu0 }
 0x66b   : > { %v2515_v6 = vmul.f32 0.25, %v2508_v58 }
 0x66c   : > { %v5789_v51 = vpop.f32.mrf.mxu0 }
 0x66d   : > { %v2517_v8 = vsel %vm7392_vm6, %v2515_v6, -1e+15 }
 0x66e   : > { %v2511_v33 = vpop.f32.mrf.mxu0  ;;  %v2519_v35 = vsel %vm2108_vm7, %v2517_v8, -inf }
 0x66f   : > { %v2516_v36 = vmul.f32 0.25, %v2511_v33  ;;  %2520 = vmax.xlane.f32.xlu0 %v2519_v35 }
 0x670   : > { %v5790_v37 = vpop.f32.mrf.mxu0 }
 0x671   : > { %v2518_v38 = vsel %vm7399_vm9, %v2516_v36, -1e+15 }
 0x672   : > { %v2522_v39 = vsel %vm2108_vm7, %v2518_v38, -inf }
 0x673   : > { %2523 = vmax.xlane.f32.xlu1 %v2522_v39 }
 0x6f8   : > { %v2521_v43 = vpop.xlane.xlu0 %2520 }
 0x6f9   : > { %v2525_v44 = vsub.f32 %v2517_v8, %v2521_v43 }
 0x6fb   : > { %v2527_v19 = vmul.f32 1.442695, %v2525_v44 }
 0x6fc   : > { %v2524_v45 = vpop.xlane.xlu1 %2523 }
 0x6fd   : > { %6345 = vpow2.f32 %v2527_v19  ;;  %v2526_v50 = vsub.f32 %v2518_v38, %v2524_v45 }
 0x6ff   : > { %v2529_v52 = vmul.f32 1.442695, %v2526_v50 }
 0x701   : > { %6347 = vpow2.f32 %v2529_v52 }
 0x70a   : > { %v6346_v53 = vpop.eup %6345 }
 0x70b   : > { %v2531_v54 = vsel %vm2108_vm7, %v6346_v53, 0.0 }
 0x70c   : > { %2532 = vadd.xlane.f32.xlu0 %v2531_v54 }
 0x70e   : > { %v6348_v55 = vpop.eup %6347 }
 0x70f   : > { %v2534_v56 = vsel %vm2108_vm7, %v6348_v55, 0.0 }
 0x710   : > { %2535 = vadd.xlane.f32.xlu1 %v2534_v56 }
 0x795   : > { %v2533_v62 = vpop.xlane.xlu0 %2532 }
 0x796   : > { %6349 = vrcp.f32 %v2533_v62  ;;  %v6254_v62 = vld [vmem:[%s7130_s14 + $0xc8] sm:$0xff]  }
 0x799   : > { %v2536_v63 = vpop.xlane.xlu1 %2535 }
 0x79a   : > { %6351 = vrcp.f32 %v2536_v63  ;;  %v6255_v63 = vld [vmem:[%s7130_s14 + $0xc0] sm:$0xff]  }
 0x7a3   : > { %v6350_v0 = vpop.eup %6349 }
 0x7a4   : > { %v2539_v13 = vmul.f32 %v6350_v0, %v6346_v53 }
 0x7a7   : > { %v6352_v1 = vpop.eup %6351 }
 0x7a8   : > { %v2540_v2 = vmul.f32 %v6352_v1, %v6348_v55 }
 0x7aa   : > { %v2541_v10 = vpack.c.bf16 %v2540_v2, %v2539_v13 }
 0x7ac   : > { %5794 = vmatmul.mubr.msk.bf16.vlgmr.msra.gmra.mxu1 %vm2108_vm7, %v2541_v10 }
 0x7ad   : > { %5818 = vmatpush3.bf16.xpose.msra.mxu1 %v2679_v17  ;;  %5819 = vmatprep.mubr.msk.bf16.mxu1 %vm6706_vm2, %v6705_v18 }
 0x7ae   : > { %5823 = vmatprep.subr.bf16.mxu1 %v6705_v18 }
 0x7b4   : > { %5820 = vmatmul.mubr.bf16.vlgmr.msra.gmra.mxu1 %v2678_v7 }
 0x7b5   : > { %5824 = vmatpush3.bf16.msra.mxu1 %v2680_v32  ;;  %5825 = vmatprep.mubr.msk.bf16.mxu1 %vm6706_vm2, %v6705_v18 }
 0x7b6   : > { %5829 = vmatprep.subr.bf16.mxu1 %v6705_v18 }
 0x86c   : > { %v2579_v17 = vpop.f32.mrf.mxu1 }
 0x86e   : > { %v5795_v4 = vpop.f32.mrf.mxu1 }
 0x870   : > { %v2582_v11 = vpop.f32.mrf.mxu1 }
 0x871   : > { %v2586_v3 = vpack.c.bf16 %v2582_v11, %v2579_v17  ;;  %v5461_v17 = vld [vmem:[%s1061_s22] ss:$0 sm:$0xff]  ;;  %s8220_s22 = sld [smem:[#allocation59_spill]] }
 0x872   : > { %v5796_v5 = vpop.f32.mrf.mxu1  ;;  %v6401_v11 = vld [vmem:[#allocation2] sm:$0xff] }
 0x873   : > { %5814 = vmatmul.mubr.bf16.vlgmr.msra.gmra.mxu0 %v2586_v3 }
 0x874   : > { %v2715_v7 = vpop.f32.mrf.mxu1  ;;  %3094 = vmatprep.mubr.bf16.mxu0 %v6704_v34 }
 0x875   : > { %v2722_v26 = vmul.f32 0.25, %v2715_v7 }
 0x876   : > { %v5821_v30 = vpop.f32.mrf.mxu1 }
 0x877   : > { %v2724_v32 = vsel %vm7392_vm6, %v2722_v26, -1e+15  ;;  %s8221_s1 = scalar_lea.vmem %s8220_s22, %s7112_s15 }
 0x878   : > { %v2718_v22 = vpop.f32.mrf.mxu1  ;;  %v2726_v12 = vsel %vm2108_vm7, %v2724_v32, -inf }
 0x879   : > { %v2723_v23 = vmul.f32 0.25, %v2718_v22  ;;  %2727 = vmax.xlane.f32.xlu0 %v2726_v12 }
 0x87a   : > { %v5822_v25 = vpop.f32.mrf.mxu1 }
 0x87b   : > { %v2725_v60 = vsel %vm7399_vm9, %v2723_v23, -1e+15 }
 0x87c   : > { %v2729_v58 = vsel %vm2108_vm7, %v2725_v60, -inf }
 0x87d   : > { %2730 = vmax.xlane.f32.xlu1 %v2729_v58 }
 0x902   : > { %v2728_v6 = vpop.xlane.xlu0 %2727 }
 0x903   : > { %v2732_v51 = vsub.f32 %v2724_v32, %v2728_v6  ;;  %v6402_v32 = vld [vmem:[#allocation2 + $0x8] sm:$0xff] }
 0x905   : > { %v2734_v8 = vmul.f32 1.442695, %v2732_v51 }
 0x906   : > { %v2731_v33 = vpop.xlane.xlu1 %2730 }
 0x907   : > { %6353 = vpow2.f32 %v2734_v8  ;;  %v2733_v35 = vsub.f32 %v2725_v60, %v2731_v33 }
 0x909   : > { %v2736_v40 = vmul.f32 1.442695, %v2733_v35 }
 0x90b   : > { %6355 = vpow2.f32 %v2736_v40 }
 0x914   : > { %v6354_v36 = vpop.eup %6353 }
 0x915   : > { %v2738_v37 = vsel %vm2108_vm7, %v6354_v36, 0.0 }
 0x916   : > { %2739 = vadd.xlane.f32.xlu0 %v2738_v37 }
 0x918   : > { %v6356_v38 = vpop.eup %6355 }
 0x919   : > { %v2741_v39 = vsel %vm2108_vm7, %v6356_v38, 0.0 }
 0x91a   : > { %2742 = vadd.xlane.f32.xlu1 %v2741_v39  ;;  %v3176_v39 = vld [vmem:[%s7165_s9 + $0xe0] sm:$0xff] }
 0x933   : > { %v2669_v47 = vpop.f32.mrf.mxu0 }
 0x934   : > { %v2676_v43 = vadd.f32 %v2669_v47, %v7483_v14  ;;  %v6249_v14 = vld [vmem:[%s7130_s14 + $0xf0] sm:$0xff]  }
 0x935   : > { %v5815_v44 = vpop.f32.mrf.mxu0 }
 0x936   : > { %v3164_v44 = vld [vmem:[%s7165_s9 + $0x80] sm:$0xff] }
 0x937   : > { %v2672_v19 = vpop.f32.mrf.mxu0 }
 0x938   : > { %v2677_v45 = vadd.f32 %v2672_v19, %v7485_v29  ;;  %v6250_v29 = vld [vmem:[%s7130_s14 + $0xe8] sm:$0xff]   ;;  %v3168_v19 = vld [vmem:[%s7165_s9 + $0xa0] sm:$0xff]  ;;  %s8208_s14 = sld [smem:[#allocation37_spill]] }
 0x939   : > { %v5816_v50 = vpop.f32.mrf.mxu0 }
 0x93a   : > { %v5499_v50 = vcombine.low %v3164_v44, %v3168_v19 }
 0x99f   : > { %v2740_v52 = vpop.xlane.xlu0 %2739 }
 0x9a0   : > { %6357 = vrcp.f32 %v2740_v52  ;;  %v3156_v52 = vld [vmem:[%s7165_s9 + $0x40] sm:$0xff] }
 0x9a3   : > { %v2743_v53 = vpop.xlane.xlu1 %2742 }
 0x9a4   : > { %6359 = vrcp.f32 %v2743_v53  ;;  %v3160_v53 = vld [vmem:[%s7165_s9 + $0x60] sm:$0xff] }
 0x9ad   : > { %v6358_v54 = vpop.eup %6357 }
 0x9ae   : > { %v2746_v56 = vmul.f32 %v6358_v54, %v6354_v36  ;;  %v5492_v54 = vcombine.high %v3156_v52, %v3160_v53 }
 0x9b1   : > { %v6360_v55 = vpop.eup %6359 }
 0x9b2   : > { %v2747_v57 = vmul.f32 %v6360_v55, %v6356_v38  ;;  %v3172_v38 = vld [vmem:[%s7165_s9 + $0xc0] sm:$0xff]  ;;  %v5491_v55 = vcombine.low %v3156_v52, %v3160_v53  ;;  %v6269_v52 = vld [vmem:[%s8207_s16 + $0x68] ss:$16 sps:$4 sm:$0xff]  }
 0x9b3   : > { %v5508_v47 = vcombine.high %v3172_v38, %v3176_v39 }
 0x9b4   : > { %v2748_v27 = vpack.c.bf16 %v2747_v57, %v2746_v56  ;;  %v3148_v56 = vld [vmem:[%s7165_s9] sm:$0xff] }
 0x9b5   : > { %v3152_v57 = vld [vmem:[%s7165_s9 + $0x20] sm:$0xff] }
 0x9b6   : > { %5826 = vmatmul.mubr.msk.bf16.vlgmr.msra.gmra.mxu1 %vm2108_vm7, %v2748_v27  ;;  %v5484_v27 = vcombine.high %v3148_v56, %v3152_v57 }
 0x9b7   : > { %5830 = vmatpush3.bf16.msra.mxu1 %v6248_v46  ;;  %5845 = vmatprep.mubr.msk.bf16.mxu1 %vm6706_vm2, %v6705_v18  ;;  %v6258_v46 = vld [vmem:[%s8207_s16 + $0x64] ss:$16 sps:$4 sm:$0xff]  }
 0x9b8   : > { %5831 = vmatprep.subr.bf16.mxu1 %v6705_v18  ;;  %3070 = vmatprep.subr.bf16.mxu0 %v6258_v46  ;;  %v3173_v46 = vld [vmem:[%s7165_s9 + $0xc8] sm:$0xff] }
 0x9bb   : > { %5832 = vmatpush3.bf16.msra.mxu1 %v6249_v14  ;;  %v6256_v14 = vld [vmem:[%s8207_s16 + $0x60] ss:$16 sps:$4 sm:$0xff]  }
 0x9bc   : > { %5833 = vmatprep.subr.bf16.mxu1 %v6705_v18  ;;  %3071 = vmatpush1.bf16.msra.mxu0 %v6256_v14  ;;  %v6278_v14 = vld [vmem:[%s8207_s16 + $0x8] ss:$16 sps:$4 sm:$0xff]  }
 0x9bf   : > { %5834 = vmatpush3.bf16.msra.mxu1 %v6250_v29  ;;  %v5483_v29 = vcombine.low %v3148_v56, %v3152_v57  ;;  %v6275_v56 = vld [vmem:[%s8207_s16 + $0x28] ss:$16 sps:$4 sm:$0xff]   ;;  %v6280_v57 = vld [vmem:[%s8207_s16 + $0xc] ss:$16 sps:$4 sm:$0xff]  }
 0x9c0   : > { %5835 = vmatprep.subr.bf16.mxu1 %v6705_v18 }
 0x9c3   : > { %5836 = vmatpush3.bf16.msra.mxu1 %v6251_v24  ;;  %v6261_v24 = vld [vmem:[%s8207_s16 + $0x44] ss:$16 sps:$4 sm:$0xff]  }
 0x9c4   : > { %5837 = vmatprep.subr.bf16.mxu1 %v6705_v18  ;;  %3072 = vmatprep.subr.bf16.mxu0 %v6261_v24  ;;  %v3165_v24 = vld [vmem:[%s7165_s9 + $0x88] sm:$0xff] }
 0x9c7   : > { %5838 = vmatpush3.bf16.msra.mxu1 %v6252_v59  ;;  %v7590_v59 = vld [vmem:[%s8208_s14] sm:$0xff]  }
 0x9c8   : > { %5839 = vmatprep.subr.bf16.mxu1 %v6705_v18 }
 0x9cb   : > { %5840 = vmatpush3.bf16.msra.mxu1 %v6253_v61  ;;  %v6259_v61 = vld [vmem:[%s8207_s16 + $0x40] ss:$16 sps:$4 sm:$0xff]  }
 0x9cc   : > { %5841 = vmatprep.subr.bf16.mxu1 %v6705_v18  ;;  %3073 = vmatpush1.bf16.msra.mxu0 %v6259_v61  ;;  %v3169_v61 = vld [vmem:[%s7165_s9 + $0xa8] sm:$0xff] }
 0x9cf   : > { %5842 = vmatpush3.bf16.msra.mxu1 %v6254_v62  ;;  %v6265_v62 = vld [vmem:[%s8207_s16 + $0x24] ss:$16 sps:$4 sm:$0xff]  }
 0x9d0   : > { %5843 = vmatprep.subr.bf16.mxu1 %v6705_v18  ;;  %3074 = vmatprep.subr.bf16.mxu0 %v6265_v62 }
 0x9d3   : > { %5844 = vmatpush3.bf16.msra.mxu1 %v6255_v63  ;;  %v6263_v63 = vld [vmem:[%s8207_s16 + $0x20] ss:$16 sps:$4 sm:$0xff]  }
 0x9d4   : > { %3398 = vmatprep.subr.bf16.mxu1 %v5508_v47  ;;  %3075 = vmatpush1.bf16.msra.mxu0 %v6263_v63  ;;  %v5502_v63 = vcombine.high %v3165_v24, %v3169_v61 }
 0xa76   : > { %v2786_v0 = vpop.f32.mrf.mxu1 }
 0xa78   : > { %v5827_v1 = vpop.f32.mrf.mxu1 }
 0xa79   : > { %v6266_v1 = vld [vmem:[%s8207_s16] ss:$16 sps:$4 sm:$0xff]  }
 0xa7a   : > { %v2789_v13 = vpop.f32.mrf.mxu1 }
 0xa7b   : > { %v2793_v2 = vpack.c.bf16 %v2789_v13, %v2786_v0  ;;  %v6268_v0 = vld [vmem:[%s8207_s16 + $0x4] ss:$16 sps:$4 sm:$0xff]   ;;  %v6271_v13 = vld [vmem:[%s8207_s16 + $0x6c] ss:$16 sps:$4 sm:$0xff]  }
 0xa7c   : > { %v5828_v10 = vpop.f32.mrf.mxu1  ;;  %3076 = vmatprep.subr.bf16.mxu0 %v6268_v0  ;;  %v3157_v0 = vld [vmem:[%s7165_s9 + $0x48] sm:$0xff] }
 0xa7d   : > { %5846 = vmatmul.mubr.bf16.vlgmr.msra.gmra.mxu1 %v2793_v2  ;;  %3077 = vmatpush1.bf16.msra.mxu0 %v6266_v1  ;;  %v3174_v2 = vld [vmem:[%s7165_s9 + $0xd0] sm:$0xff]  ;;  %v3161_v1 = vld [vmem:[%s7165_s9 + $0x68] sm:$0xff] }
 0xa7e   : > { %3422 = vmatprep.mubr.bf16.mxu1 %v6704_v34  ;;  %3113 = vmatprep.subr.bf16.mxu0 %v6271_v13  ;;  %v3178_v10 = vld [vmem:[%s7165_s9 + $0xf0] sm:$0xff]  ;;  %v5501_v13 = vcombine.low %v3165_v24, %v3169_v61 }
 0xb3d   : > { %v2876_v15 = vpop.f32.mrf.mxu1 }
 0xb3e   : > { %v2883_v16 = vadd.f32 %v2876_v15, %v2676_v43  ;;  %v5507_v43 = vcombine.low %v3172_v38, %v3176_v39  ;;  %v5511_v15 = vcombine.low %v3174_v2, %v3178_v10  ;;  %v5462_v39 = vld [vmem:[%s8210_s30] ss:$0 sm:$0xff] }
 0xb3f   : > { %v5847_v4 = vpop.f32.mrf.mxu1 }
 0xb40   : > { %v2885_v3 = vadd.f32 %v6401_v11, %v2883_v16  ;;  %3399 = vmatpush1.bf16.msra.mxu1 %v5507_v43  ;;  %v5512_v16 = vcombine.high %v3174_v2, %v3178_v10  ;;  %v3170_v4 = vld [vmem:[%s7165_s9 + $0xb0] sm:$0xff]  ;;  %v5494_v2 = vcombine.high %v3157_v0, %v3161_v1  ;;  %v3149_v10 = vld [vmem:[%s7165_s9 + $0x8] sm:$0xff] }
 0xb41   : > { %v2879_v5 = vpop.f32.mrf.mxu1 }
 0xb42   : > { %v7558_v7 = vadd.f32 %v5461_v17, %v2885_v3  ;;  %v2884_v26 = vadd.f32 %v2879_v5, %v2677_v45  ;;  %v5500_v45 = vcombine.high %v3164_v44, %v3168_v19  ;;  %v3158_v5 = vld [vmem:[%s7165_s9 + $0x50] sm:$0xff]  ;;  %v5463_v19 = vld [vmem:[%s8212_s20] ss:$0 sm:$0xff] }
 0xb43   : > { %v5848_v30 = vpop.f32.mrf.mxu1 }
 0xb44   : > { %v2886_v22 = vadd.f32 %v6402_v32, %v2884_v26  ;;  %v2898_v12 = vsel %vm1338_vm1, %v7558_v7, 0.0  ;;  %3400 = vmatprep.subr.bf16.mxu1 %v5500_v45  ;;  %v3162_v26 = vld [vmem:[%s7165_s9 + $0x70] sm:$0xff] }
 0xb45   : > { %2899 = vadd.xlane.f32.xlu0 %v2898_v12  ;;  %3401 = vmatpush1.bf16.msra.mxu1 %v5499_v50  ;;  %v5495_v30 = vcombine.low %v3158_v5, %v3162_v26  ;;  %v5496_v32 = vcombine.high %v3158_v5, %v3162_v26  ;;  %v3154_v12 = vld [vmem:[%s7165_s9 + $0x30] sm:$0xff]  ;;  %v3167_v26 = vld [vmem:[%s7165_s9 + $0x98] sm:$0xff] }
 0xb46   : > { %v7562_v23 = vadd.f32 %v5461_v17, %v2886_v22  ;;  %3402 = vmatprep.subr.bf16.mxu1 %v5492_v54  ;;  %v3166_v17 = vld [vmem:[%s7165_s9 + $0x90] sm:$0xff]  ;;  %v6274_v54 = vld [vmem:[%s8207_s16 + $0x4c] ss:$16 sps:$4 sm:$0xff]  }
 0xb47   : > { %v5503_v11 = vcombine.low %v3166_v17, %v3170_v4  ;;  %v5504_v3 = vcombine.high %v3166_v17, %v3170_v4  ;;  %v3150_v22 = vld [vmem:[%s7165_s9 + $0x10] sm:$0xff]  ;;  %v3175_v4 = vld [vmem:[%s7165_s9 + $0xd8] sm:$0xff] }
 0xb48   : > { %v2901_v25 = vsel %vm1338_vm1, %v7562_v23, 0.0 }
 0xb49   : > { %2902 = vadd.xlane.f32.xlu1 %v2901_v25  ;;  %3403 = vmatpush1.bf16.msra.mxu1 %v5491_v55  ;;  %v5487_v25 = vcombine.low %v3150_v22, %v3154_v12  ;;  %v6277_v55 = vld [vmem:[%s8207_s16 + $0x2c] ss:$16 sps:$4 sm:$0xff]  }
 0xb4a   : > { %3404 = vmatprep.subr.bf16.mxu1 %v5484_v27  ;;  %v3177_v27 = vld [vmem:[%s7165_s9 + $0xe8] sm:$0xff] }
 0xb4b   : > { %v5509_v62 = vcombine.low %v3173_v46, %v3177_v27 }
 0xb4d   : > { %3405 = vmatpush1.bf16.msra.mxu1 %v5483_v29  ;;  %v5510_v29 = vcombine.high %v3173_v46, %v3177_v27 }
 0xb4e   : > { %3484 = vmatprep.subr.bf16.mxu1 %v5512_v16  ;;  %v5493_v16 = vcombine.low %v3157_v0, %v3161_v1 }
 0xb50   : > { %5515 = vmatmul.mubr.msk.bf16.vlgmr.msra.gmra.mxu1 %vm1338_vm1, %v7590_v59 }
 0xb51   : > { %3508 = vmatprep.mubr.bf16.mxu1 %v6704_v34  ;;  %3485 = vmatpush1.bf16.msra.mxu1 %v5511_v15  ;;  %v3153_v15 = vld [vmem:[%s7165_s9 + $0x28] sm:$0xff] }
 0xb52   : > { %3486 = vmatprep.subr.bf16.mxu1 %v5504_v3  ;;  %v5486_v17 = vcombine.high %v3149_v10, %v3153_v15  ;;  %v5485_v3 = vcombine.low %v3149_v10, %v3153_v15 }
 0xb55   : > { %3487 = vmatpush1.bf16.msra.mxu1 %v5503_v11  ;;  %v3179_v11 = vld [vmem:[%s7165_s9 + $0xf8] sm:$0xff] }
 0xb56   : > { %3488 = vmatprep.subr.bf16.mxu1 %v5496_v32  ;;  %v5514_v5 = vcombine.high %v3175_v4, %v3179_v11  ;;  %v5513_v32 = vcombine.low %v3175_v4, %v3179_v11 }
 0xb59   : > { %3489 = vmatpush1.bf16.msra.mxu1 %v5495_v30  ;;  %v3171_v30 = vld [vmem:[%s7165_s9 + $0xb8] sm:$0xff] }
 0xbce   : > { %v2900_v60 = vpop.xlane.xlu0 %2899 }
 0xbcf   : > { %v2904_v58 = vmul.f32 0.015625, %v2900_v60  ;;  %v5488_v60 = vcombine.high %v3150_v22, %v3154_v12  ;;  %v5506_v22 = vcombine.high %v3167_v26, %v3171_v30  ;;  %v3159_v12 = vld [vmem:[%s7165_s9 + $0x58] sm:$0xff] }
 0xbd1   : > { %v7567_v6 = vsub.f32 %v7558_v7, %v2904_v58  ;;  %3490 = vmatprep.subr.bf16.mxu1 %v5488_v60  ;;  %v5505_v60 = vcombine.low %v3167_v26, %v3171_v30 }
 0xbd2   : > { %v2903_v51 = vpop.xlane.xlu1 %2902  ;;  %3491 = vmatpush1.bf16.msra.mxu1 %v5487_v25  ;;  %v3163_v25 = vld [vmem:[%s7165_s9 + $0x78] sm:$0xff] }
 0xbd3   : > { %v2905_v8 = vmul.f32 0.015625, %v2903_v51  ;;  %v2908_v33 = vmul.f32 %v7567_v6, %v7567_v6  ;;  %5849 = vmatprep.subr.bf16.mxu1 %v6705_v18 }
 0xbd5   : > { %v7572_v35 = vsub.f32 %v7562_v23, %v2905_v8  ;;  %v2910_v40 = vsel %vm1338_vm1, %v2908_v33, 0.0  ;;  %5517 = vmatmul.mubr.msk.bf16.vlgmr.msra.gmra.mxu1 %vm1338_vm1, %v7590_v59 }
 0xbd6   : > { %2911 = vadd.xlane.f32.xlu0 %v2910_v40  ;;  %5851 = vmatprep.mubr.msk.bf16.mxu1 %vm6706_vm2, %v6705_v18 }
 0xbd7   : > { %v2909_v36 = vmul.f32 %v7572_v35, %v7572_v35 }
 0xbd9   : > { %v2913_v37 = vsel %vm1338_vm1, %v2909_v36, 0.0 }
 0xbda   : > { %2914 = vadd.xlane.f32.xlu1 %v2913_v37 }
 0xc5f   : > { %v2912_v58 = vpop.xlane.xlu0 %2911 }
 0xc60   : > { %v2916_v51 = vmul.f32 0.015625, %v2912_v58  ;;  %v5498_v58 = vcombine.high %v3159_v12, %v3163_v25 }
 0xc62   : > { %v2918_v8 = vadd.f32 1e-05, %v2916_v51  ;;  %v3151_v51 = vld [vmem:[%s7165_s9 + $0x18] sm:$0xff] }
 0xc63   : > { %v2915_v33 = vpop.xlane.xlu1 %2914 }
 0xc64   : > { %6361 = vrsqrt.f32 %v2918_v8  ;;  %v2917_v40 = vmul.f32 0.015625, %v2915_v33  ;;  %v3155_v8 = vld [vmem:[%s7165_s9 + $0x38] sm:$0xff]  ;;  %v5497_v33 = vcombine.low %v3159_v12, %v3163_v25  ;;  %s8214_s9 = sld [smem:[#allocation39_spill]] }
 0xc66   : > { %v2919_v36 = vadd.f32 1e-05, %v2917_v40  ;;  %v5490_v40 = vcombine.high %v3151_v51, %v3155_v8 }
 0xc68   : > { %6363 = vrsqrt.f32 %v2919_v36  ;;  %v5489_v36 = vcombine.low %v3151_v51, %v3155_v8 }
 0xc71   : > { %v6362_v37 = vpop.eup %6361 }
 0xc72   : > { %v2922_v38 = vmul.f32 %v6362_v37, %v7567_v6  ;;  %v7658_v37 = vld [vmem:[%s8213_s29] sm:$0xff] }
 0xc73   : > { %v3193_v25 = vrot.slane %v7658_v37, %v7459_v41 }
 0xc74   : > { %v2930_v44 = vmul.f32 %v5462_v39, %v2922_v38  ;;  %v3185_v38 = vrot.slane %v7658_v37, %v7311_v28 }
 0xc75   : > { %v6364_v47 = vpop.eup %6363 }
 0xc76   : > { %v2923_v43 = vmul.f32 %v6364_v47, %v7572_v35  ;;  %v2938_v6 = vadd.f32 %v5463_v19, %v2930_v44  ;;  %v6272_v35 = vld [vmem:[%s8207_s16 + $0x48] ss:$16 sps:$4 sm:$0xff]   ;;  %v3189_v47 = vrot.slane %v7658_v37, %v7321_v42  ;;  %s8223_s16 = scalar_lea.vmem %s8222_s11, %s7112_s15 }
 0xc78   : > { %v2931_v45 = vmul.f32 %v5462_v39, %v2923_v43  ;;  %v3424_v39 = vpop.f32.mrf.mxu1 }
 0xc79   : > { %v3425_v44 = vadd.f32 %v3424_v39, %v3185_v38 }
 0xc7a   : > { %v2939_v50 = vadd.f32 %v5463_v19, %v2931_v45  ;;  %v3426_v43 = vpop.f32.mrf.mxu1 }
 0xc7b   : > { %v3427_v45 = vadd.f32 %v3426_v43, %v3189_v47 }
 0xc7c   : > { %v2940_v53 = vpack.c.bf16 %v2939_v50, %v2938_v6  ;;  %v3428_v19 = vpop.f32.mrf.mxu1 }
 0xc7d   : > { %v3429_v6 = vadd.f32 %v3428_v19, %v3185_v38 }
 0xc7e   : > { %5480 = vmatmul.mubr.msk.bf16.vlgmr.msra.gmra.mxu0 %vm1338_vm1, %v2940_v53  ;;  %v3430_v50 = vpop.f32.mrf.mxu1 }
 0xc7f   : > { %3114 = vmatpush1.bf16.msra.mxu0 %v6269_v52  ;;  %3137 = vmatprep.mubr.bf16.mxu0 %v6704_v34  ;;  %v3627_v52 = vpack.c.bf16 %v3429_v6, %v3425_v44 }
 0xc80   : > { %3115 = vmatprep.subr.bf16.mxu0 %v6274_v54 }
 0xc81   : > { %5850 = vmatpush3.bf16.xpose.msra.mxu1 %v3627_v52  ;;  %v1319_v52 = vld [vmem:[%s8215_s25] sm:$0x1] }
 0xc82   : > { %5855 = vmatprep.subr.bf16.mxu1 %v6705_v18  ;;  %vm1320_vm10 = vcmp.gt.f32.partialorder %v1319_v52, 0.5 }
 0xc83   : > { %3116 = vmatpush1.bf16.msra.mxu0 %v6272_v35 }
 0xc84   : > { %3117 = vmatprep.subr.bf16.mxu0 %v6277_v55  ;;  %v2957_v55 = vld [vmem:[%s8214_s9] sm:$0xf] }
 0xc85   : > { %v2962_v46 = vrot.slane %v2957_v55, %v7311_v28  ;;  %v2966_v61 = vrot.slane %v2957_v55, %v7321_v42  ;;  %v2970_v42 = vrot.slane %v2957_v55, %v7459_v41  ;;  %v2974_v4 = vrot.slane %v2957_v55, %v7327_v48 }
 0xc87   : > { %3118 = vmatpush1.bf16.msra.mxu0 %v6275_v56  ;;  %v3201_v56 = vrot.slane %v7658_v37, %v1453_v21 }
 0xc88   : > { %3119 = vmatprep.subr.bf16.mxu0 %v6280_v57 }
 0xc8b   : > { %3120 = vmatpush1.bf16.msra.mxu0 %v6278_v14 }
 0xc8c   : > { %3441 = vmatprep.subr.bf16.mxu0 %v5510_v29 }
 0xc8e   : > { %5481 = vmatmul.mubr.msk.bf16.vlgmr.msra.gmra.mxu0 %vm1338_vm1, %v2940_v53  ;;  %v3431_v53 = vadd.f32 %v3430_v50, %v3189_v47 }
 0xc8f   : > { %3442 = vmatpush1.bf16.msra.mxu0 %v5509_v62  ;;  %3465 = vmatprep.mubr.bf16.mxu0 %v6704_v34 }
 0xc90   : > { %3443 = vmatprep.subr.bf16.mxu0 %v5502_v63 }
 0xc93   : > { %3444 = vmatpush1.bf16.msra.mxu0 %v5501_v13 }
 0xc94   : > { %3445 = vmatprep.subr.bf16.mxu0 %v5494_v2 }
 0xc95   : > { %v3510_v54 = vpop.f32.mrf.mxu1 }
 0xc96   : > { %v3511_v29 = vadd.f32 %v3510_v54, %v3201_v56 }
 0xc97   : > { %3446 = vmatpush1.bf16.msra.mxu0 %v5493_v16  ;;  %v7670_v35 = vpop.f32.mrf.mxu1 }
 0xc98   : > { %3447 = vmatprep.subr.bf16.mxu0 %v5486_v17 }
 0xc99   : > { %v3514_v27 = vpop.f32.mrf.mxu1 }
 0xc9a   : > { %v3515_v24 = vadd.f32 %v3514_v27, %v3201_v56 }
 0xc9b   : > { %3448 = vmatpush1.bf16.msra.mxu0 %v5485_v3  ;;  %v7728_v54 = vpop.f32.mrf.mxu1 }
 0xc9c   : > { %3527 = vmatprep.subr.bf16.mxu0 %v5514_v5  ;;  %v3628_v13 = vpack.c.bf16 %v3515_v24, %v3511_v29 }
 0xc9e   : > { %5516 = vmatmul.mubr.msk.bf16.vlgmr.msra.gmra.mxu0 %vm1338_vm1, %v7590_v59 }
 0xc9f   : > { %3528 = vmatpush1.bf16.msra.mxu0 %v5513_v32  ;;  %3551 = vmatprep.mubr.bf16.mxu0 %v6704_v34 }
 0xca0   : > { %3529 = vmatprep.subr.bf16.mxu0 %v5506_v22 }
 0xca3   : > { %3530 = vmatpush1.bf16.msra.mxu0 %v5505_v60 }
 0xca4   : > { %3531 = vmatprep.subr.bf16.mxu0 %v5498_v58  ;;  %v3197_v58 = vrot.slane %v7658_v37, %v7327_v48  ;;  %v3209_v48 = vrot.slane %v7658_v37, %v1461_v49 }
 0xca7   : > { %3532 = vmatpush1.bf16.msra.mxu0 %v5497_v33 }
 0xca8   : > { %3533 = vmatprep.subr.bf16.mxu0 %v5490_v40 }
 0xcab   : > { %3534 = vmatpush1.bf16.msra.mxu0 %v5489_v36 }
 0xcac   : > { %5861 = vmatprep.subr.bf16.mxu0 %v6705_v18 }
 0xcae   : > { %5518 = vmatmul.mubr.msk.bf16.vlgmr.msra.gmra.mxu0 %vm1338_vm1, %v7590_v59  ;;  %v3749_v59 = vpack.c.bf16 %v3431_v53, %v3427_v45  ;;  %v3672_v53 = vsel %vm1320_vm10, 1, %v6704_v34 }
 0xcaf   : > { %5863 = vmatprep.mubr.msk.bf16.mxu0 %vm6706_vm2, %v6705_v18 }
 0xcb0   : > { %5862 = vmatpush3.bf16.xpose.msra.mxu0 %v3749_v59  ;;  %v3676_v59 = vrot.slane %v3672_v53, %v7311_v28 }
 0xcb1   : > { %5873 = vmatprep.subr.bf16.mxu0 %v6705_v18 }
 0xcb2   : > { %vm7732_vm11 = vcmp.eq.s32.totalorder %v3676_v59, 1 }
 0xd3e   : > { %v3096_v57 = vpop.f32.mrf.mxu0 }
 0xd3f   : > { %v3097_v63 = vadd.f32 %v3096_v57, %v2962_v46 }
 0xd40   : > { %v3098_v14 = vpop.f32.mrf.mxu0 }
 0xd41   : > { %v3099_v2 = vadd.f32 %v3098_v14, %v2966_v61 }
 0xd42   : > { %v3100_v62 = vpop.f32.mrf.mxu0 }
 0xd43   : > { %v3101_v0 = vadd.f32 %v3100_v62, %v2962_v46 }
 0xd44   : > { %v3102_v1 = vpop.f32.mrf.mxu0 }
 0xd45   : > { %v3626_v10 = vpack.c.bf16 %v3101_v0, %v3097_v63  ;;  %v3103_v15 = vadd.f32 %v3102_v1, %v2966_v61 }
 0xd47   : > { %v3748_v16 = vpack.c.bf16 %v3103_v15, %v3099_v2  ;;  %5852 = vmatmul.mubr.bf16.vlgmr.msra.gmra.mxu1 %v3626_v10 }
 0xd48   : > { %5856 = vmatpush3.bf16.msra.mxu1 %v3628_v13  ;;  %5857 = vmatprep.mubr.msk.bf16.mxu1 %vm6706_vm2, %v6705_v18 }
 0xd49   : > { %5864 = vmatmul.mubr.bf16.vlgmr.msra.gmra.mxu0 %v3748_v16  ;;  %5867 = vmatprep.subr.bf16.mxu1 %v6705_v18 }
 0xd4a   : > { %5889 = vmatprep.mubr.msk.bf16.mxu0 %vm6706_vm2, %v6705_v18 }
 0xd4e   : > { %v3139_v21 = vpop.f32.mrf.mxu0 }
 0xd4f   : > { %v7685_v3 = vadd.f32 %v3139_v21, %v2970_v42 }
 0xd50   : > { %v3141_v17 = vpop.f32.mrf.mxu0 }
 0xd51   : > { %v7689_v30 = vadd.f32 %v3141_v17, %v2974_v4 }
 0xd52   : > { %v3143_v11 = vpop.f32.mrf.mxu0 }
 0xd53   : > { %v7687_v5 = vadd.f32 %v3143_v11, %v2970_v42 }
 0xd54   : > { %v3145_v26 = vpop.f32.mrf.mxu0 }
 0xd55   : > { %v4042_v32 = vpack.c.bf16 %v7687_v5, %v7685_v3  ;;  %v7693_v22 = vadd.f32 %v3145_v26, %v2974_v4 }
 0xd57   : > { %v4249_v12 = vpack.c.bf16 %v7693_v22, %v7689_v30 }
 0xd5e   : > { %v3467_v60 = vpop.f32.mrf.mxu0 }
 0xd5f   : > { %v7701_v8 = vadd.f32 %v3467_v60, %v3193_v25 }
 0xd60   : > { %v3469_v51 = vpop.f32.mrf.mxu0 }
 0xd61   : > { %v7703_v40 = vadd.f32 %v3469_v51, %v3197_v58 }
 0xd62   : > { %v3471_v33 = vpop.f32.mrf.mxu0 }
 0xd63   : > { %v7705_v36 = vadd.f32 %v3471_v33, %v3193_v25 }
 0xd64   : > { %v3473_v38 = vpop.f32.mrf.mxu0 }
 0xd65   : > { %v4043_v39 = vpack.c.bf16 %v7705_v36, %v7701_v8  ;;  %v7709_v47 = vadd.f32 %v3473_v38, %v3197_v58 }
 0xd67   : > { %v4250_v41 = vpack.c.bf16 %v7709_v47, %v7703_v40 }
 0xd6e   : > { %v3553_v43 = vpop.f32.mrf.mxu0 }
 0xd6f   : > { %v7718_v19 = vadd.f32 %v3553_v43, %v3209_v48 }
 0xd70   : > { %v7716_v44 = vpop.f32.mrf.mxu0 }
 0xd72   : > { %v3557_v45 = vpop.f32.mrf.mxu0 }
 0xd73   : > { %v7720_v6 = vadd.f32 %v3557_v45, %v3209_v48 }
 0xd74   : > { %v7730_v49 = vpop.f32.mrf.mxu0 }
 0xd75   : > { %v4044_v50 = vpack.c.bf16 %v7720_v6, %v7718_v19 }
 0xe07   : > { %v3663_v55 = vpop.f32.mrf.mxu1 }
 0xe08   : > { %v3670_v57 = vmul.f32 0.25, %v3663_v55 }
 0xe09   : > { %v5853_v46 = vpop.f32.mrf.mxu1  ;;  %v3785_v27 = vpop.f32.mrf.mxu0 }
 0xe0a   : > { %v3792_v14 = vmul.f32 0.25, %v3785_v27  ;;  %v3678_v29 = vsel %vm7732_vm11, %v3670_v57, -1e+15  ;;  %v6283_v27 = vld [vmem:[%s7176_s27 + $0x78] sm:$0xff]  }
 0xe0b   : > { %v3666_v24 = vpop.f32.mrf.mxu1  ;;  %v5865_v34 = vpop.f32.mrf.mxu0  ;;  %v3680_v28 = vsel %vm2108_vm7, %v3678_v29, -inf  ;;  %5874 = vmatpush3.bf16.msra.mxu0 %v6283_v27 }
 0xe0c   : > { %v3671_v61 = vmul.f32 0.25, %v3666_v24  ;;  %3681 = vmax.xlane.f32.xlu0 %v3680_v28  ;;  %v3794_v62 = vsel %vm7732_vm11, %v3792_v14, -1e+15  ;;  %5875 = vmatprep.subr.bf16.mxu0 %v6705_v18  ;;  %v6285_v14 = vld [vmem:[%s7176_s27 + $0x70] sm:$0xff]   ;;  %v6289_v24 = vld [vmem:[%s7176_s27 + $0x60] sm:$0xff]   ;;  %v6291_v34 = vld [vmem:[%s7176_s27 + $0x58] sm:$0xff]  }
 0xe0d   : > { %v5854_v63 = vpop.f32.mrf.mxu1  ;;  %v3788_v0 = vpop.f32.mrf.mxu0  ;;  %v3796_v10 = vsel %vm2108_vm7, %v3794_v62, -inf }
 0xe0e   : > { %v3793_v1 = vmul.f32 0.25, %v3788_v0  ;;  %v3679_v13 = vsel %vm7732_vm11, %v3671_v61, -1e+15  ;;  %v3205_v0 = vrot.slane %v7658_v37, %v1457_v31 }
 0xe0f   : > { %v5866_v2 = vpop.f32.mrf.mxu0  ;;  %v3683_v15 = vsel %vm2108_vm7, %v3679_v13, -inf  ;;  %5876 = vmatpush3.bf16.msra.mxu0 %v6285_v14 }
 0xe10   : > { %3797 = vmax.xlane.f32.xlu0 %v3796_v10  ;;  %3684 = vmax.xlane.f32.xlu1 %v3683_v15  ;;  %v3795_v16 = vsel %vm7732_vm11, %v3793_v1, -1e+15  ;;  %v3513_v2 = vadd.f32 %v7670_v35, %v3205_v0  ;;  %v3517_v10 = vadd.f32 %v7728_v54, %v3205_v0  ;;  %v6281_v54 = vld [vmem:[%s7176_s27 + $0x38] sm:$0xff]  }
 0xe11   : > { %v3799_v21 = vsel %vm2108_vm7, %v3795_v16, -inf  ;;  %5877 = vmatprep.subr.bf16.mxu0 %v6705_v18 }
 0xe14   : > { %3800 = vmax.xlane.f32.xlu1 %v3799_v21 }
 0xe95   : > { %v3682_v42 = vpop.xlane.xlu0 %3681 }
 0xe96   : > { %v3686_v17 = vsub.f32 %v3678_v29, %v3682_v42  ;;  %v6287_v29 = vld [vmem:[%s7176_s27 + $0x68] sm:$0xff]  }
 0xe97   : > { %5878 = vmatpush3.bf16.msra.mxu0 %v6287_v29 }
 0xe98   : > { %v3688_v4 = vmul.f32 1.442695, %v3686_v17  ;;  %5879 = vmatprep.subr.bf16.mxu0 %v6705_v18  ;;  %v3750_v17 = vpack.c.bf16 %v3517_v10, %v3513_v2 }
 0xe99   : > { %v3798_v11 = vpop.xlane.xlu0 %3797  ;;  %v3685_v26 = vpop.xlane.xlu1 %3684 }
 0xe9a   : > { %6365 = vpow2.f32 %v3688_v4  ;;  %v3802_v25 = vsub.f32 %v3794_v62, %v3798_v11  ;;  %v3687_v60 = vsub.f32 %v3679_v13, %v3685_v26  ;;  %v6282_v26 = vld [vmem:[%s7176_s27 + $0x30] sm:$0xff]  }
 0xe9b   : > { %5880 = vmatpush3.bf16.msra.mxu0 %v6289_v24 }
 0xe9c   : > { %v3804_v58 = vmul.f32 1.442695, %v3802_v25  ;;  %v3690_v51 = vmul.f32 1.442695, %v3687_v60  ;;  %5881 = vmatprep.subr.bf16.mxu0 %v6705_v18  ;;  %v6284_v25 = vld [vmem:[%s7176_s27 + $0x28] sm:$0xff]   ;;  %v6286_v60 = vld [vmem:[%s7176_s27 + $0x20] sm:$0xff]  }
 0xe9d   : > { %v3801_v33 = vpop.xlane.xlu1 %3800 }
 0xe9e   : > { %6367 = vpow2.f32 %v3804_v58  ;;  %v3803_v38 = vsub.f32 %v3795_v16, %v3801_v33  ;;  %v6288_v58 = vld [vmem:[%s7176_s27 + $0x18] sm:$0xff]   ;;  %v6292_v33 = vld [vmem:[%s7176_s27 + $0x8] sm:$0xff]  }
 0xe9f   : > { %6369 = vpow2.f32 %v3690_v51  ;;  %5882 = vmatpush3.bf16.msra.mxu0 %v6291_v34  ;;  %v6290_v51 = vld [vmem:[%s7176_s27 + $0x10] sm:$0xff]  }
 0xea0   : > { %v3806_v48 = vmul.f32 1.442695, %v3803_v38  ;;  %5883 = vmatprep.subr.bf16.mxu0 %v6705_v18  ;;  %v6293_v38 = vld [vmem:[%s7176_s27 + $0x50] sm:$0xff]  }
 0xea2   : > { %6371 = vpow2.f32 %v3806_v48  ;;  %v6294_v48 = vld [vmem:[%s7176_s27] sm:$0xff]  }
 0xea3   : > { %5884 = vmatpush3.bf16.msra.mxu0 %v6293_v38  ;;  %v6302_v38 = vld [vmem:[%s7176_s27 + $0x90] sm:$0xff]  }
 0xea4   : > { %5885 = vmatprep.subr.bf16.mxu0 %v6705_v18 }
 0xea7   : > { %v6366_v43 = vpop.eup %6365 }
 0xea8   : > { %v3692_v45 = vsel %vm2108_vm7, %v6366_v43, 0.0 }
 0xea9   : > { %3693 = vadd.xlane.f32.xlu0 %v3692_v45  ;;  %v6296_v45 = vld [vmem:[%s7176_s27 + $0x40] sm:$0xff]  }
 0xeab   : > { %v6368_v52 = vpop.eup %6367 }
 0xeac   : > { %v6370_v53 = vpop.eup %6369  ;;  %v3808_v59 = vsel %vm2108_vm7, %v6368_v52, 0.0 }
 0xead   : > { %3809 = vadd.xlane.f32.xlu0 %v3808_v59  ;;  %v3695_v55 = vsel %vm2108_vm7, %v6370_v53, 0.0 }
 0xeae   : > { %3696 = vadd.xlane.f32.xlu1 %v3695_v55 }
 0xeaf   : > { %v6372_v57 = vpop.eup %6371 }
 0xeb0   : > { %v3811_v46 = vsel %vm2108_vm7, %v6372_v57, 0.0 }
 0xeb2   : > { %3812 = vadd.xlane.f32.xlu1 %v3811_v46 }
 0xf32   : > { %v3694_v28 = vpop.xlane.xlu0 %3693 }
 0xf33   : > { %6373 = vrcp.f32 %v3694_v28 }
 0xf36   : > { %v3810_v62 = vpop.xlane.xlu0 %3809 }
 0xf37   : > { %v3697_v61 = vpop.xlane.xlu1 %3696 }
 0xf38   : > { %6375 = vrcp.f32 %v3697_v61 }
 0xf3b   : > { %v3813_v63 = vpop.xlane.xlu1 %3812 }
 0xf3c   : > { %6377 = vrcp.f32 %v3813_v63 }
 0xf3d   : > { %6379 = vrcp.f32 %v3810_v62 }
 0xf40   : > { %v6374_v1 = vpop.eup %6373 }
 0xf41   : > { %v3700_v15 = vmul.f32 %v6374_v1, %v6366_v43  ;;  %v6295_v43 = vld [vmem:[%s7176_s27 + $0x48] sm:$0xff]  }
 0xf42   : > { %5886 = vmatpush3.bf16.msra.mxu0 %v6295_v43 }
 0xf43   : > { %5887 = vmatprep.subr.bf16.mxu0 %v6705_v18 }
 0xf45   : > { %v6376_v13 = vpop.eup %6375 }
 0xf46   : > { %v3701_v16 = vmul.f32 %v6376_v13, %v6370_v53  ;;  %5888 = vmatpush3.bf16.msra.mxu0 %v6296_v45 }
 0xf47   : > { %5913 = vmatprep.subr.bf16.mxu0 %v6705_v18 }
 0xf48   : > { %v3702_v21 = vpack.c.bf16 %v3701_v16, %v3700_v15 }
 0xf49   : > { %v6378_v42 = vpop.eup %6377 }
 0xf4a   : > { %5858 = vmatmul.mubr.msk.bf16.vlgmr.msra.gmra.mxu1 %vm2108_vm7, %v3702_v21  ;;  %v6380_v4 = vpop.eup %6379  ;;  %v3817_v31 = vmul.f32 %v6378_v42, %v6372_v57 }
 0xf4b   : > { %5868 = vmatpush3.bf16.msra.mxu1 %v3750_v17  ;;  %5869 = vmatprep.mubr.msk.bf16.mxu1 %vm6706_vm2, %v6705_v18  ;;  %v3816_v35 = vmul.f32 %v6380_v4, %v6368_v52 }
 0xf4c   : > { %5893 = vmatprep.subr.bf16.mxu1 %v6705_v18 }
 0xf4d   : > { %v3818_v11 = vpack.c.bf16 %v3817_v31, %v3816_v35 }
 0xf52   : > { %5870 = vmatmul.mubr.msk.bf16.vlgmr.msra.gmra.mxu1 %vm2108_vm7, %v3818_v11 }
 0xf53   : > { %5894 = vmatpush3.bf16.msra.mxu1 %v6281_v54  ;;  %5909 = vmatprep.mubr.msk.bf16.mxu1 %vm6706_vm2, %v6705_v18 }
 0xf54   : > { %5895 = vmatprep.subr.bf16.mxu1 %v6705_v18 }
 0xf57   : > { %5896 = vmatpush3.bf16.msra.mxu1 %v6282_v26 }
 0xf58   : > { %5897 = vmatprep.subr.bf16.mxu1 %v6705_v18 }
 0xf5b   : > { %5898 = vmatpush3.bf16.msra.mxu1 %v6284_v25  ;;  %v6297_v25 = vld [vmem:[%s7176_s27 + $0xb8] sm:$0xff]  }
 0xf5c   : > { %5899 = vmatprep.subr.bf16.mxu1 %v6705_v18 }
 0xf5f   : > { %5900 = vmatpush3.bf16.msra.mxu1 %v6286_v60  ;;  %v6298_v60 = vld [vmem:[%s7176_s27 + $0xb0] sm:$0xff]  }
 0xf60   : > { %5901 = vmatprep.subr.bf16.mxu1 %v6705_v18 }
 0xf63   : > { %5902 = vmatpush3.bf16.msra.mxu1 %v6288_v58  ;;  %v6299_v58 = vld [vmem:[%s7176_s27 + $0xa8] sm:$0xff]  }
 0xf64   : > { %5903 = vmatprep.subr.bf16.mxu1 %v6705_v18 }
 0xf67   : > { %5904 = vmatpush3.bf16.msra.mxu1 %v6290_v51  ;;  %v6300_v51 = vld [vmem:[%s7176_s27 + $0xa0] sm:$0xff]  }
 0xf68   : > { %5905 = vmatprep.subr.bf16.mxu1 %v6705_v18 }
 0xf6b   : > { %5906 = vmatpush3.bf16.msra.mxu1 %v6292_v33  ;;  %v6301_v33 = vld [vmem:[%s7176_s27 + $0x98] sm:$0xff]  }
 0xf6c   : > { %5907 = vmatprep.subr.bf16.mxu1 %v6705_v18 }
 0xf6f   : > { %5908 = vmatpush3.bf16.msra.mxu1 %v6294_v48 }
 0xf70   : > { %5919 = vmatprep.subr.bf16.mxu1 %v6705_v18 }
0x100a   : > { %v3740_v52 = vpop.f32.mrf.mxu1 }
0x100c   : > { %v5859_v53 = vpop.f32.mrf.mxu1 }
0x100e   : > { %v3743_v59 = vpop.f32.mrf.mxu1 }
0x100f   : > { %v3747_v55 = vpack.c.bf16 %v3743_v59, %v3740_v52 }
0x1010   : > { %v5860_v57 = vpop.f32.mrf.mxu1 }
0x1011   : > { %5910 = vmatmul.mubr.bf16.vlgmr.msra.gmra.mxu1 %v3747_v55  ;;  %v3213_v57 = vrot.slane %v7658_v37, %v1465_v9  ;;  %v6304_v9 = vld [vmem:[%s7176_s27 + $0x80] sm:$0xff]  }
0x1012   : > { %5920 = vmatpush3.bf16.msra.mxu1 %v4044_v50  ;;  %v3856_v46 = vpop.f32.mrf.mxu1  ;;  %5921 = vmatprep.mubr.msk.bf16.mxu1 %vm6706_vm2, %v6705_v18 }
0x1013   : > { %5945 = vmatprep.subr.bf16.mxu1 %v6705_v18 }
0x1014   : > { %v5871_v27 = vpop.f32.mrf.mxu1 }
0x1015   : > { %v3560_v27 = vadd.f32 %v7730_v49, %v3213_v57 }
0x1016   : > { %v3859_v14 = vpop.f32.mrf.mxu1 }
0x1017   : > { %v3863_v29 = vpack.c.bf16 %v3859_v14, %v3856_v46  ;;  %v3556_v46 = vadd.f32 %v7716_v44, %v3213_v57 }
0x1018   : > { %v5872_v24 = vpop.f32.mrf.mxu1 }
0x1019   : > { %5890 = vmatmul.mubr.bf16.vlgmr.msra.gmra.mxu0 %v3863_v29  ;;  %v4251_v14 = vpack.c.bf16 %v3560_v27, %v3556_v46 }
0x101a   : > { %5914 = vmatpush3.bf16.xpose.msra.mxu0 %v4043_v39  ;;  %5915 = vmatprep.mubr.msk.bf16.mxu0 %vm6706_vm2, %v6705_v18 }
0x101b   : > { %5925 = vmatprep.subr.bf16.mxu0 %v6705_v18 }
0x1021   : > { %5916 = vmatmul.mubr.bf16.vlgmr.msra.gmra.mxu0 %v4042_v32 }
0x1022   : > { %5941 = vmatprep.mubr.msk.bf16.mxu0 %vm6706_vm2, %v6705_v18  ;;  %5926 = vmatpush3.bf16.msra.mxu0 %v6297_v25  ;;  %v6309_v25 = vld [vmem:[%s7176_s27 + $0xd8] sm:$0xff]  }
0x1023   : > { %5927 = vmatprep.subr.bf16.mxu0 %v6705_v18 }
0x1026   : > { %5928 = vmatpush3.bf16.msra.mxu0 %v6298_v60  ;;  %v6310_v60 = vld [vmem:[%s7176_s27 + $0xd0] sm:$0xff]  }
0x1027   : > { %5929 = vmatprep.subr.bf16.mxu0 %v6705_v18 }
0x102a   : > { %5930 = vmatpush3.bf16.msra.mxu0 %v6299_v58  ;;  %v6311_v58 = vld [vmem:[%s7176_s27 + $0xc8] sm:$0xff]  }
0x102b   : > { %5931 = vmatprep.subr.bf16.mxu0 %v6705_v18 }
0x102e   : > { %5932 = vmatpush3.bf16.msra.mxu0 %v6300_v51  ;;  %v6312_v51 = vld [vmem:[%s7176_s27 + $0xc0] sm:$0xff]  }
0x102f   : > { %5933 = vmatprep.subr.bf16.mxu0 %v6705_v18 }
0x1032   : > { %5934 = vmatpush3.bf16.msra.mxu0 %v6301_v33 }
0x1033   : > { %5935 = vmatprep.subr.bf16.mxu0 %v6705_v18 }
0x1036   : > { %5936 = vmatpush3.bf16.msra.mxu0 %v6302_v38 }
0x1037   : > { %5937 = vmatprep.subr.bf16.mxu0 %v6705_v18 }
0x103a   : > { %5938 = vmatpush3.bf16.msra.mxu0 %v6303_v20 }
0x103b   : > { %5939 = vmatprep.subr.bf16.mxu0 %v6705_v18 }
0x103e   : > { %5940 = vmatpush3.bf16.msra.mxu0 %v6304_v9 }
0x103f   : > { %5977 = vmatprep.subr.bf16.mxu0 %v6705_v18 }
0x10d1   : > { %v4035_v19 = vpop.f32.mrf.mxu1 }
0x10d3   : > { %v5911_v6 = vpop.f32.mrf.mxu1 }
0x10d5   : > { %v4038_v50 = vpop.f32.mrf.mxu1 }
0x10d7   : > { %v5912_v34 = vpop.f32.mrf.mxu1 }
0x10d9   : > { %v3946_v28 = vpop.f32.mrf.mxu0 }
0x10da   : > { %v7813_v61 = vadd.f32 %v4035_v19, %v3946_v28 }
0x10db   : > { %v5891_v8 = vpop.f32.mrf.mxu0 }
0x10dd   : > { %v3949_v36 = vpop.f32.mrf.mxu0 }
0x10de   : > { %v7815_v39 = vadd.f32 %v4038_v50, %v3949_v36 }
0x10df   : > { %v5892_v62 = vpop.f32.mrf.mxu0 }
0x10e1   : > { %v4079_v63 = vpop.f32.mrf.mxu0 }
0x10e2   : > { %v4086_v0 = vmul.f32 0.25, %v4079_v63 }
0x10e3   : > { %v5917_v1 = vpop.f32.mrf.mxu0 }
0x10e4   : > { %v4088_v3 = vsel %vm7732_vm11, %v4086_v0, -1e+15 }
0x10e5   : > { %v4082_v5 = vpop.f32.mrf.mxu0  ;;  %v4090_v32 = vsel %vm2108_vm7, %v4088_v3, -inf }
0x10e6   : > { %v4087_v13 = vmul.f32 0.25, %v4082_v5  ;;  %4091 = vmax.xlane.f32.xlu0 %v4090_v32 }
0x10e7   : > { %v5918_v2 = vpop.f32.mrf.mxu0 }
0x10e8   : > { %v4089_v10 = vsel %vm7732_vm11, %v4087_v13, -1e+15 }
0x10e9   : > { %v4093_v15 = vsel %vm2108_vm7, %v4089_v10, -inf }
0x10ea   : > { %4094 = vmax.xlane.f32.xlu1 %v4093_v15 }
0x116f   : > { %v4092_v16 = vpop.xlane.xlu0 %4091 }
0x1170   : > { %v4096_v21 = vsub.f32 %v4088_v3, %v4092_v16 }
0x1172   : > { %v4098_v42 = vmul.f32 1.442695, %v4096_v21 }
0x1173   : > { %v4095_v17 = vpop.xlane.xlu1 %4094 }
0x1174   : > { %6381 = vpow2.f32 %v4098_v42  ;;  %v4097_v4 = vsub.f32 %v4089_v10, %v4095_v17 }
0x1176   : > { %v4100_v31 = vmul.f32 1.442695, %v4097_v4 }
0x1178   : > { %6383 = vpow2.f32 %v4100_v31 }
0x1181   : > { %v6382_v35 = vpop.eup %6381 }
0x1182   : > { %v4102_v54 = vsel %vm2108_vm7, %v6382_v35, 0.0 }
0x1183   : > { %4103 = vadd.xlane.f32.xlu0 %v4102_v54  ;;  %v6305_v54 = vld [vmem:[%s7176_s27 + $0xf8] sm:$0xff]  }
0x1185   : > { %v6384_v11 = vpop.eup %6383 }
0x1186   : > { %v4105_v26 = vsel %vm2108_vm7, %v6384_v11, 0.0 }
0x1187   : > { %4106 = vadd.xlane.f32.xlu1 %v4105_v26  ;;  %v6308_v26 = vld [vmem:[%s7176_s27 + $0xe0] sm:$0xff]  }
0x120c   : > { %v4104_v48 = vpop.xlane.xlu0 %4103 }
0x120d   : > { %6385 = vrcp.f32 %v4104_v48 }
0x1210   : > { %v4107_v43 = vpop.xlane.xlu1 %4106 }
0x1211   : > { %6387 = vrcp.f32 %v4107_v43 }
0x121a   : > { %v6386_v45 = vpop.eup %6385 }
0x121b   : > { %v4110_v53 = vmul.f32 %v6386_v45, %v6382_v35 }
0x121e   : > { %v6388_v52 = vpop.eup %6387 }
0x121f   : > { %v4111_v59 = vmul.f32 %v6388_v52, %v6384_v11 }
0x1221   : > { %v4112_v55 = vpack.c.bf16 %v4111_v59, %v4110_v53  ;;  %v5555_v59 = vld [vmem:[%s8219_s18] ss:$0 sm:$0xff] }
0x1223   : > { %5922 = vmatmul.mubr.msk.bf16.vlgmr.msra.gmra.mxu1 %vm2108_vm7, %v4112_v55 }
0x1224   : > { %5946 = vmatpush3.bf16.xpose.msra.mxu1 %v4250_v41  ;;  %5947 = vmatprep.mubr.msk.bf16.mxu1 %vm6706_vm2, %v6705_v18 }
0x1225   : > { %5951 = vmatprep.subr.bf16.mxu1 %v6705_v18 }
0x122b   : > { %5948 = vmatmul.mubr.bf16.vlgmr.msra.gmra.mxu1 %v4249_v12 }
0x122c   : > { %5952 = vmatpush3.bf16.msra.mxu1 %v4251_v14  ;;  %5953 = vmatprep.mubr.msk.bf16.mxu1 %vm6706_vm2, %v6705_v18 }
0x122d   : > { %5957 = vmatprep.subr.bf16.mxu1 %v6705_v18 }
0x12e3   : > { %v4150_v37 = vpop.f32.mrf.mxu1 }
0x12e5   : > { %v5923_v40 = vpop.f32.mrf.mxu1 }
0x12e7   : > { %v4153_v47 = vpop.f32.mrf.mxu1 }
0x12e8   : > { %v4157_v41 = vpack.c.bf16 %v4153_v47, %v4150_v37 }
0x12e9   : > { %v5924_v30 = vpop.f32.mrf.mxu1 }
0x12ea   : > { %5942 = vmatmul.mubr.bf16.vlgmr.msra.gmra.mxu0 %v4157_v41 }
0x12eb   : > { %v4286_v22 = vpop.f32.mrf.mxu1  ;;  %5985 = vmatprep.mubr.msk.bf16.mxu0 %vm6706_vm2, %v6705_v18 }
0x12ec   : > { %v4293_v12 = vmul.f32 0.25, %v4286_v22 }
0x12ed   : > { %v5949_v44 = vpop.f32.mrf.mxu1 }
0x12ee   : > { %v4295_v49 = vsel %vm7732_vm11, %v4293_v12, -1e+15 }
0x12ef   : > { %v4289_v29 = vpop.f32.mrf.mxu1  ;;  %v4297_v24 = vsel %vm2108_vm7, %v4295_v49, -inf }
0x12f0   : > { %v4294_v19 = vmul.f32 0.25, %v4289_v29  ;;  %4298 = vmax.xlane.f32.xlu0 %v4297_v24 }
0x12f1   : > { %v5950_v6 = vpop.f32.mrf.mxu1 }
0x12f2   : > { %v4296_v50 = vsel %vm7732_vm11, %v4294_v19, -1e+15  ;;  %v6313_v19 = vld [vmem:[%s7194_s3 + $0x18] sm:$0xff]   ;;  %v6314_v6 = vld [vmem:[%s7194_s3 + $0x10] sm:$0xff]  }
0x12f3   : > { %v4300_v34 = vsel %vm2108_vm7, %v4296_v50, -inf  ;;  %5978 = vmatpush3.bf16.msra.mxu0 %v6313_v19 }
0x12f4   : > { %4301 = vmax.xlane.f32.xlu1 %v4300_v34  ;;  %5979 = vmatprep.subr.bf16.mxu0 %v6705_v18  ;;  %v6316_v34 = vld [vmem:[%s7194_s3] sm:$0xff]  }
0x12f7   : > { %5980 = vmatpush3.bf16.msra.mxu0 %v6314_v6 }
0x12f8   : > { %5981 = vmatprep.subr.bf16.mxu0 %v6705_v18 }
0x1379   : > { %v4299_v28 = vpop.xlane.xlu0 %4298 }
0x137a   : > { %v4303_v8 = vsub.f32 %v4295_v49, %v4299_v28 }
0x137c   : > { %v4305_v36 = vmul.f32 1.442695, %v4303_v8 }
0x137d   : > { %v4302_v62 = vpop.xlane.xlu1 %4301 }
0x137e   : > { %6389 = vpow2.f32 %v4305_v36  ;;  %v4304_v63 = vsub.f32 %v4296_v50, %v4302_v62  ;;  %v6315_v50 = vld [vmem:[%s7194_s3 + $0x8] sm:$0xff]  }
0x137f   : > { %5982 = vmatpush3.bf16.msra.mxu0 %v6315_v50 }
0x1380   : > { %v4307_v0 = vmul.f32 1.442695, %v4304_v63  ;;  %5983 = vmatprep.subr.bf16.mxu0 %v6705_v18 }
0x1382   : > { %6391 = vpow2.f32 %v4307_v0 }
0x1383   : > { %5984 = vmatpush3.bf16.msra.mxu0 %v6316_v34 }
0x1384   : > { %5989 = vmatprep.subr.bf16.mxu0 %v6705_v18 }
0x138b   : > { %v6390_v1 = vpop.eup %6389 }
0x138c   : > { %v4309_v3 = vsel %vm2108_vm7, %v6390_v1, 0.0 }
0x138d   : > { %4310 = vadd.xlane.f32.xlu0 %v4309_v3 }
0x138f   : > { %v6392_v5 = vpop.eup %6391 }
0x1390   : > { %v4312_v32 = vsel %vm2108_vm7, %v6392_v5, 0.0 }
0x1391   : > { %4313 = vadd.xlane.f32.xlu1 %v4312_v32 }
0x13aa   : > { %v4240_v56 = vpop.f32.mrf.mxu0 }
0x13ab   : > { %v4247_v13 = vadd.f32 %v4240_v56, %v7813_v61  ;;  %v6306_v61 = vld [vmem:[%s7176_s27 + $0xf0] sm:$0xff]  }
0x13ac   : > { %v5943_v2 = vpop.f32.mrf.mxu0 }
0x13ad   : > { %v5557_v2 = vld [vmem:[%s8223_s16] ss:$0 sm:$0xff] }
0x13ae   : > { %v4243_v10 = vpop.f32.mrf.mxu0 }
0x13af   : > { %v4248_v15 = vadd.f32 %v4243_v10, %v7815_v39  ;;  %v6307_v39 = vld [vmem:[%s7176_s27 + $0xe8] sm:$0xff]   ;;  %s8229_s27 = sld [smem:[#allocation66_spill]] (!%p5573_p12) }
0x13b0   : > { %v5944_v16 = vpop.f32.mrf.mxu0 }
0x1416   : > { %v4311_v21 = vpop.xlane.xlu0 %4310 }
0x1417   : > { %6393 = vrcp.f32 %v4311_v21  ;;  %v6317_v21 = vld [vmem:[%s7208_s24 + $0x38] sm:$0xff]  }
0x141a   : > { %v4314_v42 = vpop.xlane.xlu1 %4313 }
0x141b   : > { %6395 = vrcp.f32 %v4314_v42 }
0x1424   : > { %v6394_v17 = vpop.eup %6393 }
0x1425   : > { %v4317_v31 = vmul.f32 %v6394_v17, %v6390_v1  ;;  %v6318_v17 = vld [vmem:[%s7208_s24 + $0x30] sm:$0xff]  }
0x1428   : > { %v6396_v4 = vpop.eup %6395 }
0x1429   : > { %v4318_v35 = vmul.f32 %v6396_v4, %v6392_v5  ;;  %v5556_v5 = vld [vmem:[%s8221_s1] ss:$0 sm:$0xff]  ;;  %v6319_v4 = vld [vmem:[%s7208_s24 + $0x28] sm:$0xff]  }
0x142b   : > { %v4319_v11 = vpack.c.bf16 %v4318_v35, %v4317_v31  ;;  %v6320_v31 = vld [vmem:[%s7208_s24 + $0x20] sm:$0xff]   ;;  %v6321_v35 = vld [vmem:[%s7208_s24 + $0x18] sm:$0xff]  }
0x142d   : > { %5954 = vmatmul.mubr.msk.bf16.vlgmr.msra.gmra.mxu1 %vm2108_vm7, %v4319_v11  ;;  %v6323_v11 = vld [vmem:[%s7208_s24 + $0x8] sm:$0xff]  }
0x142e   : > { %5958 = vmatpush3.bf16.msra.mxu1 %v6305_v54  ;;  %5973 = vmatprep.mubr.msk.bf16.mxu1 %vm6706_vm2, %v6705_v18  ;;  %v6322_v54 = vld [vmem:[%s7208_s24 + $0x10] sm:$0xff]  }
0x142f   : > { %5959 = vmatprep.subr.bf16.mxu1 %v6705_v18 }
0x1432   : > { %5960 = vmatpush3.bf16.msra.mxu1 %v6306_v61  ;;  %v6324_v61 = vld [vmem:[%s7208_s24] sm:$0xff]  }
0x1433   : > { %5961 = vmatprep.subr.bf16.mxu1 %v6705_v18 }
0x1436   : > { %5962 = vmatpush3.bf16.msra.mxu1 %v6307_v39  ;;  %v5558_v39 = vld [vmem:[%s1294_s2] ss:$0 sm:$0xff]  ;;  %s8226_s2 = sld [smem:[#allocation68_spill]] (!%p5573_p12) }
0x1437   : > { %5963 = vmatprep.subr.bf16.mxu1 %v6705_v18 }
0x143a   : > { %5964 = vmatpush3.bf16.msra.mxu1 %v6308_v26 }
0x143b   : > { %5965 = vmatprep.subr.bf16.mxu1 %v6705_v18 }
0x143c   : > { %s8227_s23 = smov (!%p5573_p12), %s8226_s2 }
0x143e   : > { %5966 = vmatpush3.bf16.msra.mxu1 %v6309_v25 }
0x143f   : > { %5967 = vmatprep.subr.bf16.mxu1 %v6705_v18 }
0x1442   : > { %5968 = vmatpush3.bf16.msra.mxu1 %v6310_v60 }
0x1443   : > { %5969 = vmatprep.subr.bf16.mxu1 %v6705_v18 }
0x1446   : > { %5970 = vmatpush3.bf16.msra.mxu1 %v6311_v58 }
0x1447   : > { %5971 = vmatprep.subr.bf16.mxu1 %v6705_v18 }
0x144a   : > { %5972 = vmatpush3.bf16.msra.mxu1 %v6312_v51 }
0x14ed   : > { %v4357_v33 = vpop.f32.mrf.mxu1 }
0x14ef   : > { %v5955_v38 = vpop.f32.mrf.mxu1 }
0x14f1   : > { %v4360_v48 = vpop.f32.mrf.mxu1 }
0x14f2   : > { %v4364_v43 = vpack.c.bf16 %v4360_v48, %v4357_v33 }
0x14f3   : > { %v5956_v45 = vpop.f32.mrf.mxu1 }
0x14f4   : > { %5974 = vmatmul.mubr.bf16.vlgmr.msra.gmra.mxu1 %v4364_v43 }
0x15b4   : > { %v4447_v52 = vpop.f32.mrf.mxu1 }
0x15b5   : > { %v4454_v53 = vadd.f32 %v4447_v52, %v4247_v13 }
0x15b6   : > { %v5975_v55 = vpop.f32.mrf.mxu1 }
0x15b7   : > { %v4456_v57 = vadd.f32 %v4454_v53, %v7558_v7 }
0x15b8   : > { %v4450_v46 = vpop.f32.mrf.mxu1 }
0x15b9   : > { %v7895_v27 = vadd.f32 %v5555_v59, %v4456_v57  ;;  %v4455_v14 = vadd.f32 %v4450_v46, %v4248_v15 }
0x15ba   : > { %v5976_v20 = vpop.f32.mrf.mxu1 }
0x15bb   : > { %v4457_v9 = vadd.f32 %v4455_v14, %v7562_v23  ;;  %v4469_v37 = vsel %vm1338_vm1, %v7895_v27, 0.0 }
0x15bc   : > { %4470 = vadd.xlane.f32.xlu0 %v4469_v37 }
0x15bd   : > { %v7900_v40 = vadd.f32 %v5555_v59, %v4457_v9 }
0x15bf   : > { %v4472_v47 = vsel %vm1338_vm1, %v7900_v40, 0.0 }
0x15c0   : > { %4473 = vadd.xlane.f32.xlu1 %v4472_v47 }
0x1645   : > { %v4471_v7 = vpop.xlane.xlu0 %4470 }
0x1646   : > { %v4475_v41 = vmul.f32 0.015625, %v4471_v7 }
0x1648   : > { %v4477_v30 = vsub.f32 %v7895_v27, %v4475_v41 }
0x1649   : > { %v4474_v22 = vpop.xlane.xlu1 %4473 }
0x164a   : > { %v4476_v12 = vmul.f32 0.015625, %v4474_v22  ;;  %v4479_v23 = vmul.f32 %v4477_v30, %v4477_v30 }
0x164c   : > { %v4478_v44 = vsub.f32 %v7900_v40, %v4476_v12  ;;  %v4481_v49 = vsel %vm1338_vm1, %v4479_v23, 0.0 }
0x164d   : > { %4482 = vadd.xlane.f32.xlu0 %v4481_v49 }
0x164e   : > { %v4480_v29 = vmul.f32 %v4478_v44, %v4478_v44 }
0x1650   : > { %v4484_v24 = vsel %vm1338_vm1, %v4480_v29, 0.0 }
0x1651   : > { %4485 = vadd.xlane.f32.xlu1 %v4484_v24 }
0x16d6   : > { %v4483_v28 = vpop.xlane.xlu0 %4482 }
0x16d7   : > { %v4487_v8 = vmul.f32 0.015625, %v4483_v28 }
0x16d9   : > { %v4489_v36 = vadd.f32 1e-05, %v4487_v8 }
0x16da   : > { %v4486_v62 = vpop.xlane.xlu1 %4485 }
0x16db   : > { %6397 = vrsqrt.f32 %v4489_v36  ;;  %v4488_v63 = vmul.f32 0.015625, %v4486_v62 }
0x16dd   : > { %v4490_v0 = vadd.f32 1e-05, %v4488_v63 }
0x16df   : > { %6399 = vrsqrt.f32 %v4490_v0 }
0x16e8   : > { %v6398_v1 = vpop.eup %6397 }
0x16e9   : > { %v4493_v3 = vmul.f32 %v6398_v1, %v4477_v30 }
0x16eb   : > { %v4501_v13 = vmul.f32 %v5556_v5, %v4493_v3 }
0x16ec   : > { %v6400_v32 = vpop.eup %6399 }
0x16ed   : > { %v4494_v56 = vmul.f32 %v6400_v32, %v4478_v44  ;;  %v4509_v15 = vadd.f32 %v5557_v2, %v4501_v13 }
0x16ef   : > { %v4502_v10 = vmul.f32 %v5556_v5, %v4494_v56 }
0x16f1   : > { %v4510_v16 = vadd.f32 %v5557_v2, %v4502_v10 }
0x16f3   : > { %v4511_v42 = vpack.c.bf16 %v4510_v16, %v4509_v15 }
0x16f5   : > { %5986 = vmatmul.mubr.msk.bf16.vlgmr.msra.gmra.mxu0 %vm1338_vm1, %v4511_v42 }
0x16f6   : > { %5990 = vmatpush3.bf16.msra.mxu0 %v6317_v21  ;;  %6005 = vmatprep.mubr.msk.bf16.mxu0 %vm6706_vm2, %v6705_v18 }
0x16f7   : > { %5991 = vmatprep.subr.bf16.mxu0 %v6705_v18 }
0x16fa   : > { %5992 = vmatpush3.bf16.msra.mxu0 %v6318_v17 }
0x16fb   : > { %5993 = vmatprep.subr.bf16.mxu0 %v6705_v18 }
0x16fe   : > { %5994 = vmatpush3.bf16.msra.mxu0 %v6319_v4 }
0x16ff   : > { %5995 = vmatprep.subr.bf16.mxu0 %v6705_v18 }
0x1702   : > { %5996 = vmatpush3.bf16.msra.mxu0 %v6320_v31 }
0x1703   : > { %5997 = vmatprep.subr.bf16.mxu0 %v6705_v18 }
0x1706   : > { %5998 = vmatpush3.bf16.msra.mxu0 %v6321_v35 }
0x1707   : > { %5999 = vmatprep.subr.bf16.mxu0 %v6705_v18 }
0x170a   : > { %6000 = vmatpush3.bf16.msra.mxu0 %v6322_v54 }
0x170b   : > { %6001 = vmatprep.subr.bf16.mxu0 %v6705_v18 }
0x170e   : > { %6002 = vmatpush3.bf16.msra.mxu0 %v6323_v11 }
0x170f   : > { %6003 = vmatprep.subr.bf16.mxu0 %v6705_v18  ;;  %v5572_v18 = vld [vmem:[%s1302_s5] ss:$0 sm:$0xff] }
0x1712   : > { %6004 = vmatpush3.bf16.msra.mxu0 %v6324_v61 }
0x17b5   : > { %v4588_v26 = vpop.f32.mrf.mxu0 }
0x17b6   : > { %v4589_v60 = vadd.f32 %v5558_v39, %v4588_v26 }
0x17b7   : > { %v5987_v25 = vpop.f32.mrf.mxu0 }
0x17b8   : > { %v4595_v38 = vmax.f32 %v4589_v60, 0.0 }
0x17b9   : > { %v4591_v58 = vpop.f32.mrf.mxu0 }
0x17ba   : > { %v4592_v51 = vadd.f32 %v5558_v39, %v4591_v58 }
0x17bb   : > { %v5988_v33 = vpop.f32.mrf.mxu0 }
0x17bc   : > { %v4596_v48 = vmax.f32 %v4592_v51, 0.0 }
0x17be   : > { %v4597_v43 = vpack.c.bf16 %v4596_v48, %v4595_v38 }
0x17c0   : > { %6006 = vmatmul.mubr.bf16.vlgmr.msra.gmra.mxu0 %v4597_v43 }
0x1880   : > { %v4696_v45 = vpop.f32.mrf.mxu0 }
0x1881   : > { %v4703_v52 = vadd.f32 %v4696_v45, %v7895_v27 }
0x1882   : > { %v6007_v53 = vpop.f32.mrf.mxu0 }
0x1883   : > { %v4712_v59 = vadd.f32 %v5572_v18, %v4703_v52 }
0x1884   : > { %v4699_v55 = vpop.f32.mrf.mxu0 }
0x1885   : > { %4714 = vst.msk [vmem:[#allocation2] sm:$0xff] %vm1338_vm1, %v4712_v59  ;;  %v4704_v57 = vadd.f32 %v4699_v55, %v7900_v40  ;;  %4719 = sbr.rel (%p5573_p12) target bundleno = 7132 (0x1bdc), region = 156 }
0x1886   : > { %v6008_v46 = vpop.f32.mrf.mxu0 }
0x1887   : > { %v4713_v14 = vadd.f32 %v5572_v18, %v4704_v57 }
0x1889   : > { %4715 = vst.msk [vmem:[#allocation2 + $0x8] sm:$0xff] %vm1338_vm1, %v4713_v14 }
0x188a   : > { %v4722_v20 = vsel %vm1338_vm1, %v4712_v59, 0.0  ;;  %v4725_v9 = vsel %vm1338_vm1, %v4713_v14, 0.0  ;;  %v4798_v44 = vld [vmem:[%s8226_s2] sm:$0xff]  ;;  %v4800_v49 = vld [vmem:[%s8227_s23 + $0x8] sm:$0xff]  ;;  %v4802_v29 = vld [vmem:[%s8227_s23 + $0x10] sm:$0xff] }
0x188b   : > { %4723 = vadd.xlane.f32.xlu0 %v4722_v20  ;;  %4799 = vst [vmem:[#allocation3] sm:$0xff] %v4798_v44  ;;  %4801 = vst [vmem:[#allocation3 + $0x8] sm:$0xff] %v4800_v49  ;;  %v4804_v24 = vld [vmem:[%s8227_s23 + $0x18] sm:$0xff]  ;;  %v5574_v63 = vld [vmem:[%s8228_s8] ss:$0 sm:$0xff] }
0x188c   : > { %4803 = vst [vmem:[#allocation3 + $0x10] sm:$0xff] %v4802_v29  ;;  %4805 = vst [vmem:[#allocation3 + $0x18] sm:$0xff] %v4804_v24  ;;  %v5575_v5 = vld [vmem:[%s8229_s27] ss:$0 sm:$0xff] }
0x188f   : > { %4726 = vadd.xlane.f32.xlu0 %v4725_v9 }
0x1914   : > { %v4724_v27 = vpop.xlane.xlu0 %4723 }
0x1915   : > { %v4728_v37 = vmul.f32 0.015625, %v4724_v27 }
0x1917   : > { %v4730_v47 = vsub.f32 %v4712_v59, %v4728_v37 }
0x1918   : > { %v4727_v7 = vpop.xlane.xlu0 %4726 }
0x1919   : > { %v4729_v41 = vmul.f32 0.015625, %v4727_v7  ;;  %v4732_v30 = vmul.f32 %v4730_v47, %v4730_v47 }
0x191b   : > { %v4731_v40 = vsub.f32 %v4713_v14, %v4729_v41  ;;  %v4734_v22 = vsel %vm1338_vm1, %v4732_v30, 0.0 }
0x191c   : > { %4735 = vadd.xlane.f32.xlu1 %v4734_v22 }
0x191d   : > { %v4733_v12 = vmul.f32 %v4731_v40, %v4731_v40 }
0x191f   : > { %v4737_v23 = vsel %vm1338_vm1, %v4733_v12, 0.0 }
0x1920   : > { %4738 = vadd.xlane.f32.xlu1 %v4737_v23 }
0x19a5   : > { %v4736_v19 = vpop.xlane.xlu1 %4735 }
0x19a6   : > { %v4740_v6 = vmul.f32 0.015625, %v4736_v19 }
0x19a8   : > { %v4742_v50 = vadd.f32 1e-05, %v4740_v6 }
0x19a9   : > { %v4739_v34 = vpop.xlane.xlu1 %4738 }
0x19aa   : > { %6403 = vrsqrt.f32 %v4742_v50  ;;  %v4741_v28 = vmul.f32 0.015625, %v4739_v34 }
0x19ac   : > { %v4743_v8 = vadd.f32 1e-05, %v4741_v28 }
0x19ae   : > { %6405 = vrsqrt.f32 %v4743_v8 }
0x19b7   : > { %v6404_v36 = vpop.eup %6403 }
0x19b8   : > { %v4746_v62 = vmul.f32 %v6404_v36, %v4730_v47 }
0x19ba   : > { %v4754_v1 = vmul.f32 %v5574_v63, %v4746_v62 }
0x19bb   : > { %v6406_v0 = vpop.eup %6405 }
0x19bc   : > { %v4747_v3 = vmul.f32 %v6406_v0, %v4731_v40  ;;  %v4762_v56 = vadd.f32 %v5575_v5, %v4754_v1 }
0x19be   : > { %v4755_v32 = vmul.f32 %v5574_v63, %v4747_v3 }
0x19c0   : > { %v4763_v13 = vadd.f32 %v5575_v5, %v4755_v32 }
0x19c2   : > { %v4764_v2 = vpack.c.bf16 %v4763_v13, %v4762_v56 }
0x19c3   : > { %4813 = vsyncadd [#allocation4], 512 }
0x19c4   : > { %6649 = dma.done.wait [#allocation4], 512 }
0x19c5   : > { %6650 = vsyncadd [#allocation4], 4294966784  ;;  %v6707_v10 = vmov 0.0   ;;  %vm6708_vm12 = vmmov 0   ;;  %v6407_v15 = vld [vmem:[#allocation3 + $0x18] sm:$0xff]   ;;  %v6408_v16 = vld [vmem:[#allocation3 + $0x10] sm:$0xff]  }
0x19c6   : > { %6009 = vmatprep.subr.bf16.mxu0 %v6707_v10  ;;  %6017 = vmatprep.mubr.msk.bf16.mxu0 %vm6708_vm12, %v6707_v10  ;;  %v6409_v21 = vld [vmem:[#allocation3 + $0x8] sm:$0xff]   ;;  %v6410_v42 = vld [vmem:[#allocation3] sm:$0xff]   ;;  %s8230_s1 = sld [smem:[#allocation67_spill]] }
0x19c7   : > { %6010 = vmatpush3.bf16.msra.mxu0 %v6407_v15 }
0x19c8   : > { %6011 = vmatprep.subr.bf16.mxu0 %v6707_v10 }
0x19cb   : > { %6012 = vmatpush3.bf16.msra.mxu0 %v6408_v16 }
0x19cc   : > { %6013 = vmatprep.subr.bf16.mxu0 %v6707_v10  ;;  %v5576_v17 = vld [vmem:[%s8230_s1] ss:$0 sm:$0xff] }
0x19cf   : > { %6014 = vmatpush3.bf16.msra.mxu0 %v6409_v21 }
0x19d0   : > { %6015 = vmatprep.subr.bf16.mxu0 %v6707_v10 }
0x19d3   : > { %6016 = vmatpush3.bf16.msra.mxu0 %v6410_v42 }
0x19d6   : > { %6018 = vmatmul.mubr.msk.bf16.vlgmr.msra.gmra.mxu0 %vm1338_vm1, %v4764_v2 }
0x1a96   : > { %v4894_v4 = vpop.f32.mrf.mxu0 }
0x1a97   : > { %v4895_v31 = vadd.f32 %v5576_v17, %v4894_v4 }
0x1a98   : > { %v6019_v35 = vpop.f32.mrf.mxu0 }
0x1a99   : > { %4903 = vmax.xlane.f32.xlu0 %v4895_v31 }
0x1a9a   : > { %v4897_v54 = vpop.f32.mrf.mxu0 }
0x1a9b   : > { %v4898_v11 = vadd.f32 %v5576_v17, %v4897_v54 }
0x1a9c   : > { %v6020_v61 = vpop.f32.mrf.mxu0 }
0x1a9d   : > { %4905 = vmax.xlane.f32.xlu0 %v4898_v11 }
0x1b22   : > { %v4904_v39 = vpop.xlane.xlu0 %4903 }
0x1b23   : > { %v4907_v26 = vmax.f32 %v4904_v39, -1e+30 }
0x1b25   : > { %v4917_v25 = vsub.f32 %v4895_v31, %v4907_v26  ;;  %v4909_v45 = vsub.f32 -1e+30, %v4907_v26 }
0x1b26   : > { %v4906_v60 = vpop.xlane.xlu0 %4905 }
0x1b27   : > { %v4908_v58 = vmax.f32 %v4906_v60, -1e+30  ;;  %v4919_v51 = vmul.f32 1.442695, %v4917_v25  ;;  %v4911_v18 = vmul.f32 1.442695, %v4909_v45 }
0x1b29   : > { %v4918_v33 = vsub.f32 %v4898_v11, %v4908_v58  ;;  %6411 = vpow2.f32 %v4919_v51  ;;  %v4910_v52 = vsub.f32 -1e+30, %v4908_v58 }
0x1b2b   : > { %v4921_v38 = vmul.f32 1.442695, %v4918_v33  ;;  %v4913_v53 = vmul.f32 1.442695, %v4910_v52 }
0x1b2d   : > { %6413 = vpow2.f32 %v4921_v38 }
0x1b2e   : > { %6415 = vpow2.f32 %v4911_v18 }
0x1b2f   : > { %6417 = vpow2.f32 %v4913_v53 }
0x1b36   : > { %v6412_v48 = vpop.eup %6411 }
0x1b37   : > { %4923 = vadd.xlane.f32.xlu1 %v6412_v48 }
0x1b3a   : > { %v6414_v43 = vpop.eup %6413 }
0x1b3b   : > { %4925 = vadd.xlane.f32.xlu1 %v6414_v43  ;;  %v6416_v59 = vpop.eup %6415 }
0x1b3c   : > { %v4915_v55 = vmul.f32 0.0, %v6416_v59  ;;  %v6418_v46 = vpop.eup %6417 }
0x1b3d   : > { %v4916_v20 = vmul.f32 0.0, %v6418_v46 }
0x1bc0   : > { %v4924_v57 = vpop.xlane.xlu1 %4923 }
0x1bc1   : > { %v4927_v14 = vadd.f32 %v4924_v57, %v4915_v55 }
0x1bc3   : > { %6419 = vlog2.f32 %v4927_v14 }
0x1bc4   : > { %v4926_v9 = vpop.xlane.xlu1 %4925 }
0x1bc5   : > { %v4928_v27 = vadd.f32 %v4926_v9, %v4916_v20 }
0x1bc7   : > { %6421 = vlog2.f32 %v4928_v27 }
0x1bd0   : > { %v6420_v37 = vpop.eup %6419 }
0x1bd1   : > { %v4930_v47 = vmul.f32 0.6931472, %v6420_v37 }
0x1bd3   : > { %v4933_v7 = vadd.f32 %v4930_v47, %v4907_v26 }
0x1bd4   : > { %v6422_v41 = vpop.eup %6421 }
0x1bd5   : > { %v4937_v30 = vsub.f32 %v4895_v31, %v4933_v7  ;;  %v4932_v40 = vmul.f32 0.6931472, %v6422_v41 }
0x1bd7   : > { %4939 = vst [vmem:[%s7213_s12] sm:$0xff] %v4937_v30  ;;  %v4934_v22 = vadd.f32 %v4932_v40, %v4908_v58 }
0x1bd9   : > { %v4938_v12 = vsub.f32 %v4898_v11, %v4934_v22 }
0x1bdb   : > { %4940 = vst [vmem:[%s7213_s12 + $0x8] sm:$0xff] %v4938_v12 }
0x1bdc PF: > { %s8231_s13 = sld [smem:[#allocation27_spill]]  ;;  %s4955_s28 = sshll.u32 %s7213_s12, 4  ;;  %s7994_s28 = int_to_ptr.vmem [resolvable:$true] %s4955_s28 }
0x1bdd   : > { %s8233_s26 = sld [smem:[#allocation69_spill]]  ;;  %s4942_s30 = scalar_lea.sflag [#allocation7], %s7080_s21 }
0x1bde   : > { %s6563_s24 = scalar_lea.vmem %s7994_s28, 256  ;;  %s6709_s10 = smov [#allocation14]  }
0x1bdf   : > { %p6564_p3 = scmp.ne.s32.totalorder %s7994_s28, %s6563_s24  ;;  %s6567_s15 = sshll.u32 %s6709_s10, 4  ;;  %s6568_s15 = int_to_ptr.vmem [resolvable:$false] %s6567_s15 }
0x1be0   : > { %s6569_s2 = scalar_lea.vmem %s6568_s15, 512  ;;  %p6570_p9 = scmp.lt.s32.totalorder %s7994_s28, %s6568_s15 }
0x1be1   : > { %p6565_p10 = pnand %p6564_p3, %p6933_p8  ;;  %p6571_p4 = scmp.lt.s32.totalorder %s6569_s2, %s6563_s24 }
0x1be2   : > { %s5597_s11 = sshll.u32 %s8231_s13, 8 }
0x1be3   : > { %s7991_s19 = scalar_lea.hbm %s8233_s26, %s5597_s11  ;;  %p6566_p13 = pneg %p6565_p10 }
0x1be4   : > { %p6572_p5 = por %p6571_p4, %p6570_p9 }
0x1be6   : > { %p6573_p2 = pnand %p6572_p5, %p6566_p13 }
0x1be8   : > { %6576 = shalt.err (!%p6573_p2)
}
0x1be9   : > { %s6577_s12 = scalar_lea.hbm %s7991_s19, 256  ;;  %s6581_s17 = scalar_lea.hbm %s8233_s26, 512 }
0x1bea   : > { %p6578_p7 = scmp.ne.s32.totalorder %s7991_s19, %s6577_s12  ;;  %p6582_p1 = scmp.lt.s32.totalorder %s7991_s19, %s8233_s26 }
0x1beb   : > { %p6583_p0 = scmp.lt.s32.totalorder %s6581_s17, %s6577_s12 }
0x1bec   : > { %p6579_p11 = pnand %p6578_p7, %p6933_p8 }
0x1bed   : > { %p6584_p12 = por %p6583_p0, %p6582_p1 }
0x1bee   : > { %p6580_p6 = pneg %p6579_p11 }
0x1bf0   : > { %p6585_p3 = pnand %p6584_p12, %p6580_p6 }
0x1bf2   : > { %6588 = shalt.err (!%p6585_p3)
}
0x1bf3   : > { %s6710_s9 = smov 128   ;;  %s6711_s25 = smov 8  }
0x1bf4   : > { %6033 = dma.vmem_to_hbm [thread:$0]  (%p6933_p8), %s7994_s28, 256, %s7991_s19, %s4942_s30, %s6710_s9, %s6710_s9, %s6711_s25  }
0x1bf5 PF: > { %s8234_s4 = sld [smem:[#allocation30_spill]] }
0x1bf6   : > { %s8235_s8 = sld [smem:[#allocation24_spill]] }
0x1bf7   : > { %s8236_s0 = sld [smem:[#allocation32_spill]] }
0x1bfb   : > { %p6056_p10 = scmp.ge.s32.totalorder %s8234_s4, 2 }
0x1bfc   : > { %s4970_s18 = sand.u32 1, %s8235_s8  }
0x1bfd   : > { %p8237_p13 = scmp.ne.s32.totalorder %s8236_s0, 0  ;;  %s4971_s27 = scalar_lea.sflag [#allocation7], %s4970_s18 }
0x1bff   : > { %p6052_p9 = pnand %p6056_p10, %p8237_p13 }
0x1c01   : > { %p6053_p4 = pneg %p6052_p9 }
0x1c03   : > { %6652 = dma.done.wait (%p6053_p4), %s4971_s27, 256  }
0x1c04   : > { %6654 = vsyncadd (%p6053_p4), %s4971_s27, 4294967040  ;;  %s50_s2 = sadd.s32 1, %s8234_s4   ;;  %s8238_s8 = sld [smem:[#allocation22_spill]] }
0x1c05   : > { %p47_p5 = scmp.ge.s32.totalorder %s50_s2, 6   ;;  %s8239_s5 = sld [smem:[#allocation23_spill]] }
0x1c06   : > { %s8240_s9 = sld [smem:[#allocation35_spill]] }
0x1c07   : > { %s8241_s30 = sld [smem:[#allocation25_spill]] }
0x1c08   : > { %s8242_s3 = sld [smem:[#allocation26_spill]] }
0x1c09   : > { %s8243_s6 = sld [smem:[#allocation36_spill]]  ;;  %49 = sbr.rel (!%p47_p5) target bundleno = 43 (0x2b), region = 329 }
0x1c0a   : > { %s8244_s10 = sld [smem:[#allocation28_spill]] }
0x1c0b   : > { %s8245_s0 = sld [smem:[#allocation29_spill]] }
0x1c0c   : > { %s8246_s11 = sld [smem:[#allocation33_spill]] }
0x1c0d   : > { %s8247_s29 = sld [smem:[#allocation34_spill]] }
0x1c0e   :  { %4976 = vsyncpa [#allocation6], 1 }
0x1c0f   :  { %4978 = vsyncpa [#allocation6 + $0x1], 1 }
0x1c10   :  { %4979 = vsyncpa [#allocation9], 1 }
0x1c11   :  { %4981 = vsyncpa [#allocation9 + $0x1], 1 }
0x1c12   :  { %4982 = vsyncpa [#allocation12], 1 }
0x1c13   :  { %4984 = vsyncpa [#allocation12 + $0x1], 1 }
0x1c14   :  { %4985 = vsyncpa [#allocation7], 1 }
0x1c15   :  { %4987 = vsyncpa [#allocation7 + $0x1], 1 }
0x1c16   :  { %4988 = vsyncmov [#allocation4] }
0x1c19   :  { %s4989_s21 = vpop.sfrf %4988 }
0x1c1a   :  { %p5587_p8 = scmp.ne.s32.totalorder %s4989_s21, 0 }
0x1c1c   :  { %4993 = shalt.err (%p5587_p8)  }
0x1c1d   :  { %4995 = vsyncmov [#allocation4 + $0x1] }
0x1c20   :  { %s4996_s22 = vpop.sfrf %4995 }
0x1c21   :  { %p5588_p2 = scmp.ne.s32.totalorder %s4996_s22, 0 }
0x1c23   :  { %5000 = shalt.err (%p5588_p2)  }

</bundles_post_ra>
